<compile_context>
chip_gen: v7x
topology: tpu7x:2x2x1
jax: 0.10.0
libtpu: 0.0.40
codegen_flags: <defaults>
</compile_context>

<pallas_src>
import functools

import jax
import jax.numpy as jnp
from jax.experimental import pallas as pl
from jax.experimental.pallas import tpu as pltpu


def _round_up(v, m):
    return ((v + m - 1) // m) * m


def _pick_tile(size, candidates=(512, 256, 128)):
    for c in candidates:
        if size % c == 0:
            return c
    return size  # unreachable: padded dims are multiples of 128


# ----------------------------------------------------------------------------
# Pallas kernels
# ----------------------------------------------------------------------------
def _mm_bias_act_kernel(x_ref, w_ref, b_ref, o_ref, acc_ref, *,
                        activation, softmax_n):
    """Tiled matmul, f32 accumulation, fused bias (+ReLU) (+row softmax).

    Grid = (M tiles, N tiles, K tiles); K is innermost ("arbitrary")."""
    k = pl.program_id(2)

    @pl.when(k == 0)
    def _():
        acc_ref[...] = jnp.zeros_like(acc_ref)

    acc_ref[...] += jnp.dot(x_ref[...], w_ref[...],
                            preferred_element_type=jnp.float32)

    @pl.when(k == pl.num_programs(2) - 1)
    def _():
        r = acc_ref[...] + b_ref[...]            # (tm, tn) f32 + (1, tn) f32
        if activation == "relu":
            r = jnp.maximum(r, 0.0)
        if softmax_n is not None:
            # Row softmax over the first `softmax_n` columns (rest is padding).
            # Requires a single N tile (tn == Np); enforced by the wrapper.
            col = jax.lax.broadcasted_iota(jnp.int32, r.shape, 1)
            valid = col < softmax_n
            mx = jnp.max(jnp.where(valid, r, -1e30), axis=1, keepdims=True)
            e = jnp.where(valid, jnp.exp(r - mx), 0.0)
            s = jnp.sum(e, axis=1, keepdims=True)
            r = e * pl.reciprocal(s, approx=False)
        o_ref[...] = r.astype(o_ref.dtype)


def _maxpool2_relu_kernel(x_ref, o_ref, *, channels):
    """x_ref block: (1, Hp, 2, Wp, 2*C); o_ref block: (1, Hp, Wp, C)."""
    v = x_ref[...]
    r = jnp.maximum(v[:, :, 0], v[:, :, 1])                  # H-pair max
    m = jnp.maximum(r[..., :channels], r[..., channels:])    # W-pair max (lane halves)
    o_ref[...] = jnp.maximum(m, 0.0)                         # ReLU (== pool-then-ReLU)


# ----------------------------------------------------------------------------
# Wrappers around pallas_call
# ----------------------------------------------------------------------------
def matmul_bias_act(x, wp, bp, n, activation=None, softmax_n=None,
                    out_dtype=jnp.bfloat16):
    """x: (M, K).  wp: (Kp, Np) pre-padded bf16.  bp: (1, Np) f32.
    Returns (M, n) in out_dtype, with fused bias/ReLU/softmax epilogue."""
    M, K = x.shape
    Kp, Np = wp.shape
    assert K <= Kp and n <= Np

    tm = min(512, _round_up(M, 8))
    Mp = _round_up(M, tm)
    tn = Np if softmax_n is not None else _pick_tile(Np)
    tk = _pick_tile(Kp)

    xp = jnp.pad(x, ((0, Mp - M), (0, Kp - K))).astype(wp.dtype)

    kernel = functools.partial(_mm_bias_act_kernel,
                               activation=activation, softmax_n=softmax_n)
    out = pl.pallas_call(
        kernel,
        out_shape=jax.ShapeDtypeStruct((Mp, Np), out_dtype),
        grid_spec=pltpu.PrefetchScalarGridSpec(
            num_scalar_prefetch=0,
            grid=(Mp // tm, Np // tn, Kp // tk),
            in_specs=[
                pl.BlockSpec((tm, tk), lambda i, j, k: (i, k)),
                pl.BlockSpec((tk, tn), lambda i, j, k: (k, j)),
                pl.BlockSpec((1, tn), lambda i, j, k: (0, j)),
            ],
            out_specs=pl.BlockSpec((tm, tn), lambda i, j, k: (i, j)),
            scratch_shapes=[pltpu.VMEM((tm, tn), jnp.float32)],
        ),
        compiler_params=pltpu.CompilerParams(
            dimension_semantics=("parallel", "parallel", "arbitrary"),
            vmem_limit_bytes=32 * 1024 * 1024,
        ),
    )(xp, wp, bp)
    return out[:M, :n]


def pallas_maxpool2_relu(x):
    """MaxPool2d(kernel_size=2, stride=2) + ReLU.  x: NHWC (B, H, W, C)."""
    B, H, W, C = x.shape
    Hp, Wp = H // 2, W // 2                 # floor, like PyTorch
    xt = x[:, :2 * Hp, :2 * Wp, :]          # drop odd remainder (no-op if even)
    xr = xt.reshape(B, Hp, 2, Wp, 2 * C)    # free row-major regrouping
    return pl.pallas_call(
        functools.partial(_maxpool2_relu_kernel, channels=C),
        out_shape=jax.ShapeDtypeStruct((B, Hp, Wp, C), x.dtype),
        grid_spec=pltpu.PrefetchScalarGridSpec(
            num_scalar_prefetch=0,
            grid=(B,),
            in_specs=[pl.BlockSpec((1, Hp, 2, Wp, 2 * C),
                                   lambda b: (b, 0, 0, 0, 0))],
            out_specs=pl.BlockSpec((1, Hp, Wp, C), lambda b: (b, 0, 0, 0)),
        ),
        compiler_params=pltpu.CompilerParams(
            dimension_semantics=("parallel",)),
    )(xr)


# ----------------------------------------------------------------------------
# Conv: NHWC im2col (glue, no transposes) + shared Pallas matmul
# ----------------------------------------------------------------------------
def _im2col_nhwc(x, k=3):
    """x: (B, H, W, C) -> (B*Ho*Wo, k*k*C), column order (kh, kw, Cin)."""
    B, H, W, C = x.shape
    Ho, Wo = H - k + 1, W - k + 1
    pats = [x[:, i:i + Ho, j:j + Wo, :] for i in range(k) for j in range(k)]
    p = jnp.stack(pats, axis=3)                 # (B, Ho, Wo, 9, C)
    return p.reshape(B * Ho * Wo, k * k * C), Ho, Wo


def conv3x3(x, wp, bp, cout, activation=None):
    """x NHWC; wp/bp pre-prepped by _prep_conv.  Valid conv, stride 1."""
    B = x.shape[0]
    cols, Ho, Wo = _im2col_nhwc(x, 3)
    y = matmul_bias_act(cols, wp, bp, cout, activation=activation)
    return y.reshape(B, Ho, Wo, cout)           # already NHWC


# ----------------------------------------------------------------------------
# Parameters: synthetic init + one-time reshape/pad/cast (no per-forward copies)
# ----------------------------------------------------------------------------
def _prep_linear(w, b, dtype):
    """w: (K, N) f32, b: (N,) f32 -> padded bf16 weight + (1, Np) f32 bias."""
    K, N = w.shape
    Kp, Np = _round_up(K, 128), _round_up(N, 128)
    wp = jnp.pad(w, ((0, Kp - K), (0, Np - N))).astype(dtype)
    bp = jnp.pad(b, (0, Np - N)).reshape(1, Np).astype(jnp.float32)
    return wp, bp


def _prep_conv(w, b, dtype):
    """w: (Cout, Cin, 3, 3) PyTorch -> (9*Cin, Cout), rows in (kh, kw, Cin) order."""
    cout, cin, kh, kw = w.shape
    wm = jnp.transpose(w, (2, 3, 1, 0)).reshape(kh * kw * cin, cout)
    return _prep_linear(wm, b, dtype)


def init_params(n_classes, key, dtype=jnp.bfloat16):
    ks = jax.random.split(key, 14)

    def u(k, shape, fan_in):
        bound = 1.0 / jnp.sqrt(fan_in)
        return jax.random.uniform(k, shape, jnp.float32, -bound, bound)

    # Master weights in PyTorch layouts (Conv2d / Linear default-style init).
    c1_w, c1_b = u(ks[0], (64, 1, 3, 3), 1 * 9), u(ks[1], (64,), 1 * 9)
    c2_w, c2_b = u(ks[2], (128, 64, 3, 3), 64 * 9), u(ks[3], (128,), 64 * 9)
    c3_w, c3_b = u(ks[4], (128, 128, 3, 3), 128 * 9), u(ks[5], (128,), 128 * 9)
    c4_w, c4_b = u(ks[6], (32, 128, 3, 3), 128 * 9), u(ks[7], (32,), 128 * 9)
    fc1_w, fc1_b = u(ks[8], (288, 4096), 288), u(ks[9], (4096,), 288)
    fc2_w, fc2_b = u(ks[10], (4096, 2048), 4096), u(ks[11], (2048,), 4096)
    fc3_w, fc3_b = u(ks[12], (2048, n_classes), 2048), u(ks[13], (n_classes,), 2048)

    # PyTorch nn.Flatten on NCHW gives (C,H,W) feature order; our activations are
    # NHWC so flatten order is (H,W,C) -> permute fc1 rows accordingly (once).
    fc1_w = fc1_w.reshape(32, 3, 3, 4096).transpose(1, 2, 0, 3).reshape(288, 4096)

    p = {}
    p["c1_w"], p["c1_b"] = _prep_conv(c1_w, c1_b, dtype)
    p["c2_w"], p["c2_b"] = _prep_conv(c2_w, c2_b, dtype)
    p["c3_w"], p["c3_b"] = _prep_conv(c3_w, c3_b, dtype)
    p["c4_w"], p["c4_b"] = _prep_conv(c4_w, c4_b, dtype)
    p["fc1_w"], p["fc1_b"] = _prep_linear(fc1_w, fc1_b, dtype)
    p["fc2_w"], p["fc2_b"] = _prep_linear(fc2_w, fc2_b, dtype)
    p["fc3_w"], p["fc3_b"] = _prep_linear(fc3_w, fc3_b, dtype)
    return p


# ----------------------------------------------------------------------------
# Forward pass (mirrors ProtoCNN.forward)
# ----------------------------------------------------------------------------
def proto_cnn_forward(x, p, *, n_classes):
    # x: (B, 1, 28, 28) NCHW f32 like the PyTorch module; go NHWC + bf16 once.
    B = x.shape[0]
    h = jnp.transpose(x, (0, 2, 3, 1)).astype(jnp.bfloat16)          # (B,28,28,1)
    h = conv3x3(h, p["c1_w"], p["c1_b"], 64, activation=None)        # (B,26,26,64)
    h = pallas_maxpool2_relu(h)                                      # (B,13,13,64)
    h = conv3x3(h, p["c2_w"], p["c2_b"], 128, activation="relu")     # (B,11,11,128)
    h = conv3x3(h, p["c3_w"], p["c3_b"], 128, activation="relu")     # (B,9,9,128)
    h = conv3x3(h, p["c4_w"], p["c4_b"], 32, activation=None)        # (B,7,7,32)
    h = pallas_maxpool2_relu(h)                                      # (B,3,3,32)
    h = h.reshape(B, -1)                                             # (B,288) NHWC flatten
    h = matmul_bias_act(h, p["fc1_w"], p["fc1_b"], 4096, activation="relu")
    h = matmul_bias_act(h, p["fc2_w"], p["fc2_b"], 2048, activation="relu")
    out = matmul_bias_act(h, p["fc3_w"], p["fc3_b"], n_classes,
                          activation=None, softmax_n=n_classes,
                          out_dtype=jnp.float32)                     # fused softmax
    return out


# ----------------------------------------------------------------------------
if __name__ == "__main__":
    n_classes = 10
    key = jax.random.PRNGKey(0)
    pkey, xkey = jax.random.split(key)

    params = init_params(n_classes, pkey)
    # fc1 in_features=288 forces 28x28 single-channel input (MNIST-sized).
    x = jax.random.normal(xkey, (2, 1, 28, 28), dtype=jnp.float32)

    fwd = jax.jit(functools.partial(proto_cnn_forward, n_classes=n_classes))
    out = jax.block_until_ready(fwd(x, params))

    assert out.shape == (2, n_classes), out.shape
    row_sums = jnp.sum(out, axis=1)
    assert bool(jnp.all(jnp.abs(row_sums - 1.0) < 1e-4)), row_sums
    assert bool(jnp.all(jnp.isfinite(out)))

    print("KERNEL_OK")
</pallas_src>

<mosaic_0001>
module attributes {stable_mosaic.version = 11 : i64} {
  func.func @_mm_bias_act_kernel(%arg0: i32, %arg1: i32, %arg2: i32, %arg3: memref<512x128xbf16, #tpu.memory_space<vmem>>, %arg4: memref<128x128xbf16, #tpu.memory_space<vmem>>, %arg5: memref<1x128xf32, #tpu.memory_space<vmem>>, %arg6: memref<512x128xbf16, #tpu.memory_space<vmem>>, %arg7: memref<512x128xf32, #tpu.memory_space<vmem>>) attributes {dimension_semantics = [#tpu.dimension_semantics<parallel>, #tpu.dimension_semantics<parallel>, #tpu.dimension_semantics<arbitrary>], iteration_bounds = array<i64: 3, 1, 1>, scalar_prefetch = 0 : i64, scratch_operands = 1 : i64, tpu.core_type = #tpu.core_type<tc>, window_params = [{transform_indices = @transform_0, window_bounds = array<i64: 512, 128>}, {transform_indices = @transform_1, window_bounds = array<i64: 128, 128>}, {transform_indices = @transform_2, window_bounds = array<i64: 1, 128>}, {transform_indices = @transform_3, window_bounds = array<i64: 512, 128>}]} {
    %c0_i32 = arith.constant 0 : i32
    %0 = arith.cmpi eq, %arg2, %c0_i32 : i32
    %1 = arith.extui %0 : i1 to i32
    %c0_i32_0 = arith.constant 0 : i32
    %2 = arith.cmpi ne, %1, %c0_i32_0 : i32
    scf.if %2 {
      %cst_10 = arith.constant 0.000000e+00 : f32
      %12 = vector.broadcast %cst_10 : f32 to vector<512x128xf32>
      %c0_11 = arith.constant 0 : index
      %c0_12 = arith.constant 0 : index
      %13 = vector.load %arg7[%c0_11, %c0_12] : memref<512x128xf32, #tpu.memory_space<vmem>>, vector<512x128xf32>
      tpu.vector_store %arg7[%c0_11, %c0_12], %12 {strides = array<i32>} : memref<512x128xf32, #tpu.memory_space<vmem>>, vector<512x128xf32>,
    } else {
    }
    %c0 = arith.constant 0 : index
    %c0_1 = arith.constant 0 : index
    %3 = vector.load %arg7[%c0, %c0_1] : memref<512x128xf32, #tpu.memory_space<vmem>>, vector<512x128xf32>
    %c0_2 = arith.constant 0 : index
    %c0_3 = arith.constant 0 : index
    %4 = vector.load %arg3[%c0_2, %c0_3] : memref<512x128xbf16, #tpu.memory_space<vmem>>, vector<512x128xbf16>
    %c0_4 = arith.constant 0 : index
    %c0_5 = arith.constant 0 : index
    %5 = vector.load %arg4[%c0_4, %c0_5] : memref<128x128xbf16, #tpu.memory_space<vmem>>, vector<128x128xbf16>
    %cst = arith.constant dense<0.000000e+00> : vector<512x128xf32>
    %6 = tpu.matmul %4, %5, %cst {dimension_numbers = #tpu.dot_dimension_numbers<[1], [0], [0], [1], [0, 0, 1, 1], [], []>} : vector<512x128xbf16>, vector<128x128xbf16>, vector<512x128xf32> -> vector<512x128xf32>
    %7 = arith.addf %3, %6 : vector<512x128xf32>
    %c0_6 = arith.constant 0 : index
    %c0_7 = arith.constant 0 : index
    %8 = vector.load %arg7[%c0_6, %c0_7] : memref<512x128xf32, #tpu.memory_space<vmem>>, vector<512x128xf32>
    tpu.vector_store %arg7[%c0_6, %c0_7], %7 {strides = array<i32>} : memref<512x128xf32, #tpu.memory_space<vmem>>, vector<512x128xf32>,
    %c0_i32_8 = arith.constant 0 : i32
    %9 = arith.cmpi eq, %arg2, %c0_i32_8 : i32
    %10 = arith.extui %9 : i1 to i32
    %c0_i32_9 = arith.constant 0 : i32
    %11 = arith.cmpi ne, %10, %c0_i32_9 : i32
    scf.if %11 {
      %c0_10 = arith.constant 0 : index
      %c0_11 = arith.constant 0 : index
      %12 = vector.load %arg7[%c0_10, %c0_11] : memref<512x128xf32, #tpu.memory_space<vmem>>, vector<512x128xf32>
      %c0_12 = arith.constant 0 : index
      %c0_13 = arith.constant 0 : index
      %13 = vector.load %arg5[%c0_12, %c0_13] : memref<1x128xf32, #tpu.memory_space<vmem>>, vector<1x128xf32>
      %14 = vector.broadcast %13 : vector<1x128xf32> to vector<512x128xf32>
      %15 = arith.addf %12, %14 : vector<512x128xf32>
      %16 = arith.truncf %15 : vector<512x128xf32> to vector<512x128xbf16>
      %c0_14 = arith.constant 0 : index
      %c0_15 = arith.constant 0 : index
      %17 = vector.load %arg6[%c0_14, %c0_15] : memref<512x128xbf16, #tpu.memory_space<vmem>>, vector<512x128xbf16>
      tpu.vector_store %arg6[%c0_14, %c0_15], %16 {strides = array<i32>} : memref<512x128xbf16, #tpu.memory_space<vmem>>, vector<512x128xbf16>,
    } else {
    }
    return
  }
  func.func @transform_0(%arg0: i32, %arg1: i32, %arg2: i32) -> (i32, i32) {
    %c0_i32 = arith.constant 0 : i32
    return %arg0, %arg2 : i32, i32
  }
  func.func @transform_1(%arg0: i32, %arg1: i32, %arg2: i32) -> (i32, i32) {
    %c0_i32 = arith.constant 0 : i32
    return %arg2, %arg1 : i32, i32
  }
  func.func @transform_2(%arg0: i32, %arg1: i32, %arg2: i32) -> (i32, i32) {
    %c0_i32 = arith.constant 0 : i32
    %c0_i32_0 = arith.constant 0 : i32
    return %c0_i32, %arg1 : i32, i32
  }
  func.func @transform_3(%arg0: i32, %arg1: i32, %arg2: i32) -> (i32, i32) {
    %c0_i32 = arith.constant 0 : i32
    return %arg0, %arg1 : i32, i32
  }
}

module attributes {stable_mosaic.version = 11 : i64} {
  func.func @_maxpool2_relu_kernel(%arg0: i32, %arg1: memref<1x13x2x13x128xbf16, #tpu.memory_space<vmem>>, %arg2: memref<1x13x13x64xbf16, #tpu.memory_space<vmem>>) attributes {dimension_semantics = [#tpu.dimension_semantics<parallel>], iteration_bounds = array<i64: 2>, scalar_prefetch = 0 : i64, scratch_operands = 0 : i64, tpu.core_type = #tpu.core_type<tc>, window_params = [{transform_indices = @transform_0, window_bounds = array<i64: 1, 13, 2, 13, 128>}, {transform_indices = @transform_1, window_bounds = array<i64: 1, 13, 13, 64>}]} {
    %c0 = arith.constant 0 : index
    %c0_0 = arith.constant 0 : index
    %c0_1 = arith.constant 0 : index
    %c0_2 = arith.constant 0 : index
    %c0_3 = arith.constant 0 : index
    %0 = vector.load %arg1[%c0, %c0_0, %c0_1, %c0_2, %c0_3] : memref<1x13x2x13x128xbf16, #tpu.memory_space<vmem>>, vector<1x13x2x13x128xbf16>
    %1 = vector.extract_strided_slice %0 {offsets = [0, 0, 0, 0, 0], sizes = [1, 13, 1, 13, 128], strides = [1, 1, 1, 1, 1]} : vector<1x13x2x13x128xbf16> to vector<1x13x1x13x128xbf16>
    %2 = vector.shape_cast %1 : vector<1x13x1x13x128xbf16> to vector<1x13x13x128xbf16>
    %3 = vector.extract_strided_slice %0 {offsets = [0, 0, 1, 0, 0], sizes = [1, 13, 1, 13, 128], strides = [1, 1, 1, 1, 1]} : vector<1x13x2x13x128xbf16> to vector<1x13x1x13x128xbf16>
    %4 = vector.shape_cast %3 : vector<1x13x1x13x128xbf16> to vector<1x13x13x128xbf16>
    %5 = arith.maximumf %2, %4 : vector<1x13x13x128xbf16>
    %6 = vector.extract_strided_slice %5 {offsets = [0, 0, 0, 0], sizes = [1, 13, 13, 64], strides = [1, 1, 1, 1]} : vector<1x13x13x128xbf16> to vector<1x13x13x64xbf16>
    %7 = vector.extract_strided_slice %5 {offsets = [0, 0, 0, 64], sizes = [1, 13, 13, 64], strides = [1, 1, 1, 1]} : vector<1x13x13x128xbf16> to vector<1x13x13x64xbf16>
    %8 = arith.maximumf %6, %7 : vector<1x13x13x64xbf16>
    %cst = arith.constant 0.000000e+00 : bf16
    %9 = vector.broadcast %cst : bf16 to vector<1x13x13x64xbf16>
    %10 = arith.maximumf %8, %9 : vector<1x13x13x64xbf16>
    %c0_4 = arith.constant 0 : index
    %c0_5 = arith.constant 0 : index
    %c0_6 = arith.constant 0 : index
    %c0_7 = arith.constant 0 : index
    %11 = vector.load %arg2[%c0_4, %c0_5, %c0_6, %c0_7] : memref<1x13x13x64xbf16, #tpu.memory_space<vmem>>, vector<1x13x13x64xbf16>
    tpu.vector_store %arg2[%c0_4, %c0_5, %c0_6, %c0_7], %10 {strides = array<i32>} : memref<1x13x13x64xbf16, #tpu.memory_space<vmem>>, vector<1x13x13x64xbf16>,
    return
  }
  func.func @transform_0(%arg0: i32) -> (i32, i32, i32, i32, i32) {
    %c0_i32 = arith.constant 0 : i32
    %c0_i32_0 = arith.constant 0 : i32
    %c0_i32_1 = arith.constant 0 : i32
    %c0_i32_2 = arith.constant 0 : i32
    %c0_i32_3 = arith.constant 0 : i32
    return %arg0, %c0_i32, %c0_i32_0, %c0_i32_1, %c0_i32_2 : i32, i32, i32, i32, i32
  }
  func.func @transform_1(%arg0: i32) -> (i32, i32, i32, i32) {
    %c0_i32 = arith.constant 0 : i32
    %c0_i32_0 = arith.constant 0 : i32
    %c0_i32_1 = arith.constant 0 : i32
    %c0_i32_2 = arith.constant 0 : i32
    return %arg0, %c0_i32, %c0_i32_0, %c0_i32_1 : i32, i32, i32, i32
  }
}

module attributes {stable_mosaic.version = 11 : i64} {
  func.func @_mm_bias_act_kernel(%arg0: i32, %arg1: i32, %arg2: i32, %arg3: memref<248x128xbf16, #tpu.memory_space<vmem>>, %arg4: memref<128x128xbf16, #tpu.memory_space<vmem>>, %arg5: memref<1x128xf32, #tpu.memory_space<vmem>>, %arg6: memref<248x128xbf16, #tpu.memory_space<vmem>>, %arg7: memref<248x128xf32, #tpu.memory_space<vmem>>) attributes {dimension_semantics = [#tpu.dimension_semantics<parallel>, #tpu.dimension_semantics<parallel>, #tpu.dimension_semantics<arbitrary>], iteration_bounds = array<i64: 1, 1, 5>, scalar_prefetch = 0 : i64, scratch_operands = 1 : i64, tpu.core_type = #tpu.core_type<tc>, window_params = [{transform_indices = @transform_0, window_bounds = array<i64: 248, 128>}, {transform_indices = @transform_1, window_bounds = array<i64: 128, 128>}, {transform_indices = @transform_2, window_bounds = array<i64: 1, 128>}, {transform_indices = @transform_3, window_bounds = array<i64: 248, 128>}]} {
    %c0_i32 = arith.constant 0 : i32
    %0 = arith.cmpi eq, %arg2, %c0_i32 : i32
    %1 = arith.extui %0 : i1 to i32
    %c0_i32_0 = arith.constant 0 : i32
    %2 = arith.cmpi ne, %1, %c0_i32_0 : i32
    scf.if %2 {
      %cst_9 = arith.constant 0.000000e+00 : f32
      %12 = vector.broadcast %cst_9 : f32 to vector<248x128xf32>
      %c0_10 = arith.constant 0 : index
      %c0_11 = arith.constant 0 : index
      %13 = vector.load %arg7[%c0_10, %c0_11] : memref<248x128xf32, #tpu.memory_space<vmem>>, vector<248x128xf32>
      tpu.vector_store %arg7[%c0_10, %c0_11], %12 {strides = array<i32>} : memref<248x128xf32, #tpu.memory_space<vmem>>, vector<248x128xf32>,
    } else {
    }
    %c0 = arith.constant 0 : index
    %c0_1 = arith.constant 0 : index
    %3 = vector.load %arg7[%c0, %c0_1] : memref<248x128xf32, #tpu.memory_space<vmem>>, vector<248x128xf32>
    %c0_2 = arith.constant 0 : index
    %c0_3 = arith.constant 0 : index
    %4 = vector.load %arg3[%c0_2, %c0_3] : memref<248x128xbf16, #tpu.memory_space<vmem>>, vector<248x128xbf16>
    %c0_4 = arith.constant 0 : index
    %c0_5 = arith.constant 0 : index
    %5 = vector.load %arg4[%c0_4, %c0_5] : memref<128x128xbf16, #tpu.memory_space<vmem>>, vector<128x128xbf16>
    %cst = arith.constant dense<0.000000e+00> : vector<248x128xf32>
    %6 = tpu.matmul %4, %5, %cst {dimension_numbers = #tpu.dot_dimension_numbers<[1], [0], [0], [1], [0, 0, 1, 1], [], []>} : vector<248x128xbf16>, vector<128x128xbf16>, vector<248x128xf32> -> vector<248x128xf32>
    %7 = arith.addf %3, %6 : vector<248x128xf32>
    %c0_6 = arith.constant 0 : index
    %c0_7 = arith.constant 0 : index
    %8 = vector.load %arg7[%c0_6, %c0_7] : memref<248x128xf32, #tpu.memory_space<vmem>>, vector<248x128xf32>
    tpu.vector_store %arg7[%c0_6, %c0_7], %7 {strides = array<i32>} : memref<248x128xf32, #tpu.memory_space<vmem>>, vector<248x128xf32>,
    %c4_i32 = arith.constant 4 : i32
    %9 = arith.cmpi eq, %arg2, %c4_i32 : i32
    %10 = arith.extui %9 : i1 to i32
    %c0_i32_8 = arith.constant 0 : i32
    %11 = arith.cmpi ne, %10, %c0_i32_8 : i32
    scf.if %11 {
      %c0_9 = arith.constant 0 : index
      %c0_10 = arith.constant 0 : index
      %12 = vector.load %arg7[%c0_9, %c0_10] : memref<248x128xf32, #tpu.memory_space<vmem>>, vector<248x128xf32>
      %c0_11 = arith.constant 0 : index
      %c0_12 = arith.constant 0 : index
      %13 = vector.load %arg5[%c0_11, %c0_12] : memref<1x128xf32, #tpu.memory_space<vmem>>, vector<1x128xf32>
      %14 = vector.broadcast %13 : vector<1x128xf32> to vector<248x128xf32>
      %15 = arith.addf %12, %14 : vector<248x128xf32>
      %cst_13 = arith.constant 0.000000e+00 : f32
      %16 = vector.broadcast %cst_13 : f32 to vector<248x128xf32>
      %17 = arith.maximumf %15, %16 : vector<248x128xf32>
      %18 = arith.truncf %17 : vector<248x128xf32> to vector<248x128xbf16>
      %c0_14 = arith.constant 0 : index
      %c0_15 = arith.constant 0 : index
      %19 = vector.load %arg6[%c0_14, %c0_15] : memref<248x128xbf16, #tpu.memory_space<vmem>>, vector<248x128xbf16>
      tpu.vector_store %arg6[%c0_14, %c0_15], %18 {strides = array<i32>} : memref<248x128xbf16, #tpu.memory_space<vmem>>, vector<248x128xbf16>,
    } else {
    }
    return
  }
  func.func @transform_0(%arg0: i32, %arg1: i32, %arg2: i32) -> (i32, i32) {
    %c0_i32 = arith.constant 0 : i32
    return %arg0, %arg2 : i32, i32
  }
  func.func @transform_1(%arg0: i32, %arg1: i32, %arg2: i32) -> (i32, i32) {
    %c0_i32 = arith.constant 0 : i32
    return %arg2, %arg1 : i32, i32
  }
  func.func @transform_2(%arg0: i32, %arg1: i32, %arg2: i32) -> (i32, i32) {
    %c0_i32 = arith.constant 0 : i32
    %c0_i32_0 = arith.constant 0 : i32
    return %c0_i32, %arg1 : i32, i32
  }
  func.func @transform_3(%arg0: i32, %arg1: i32, %arg2: i32) -> (i32, i32) {
    %c0_i32 = arith.constant 0 : i32
    return %arg0, %arg1 : i32, i32
  }
}

module attributes {stable_mosaic.version = 11 : i64} {
  func.func @_mm_bias_act_kernel(%arg0: i32, %arg1: i32, %arg2: i32, %arg3: memref<168x128xbf16, #tpu.memory_space<vmem>>, %arg4: memref<128x128xbf16, #tpu.memory_space<vmem>>, %arg5: memref<1x128xf32, #tpu.memory_space<vmem>>, %arg6: memref<168x128xbf16, #tpu.memory_space<vmem>>, %arg7: memref<168x128xf32, #tpu.memory_space<vmem>>) attributes {dimension_semantics = [#tpu.dimension_semantics<parallel>, #tpu.dimension_semantics<parallel>, #tpu.dimension_semantics<arbitrary>], iteration_bounds = array<i64: 1, 1, 9>, scalar_prefetch = 0 : i64, scratch_operands = 1 : i64, tpu.core_type = #tpu.core_type<tc>, window_params = [{transform_indices = @transform_0, window_bounds = array<i64: 168, 128>}, {transform_indices = @transform_1, window_bounds = array<i64: 128, 128>}, {transform_indices = @transform_2, window_bounds = array<i64: 1, 128>}, {transform_indices = @transform_3, window_bounds = array<i64: 168, 128>}]} {
    %c0_i32 = arith.constant 0 : i32
    %0 = arith.cmpi eq, %arg2, %c0_i32 : i32
    %1 = arith.extui %0 : i1 to i32
    %c0_i32_0 = arith.constant 0 : i32
    %2 = arith.cmpi ne, %1, %c0_i32_0 : i32
    scf.if %2 {
      %cst_9 = arith.constant 0.000000e+00 : f32
      %12 = vector.broadcast %cst_9 : f32 to vector<168x128xf32>
      %c0_10 = arith.constant 0 : index
      %c0_11 = arith.constant 0 : index
      %13 = vector.load %arg7[%c0_10, %c0_11] : memref<168x128xf32, #tpu.memory_space<vmem>>, vector<168x128xf32>
      tpu.vector_store %arg7[%c0_10, %c0_11], %12 {strides = array<i32>} : memref<168x128xf32, #tpu.memory_space<vmem>>, vector<168x128xf32>,
    } else {
    }
    %c0 = arith.constant 0 : index
    %c0_1 = arith.constant 0 : index
    %3 = vector.load %arg7[%c0, %c0_1] : memref<168x128xf32, #tpu.memory_space<vmem>>, vector<168x128xf32>
    %c0_2 = arith.constant 0 : index
    %c0_3 = arith.constant 0 : index
    %4 = vector.load %arg3[%c0_2, %c0_3] : memref<168x128xbf16, #tpu.memory_space<vmem>>, vector<168x128xbf16>
    %c0_4 = arith.constant 0 : index
    %c0_5 = arith.constant 0 : index
    %5 = vector.load %arg4[%c0_4, %c0_5] : memref<128x128xbf16, #tpu.memory_space<vmem>>, vector<128x128xbf16>
    %cst = arith.constant dense<0.000000e+00> : vector<168x128xf32>
    %6 = tpu.matmul %4, %5, %cst {dimension_numbers = #tpu.dot_dimension_numbers<[1], [0], [0], [1], [0, 0, 1, 1], [], []>} : vector<168x128xbf16>, vector<128x128xbf16>, vector<168x128xf32> -> vector<168x128xf32>
    %7 = arith.addf %3, %6 : vector<168x128xf32>
    %c0_6 = arith.constant 0 : index
    %c0_7 = arith.constant 0 : index
    %8 = vector.load %arg7[%c0_6, %c0_7] : memref<168x128xf32, #tpu.memory_space<vmem>>, vector<168x128xf32>
    tpu.vector_store %arg7[%c0_6, %c0_7], %7 {strides = array<i32>} : memref<168x128xf32, #tpu.memory_space<vmem>>, vector<168x128xf32>,
    %c8_i32 = arith.constant 8 : i32
    %9 = arith.cmpi eq, %arg2, %c8_i32 : i32
    %10 = arith.extui %9 : i1 to i32
    %c0_i32_8 = arith.constant 0 : i32
    %11 = arith.cmpi ne, %10, %c0_i32_8 : i32
    scf.if %11 {
      %c0_9 = arith.constant 0 : index
      %c0_10 = arith.constant 0 : index
      %12 = vector.load %arg7[%c0_9, %c0_10] : memref<168x128xf32, #tpu.memory_space<vmem>>, vector<168x128xf32>
      %c0_11 = arith.constant 0 : index
      %c0_12 = arith.constant 0 : index
      %13 = vector.load %arg5[%c0_11, %c0_12] : memref<1x128xf32, #tpu.memory_space<vmem>>, vector<1x128xf32>
      %14 = vector.broadcast %13 : vector<1x128xf32> to vector<168x128xf32>
      %15 = arith.addf %12, %14 : vector<168x128xf32>
      %cst_13 = arith.constant 0.000000e+00 : f32
      %16 = vector.broadcast %cst_13 : f32 to vector<168x128xf32>
      %17 = arith.maximumf %15, %16 : vector<168x128xf32>
      %18 = arith.truncf %17 : vector<168x128xf32> to vector<168x128xbf16>
      %c0_14 = arith.constant 0 : index
      %c0_15 = arith.constant 0 : index
      %19 = vector.load %arg6[%c0_14, %c0_15] : memref<168x128xbf16, #tpu.memory_space<vmem>>, vector<168x128xbf16>
      tpu.vector_store %arg6[%c0_14, %c0_15], %18 {strides = array<i32>} : memref<168x128xbf16, #tpu.memory_space<vmem>>, vector<168x128xbf16>,
    } else {
    }
    return
  }
  func.func @transform_0(%arg0: i32, %arg1: i32, %arg2: i32) -> (i32, i32) {
    %c0_i32 = arith.constant 0 : i32
    return %arg0, %arg2 : i32, i32
  }
  func.func @transform_1(%arg0: i32, %arg1: i32, %arg2: i32) -> (i32, i32) {
    %c0_i32 = arith.constant 0 : i32
    return %arg2, %arg1 : i32, i32
  }
  func.func @transform_2(%arg0: i32, %arg1: i32, %arg2: i32) -> (i32, i32) {
    %c0_i32 = arith.constant 0 : i32
    %c0_i32_0 = arith.constant 0 : i32
    return %c0_i32, %arg1 : i32, i32
  }
  func.func @transform_3(%arg0: i32, %arg1: i32, %arg2: i32) -> (i32, i32) {
    %c0_i32 = arith.constant 0 : i32
    return %arg0, %arg1 : i32, i32
  }
}

module attributes {stable_mosaic.version = 11 : i64} {
  func.func @_maxpool2_relu_kernel(%arg0: i32, %arg1: memref<1x3x2x3x64xbf16, #tpu.memory_space<vmem>>, %arg2: memref<1x3x3x32xbf16, #tpu.memory_space<vmem>>) attributes {dimension_semantics = [#tpu.dimension_semantics<parallel>], iteration_bounds = array<i64: 2>, scalar_prefetch = 0 : i64, scratch_operands = 0 : i64, tpu.core_type = #tpu.core_type<tc>, window_params = [{transform_indices = @transform_0, window_bounds = array<i64: 1, 3, 2, 3, 64>}, {transform_indices = @transform_1, window_bounds = array<i64: 1, 3, 3, 32>}]} {
    %c0 = arith.constant 0 : index
    %c0_0 = arith.constant 0 : index
    %c0_1 = arith.constant 0 : index
    %c0_2 = arith.constant 0 : index
    %c0_3 = arith.constant 0 : index
    %0 = vector.load %arg1[%c0, %c0_0, %c0_1, %c0_2, %c0_3] : memref<1x3x2x3x64xbf16, #tpu.memory_space<vmem>>, vector<1x3x2x3x64xbf16>
    %1 = vector.extract_strided_slice %0 {offsets = [0, 0, 0, 0, 0], sizes = [1, 3, 1, 3, 64], strides = [1, 1, 1, 1, 1]} : vector<1x3x2x3x64xbf16> to vector<1x3x1x3x64xbf16>
    %2 = vector.shape_cast %1 : vector<1x3x1x3x64xbf16> to vector<1x3x3x64xbf16>
    %3 = vector.extract_strided_slice %0 {offsets = [0, 0, 1, 0, 0], sizes = [1, 3, 1, 3, 64], strides = [1, 1, 1, 1, 1]} : vector<1x3x2x3x64xbf16> to vector<1x3x1x3x64xbf16>
    %4 = vector.shape_cast %3 : vector<1x3x1x3x64xbf16> to vector<1x3x3x64xbf16>
    %5 = arith.maximumf %2, %4 : vector<1x3x3x64xbf16>
    %6 = vector.extract_strided_slice %5 {offsets = [0, 0, 0, 0], sizes = [1, 3, 3, 32], strides = [1, 1, 1, 1]} : vector<1x3x3x64xbf16> to vector<1x3x3x32xbf16>
    %7 = vector.extract_strided_slice %5 {offsets = [0, 0, 0, 32], sizes = [1, 3, 3, 32], strides = [1, 1, 1, 1]} : vector<1x3x3x64xbf16> to vector<1x3x3x32xbf16>
    %8 = arith.maximumf %6, %7 : vector<1x3x3x32xbf16>
    %cst = arith.constant 0.000000e+00 : bf16
    %9 = vector.broadcast %cst : bf16 to vector<1x3x3x32xbf16>
    %10 = arith.maximumf %8, %9 : vector<1x3x3x32xbf16>
    %c0_4 = arith.constant 0 : index
    %c0_5 = arith.constant 0 : index
    %c0_6 = arith.constant 0 : index
    %c0_7 = arith.constant 0 : index
    %11 = vector.load %arg2[%c0_4, %c0_5, %c0_6, %c0_7] : memref<1x3x3x32xbf16, #tpu.memory_space<vmem>>, vector<1x3x3x32xbf16>
    tpu.vector_store %arg2[%c0_4, %c0_5, %c0_6, %c0_7], %10 {strides = array<i32>} : memref<1x3x3x32xbf16, #tpu.memory_space<vmem>>, vector<1x3x3x32xbf16>,
    return
  }
  func.func @transform_0(%arg0: i32) -> (i32, i32, i32, i32, i32) {
    %c0_i32 = arith.constant 0 : i32
    %c0_i32_0 = arith.constant 0 : i32
    %c0_i32_1 = arith.constant 0 : i32
    %c0_i32_2 = arith.constant 0 : i32
    %c0_i32_3 = arith.constant 0 : i32
    return %arg0, %c0_i32, %c0_i32_0, %c0_i32_1, %c0_i32_2 : i32, i32, i32, i32, i32
  }
  func.func @transform_1(%arg0: i32) -> (i32, i32, i32, i32) {
    %c0_i32 = arith.constant 0 : i32
    %c0_i32_0 = arith.constant 0 : i32
    %c0_i32_1 = arith.constant 0 : i32
    %c0_i32_2 = arith.constant 0 : i32
    return %arg0, %c0_i32, %c0_i32_0, %c0_i32_1 : i32, i32, i32, i32
  }
}

module attributes {stable_mosaic.version = 11 : i64} {
  func.func @_mm_bias_act_kernel(%arg0: i32, %arg1: i32, %arg2: i32, %arg3: memref<104x128xbf16, #tpu.memory_space<vmem>>, %arg4: memref<128x128xbf16, #tpu.memory_space<vmem>>, %arg5: memref<1x128xf32, #tpu.memory_space<vmem>>, %arg6: memref<104x128xbf16, #tpu.memory_space<vmem>>, %arg7: memref<104x128xf32, #tpu.memory_space<vmem>>) attributes {dimension_semantics = [#tpu.dimension_semantics<parallel>, #tpu.dimension_semantics<parallel>, #tpu.dimension_semantics<arbitrary>], iteration_bounds = array<i64: 1, 1, 9>, scalar_prefetch = 0 : i64, scratch_operands = 1 : i64, tpu.core_type = #tpu.core_type<tc>, window_params = [{transform_indices = @transform_0, window_bounds = array<i64: 104, 128>}, {transform_indices = @transform_1, window_bounds = array<i64: 128, 128>}, {transform_indices = @transform_2, window_bounds = array<i64: 1, 128>}, {transform_indices = @transform_3, window_bounds = array<i64: 104, 128>}]} {
    %c0_i32 = arith.constant 0 : i32
    %0 = arith.cmpi eq, %arg2, %c0_i32 : i32
    %1 = arith.extui %0 : i1 to i32
    %c0_i32_0 = arith.constant 0 : i32
    %2 = arith.cmpi ne, %1, %c0_i32_0 : i32
    scf.if %2 {
      %cst_9 = arith.constant 0.000000e+00 : f32
      %12 = vector.broadcast %cst_9 : f32 to vector<104x128xf32>
      %c0_10 = arith.constant 0 : index
      %c0_11 = arith.constant 0 : index
      %13 = vector.load %arg7[%c0_10, %c0_11] : memref<104x128xf32, #tpu.memory_space<vmem>>, vector<104x128xf32>
      tpu.vector_store %arg7[%c0_10, %c0_11], %12 {strides = array<i32>} : memref<104x128xf32, #tpu.memory_space<vmem>>, vector<104x128xf32>,
    } else {
    }
    %c0 = arith.constant 0 : index
    %c0_1 = arith.constant 0 : index
    %3 = vector.load %arg7[%c0, %c0_1] : memref<104x128xf32, #tpu.memory_space<vmem>>, vector<104x128xf32>
    %c0_2 = arith.constant 0 : index
    %c0_3 = arith.constant 0 : index
    %4 = vector.load %arg3[%c0_2, %c0_3] : memref<104x128xbf16, #tpu.memory_space<vmem>>, vector<104x128xbf16>
    %c0_4 = arith.constant 0 : index
    %c0_5 = arith.constant 0 : index
    %5 = vector.load %arg4[%c0_4, %c0_5] : memref<128x128xbf16, #tpu.memory_space<vmem>>, vector<128x128xbf16>
    %cst = arith.constant dense<0.000000e+00> : vector<104x128xf32>
    %6 = tpu.matmul %4, %5, %cst {dimension_numbers = #tpu.dot_dimension_numbers<[1], [0], [0], [1], [0, 0, 1, 1], [], []>} : vector<104x128xbf16>, vector<128x128xbf16>, vector<104x128xf32> -> vector<104x128xf32>
    %7 = arith.addf %3, %6 : vector<104x128xf32>
    %c0_6 = arith.constant 0 : index
    %c0_7 = arith.constant 0 : index
    %8 = vector.load %arg7[%c0_6, %c0_7] : memref<104x128xf32, #tpu.memory_space<vmem>>, vector<104x128xf32>
    tpu.vector_store %arg7[%c0_6, %c0_7], %7 {strides = array<i32>} : memref<104x128xf32, #tpu.memory_space<vmem>>, vector<104x128xf32>,
    %c8_i32 = arith.constant 8 : i32
    %9 = arith.cmpi eq, %arg2, %c8_i32 : i32
    %10 = arith.extui %9 : i1 to i32
    %c0_i32_8 = arith.constant 0 : i32
    %11 = arith.cmpi ne, %10, %c0_i32_8 : i32
    scf.if %11 {
      %c0_9 = arith.constant 0 : index
      %c0_10 = arith.constant 0 : index
      %12 = vector.load %arg7[%c0_9, %c0_10] : memref<104x128xf32, #tpu.memory_space<vmem>>, vector<104x128xf32>
      %c0_11 = arith.constant 0 : index
      %c0_12 = arith.constant 0 : index
      %13 = vector.load %arg5[%c0_11, %c0_12] : memref<1x128xf32, #tpu.memory_space<vmem>>, vector<1x128xf32>
      %14 = vector.broadcast %13 : vector<1x128xf32> to vector<104x128xf32>
      %15 = arith.addf %12, %14 : vector<104x128xf32>
      %16 = arith.truncf %15 : vector<104x128xf32> to vector<104x128xbf16>
      %c0_13 = arith.constant 0 : index
      %c0_14 = arith.constant 0 : index
      %17 = vector.load %arg6[%c0_13, %c0_14] : memref<104x128xbf16, #tpu.memory_space<vmem>>, vector<104x128xbf16>
      tpu.vector_store %arg6[%c0_13, %c0_14], %16 {strides = array<i32>} : memref<104x128xbf16, #tpu.memory_space<vmem>>, vector<104x128xbf16>,
    } else {
    }
    return
  }
  func.func @transform_0(%arg0: i32, %arg1: i32, %arg2: i32) -> (i32, i32) {
    %c0_i32 = arith.constant 0 : i32
    return %arg0, %arg2 : i32, i32
  }
  func.func @transform_1(%arg0: i32, %arg1: i32, %arg2: i32) -> (i32, i32) {
    %c0_i32 = arith.constant 0 : i32
    return %arg2, %arg1 : i32, i32
  }
  func.func @transform_2(%arg0: i32, %arg1: i32, %arg2: i32) -> (i32, i32) {
    %c0_i32 = arith.constant 0 : i32
    %c0_i32_0 = arith.constant 0 : i32
    return %c0_i32, %arg1 : i32, i32
  }
  func.func @transform_3(%arg0: i32, %arg1: i32, %arg2: i32) -> (i32, i32) {
    %c0_i32 = arith.constant 0 : i32
    return %arg0, %arg1 : i32, i32
  }
}

module attributes {stable_mosaic.version = 11 : i64} {
  func.func @_mm_bias_act_kernel(%arg0: i32, %arg1: i32, %arg2: i32, %arg3: memref<8x128xbf16, #tpu.memory_space<vmem>>, %arg4: memref<128x512xbf16, #tpu.memory_space<vmem>>, %arg5: memref<1x512xf32, #tpu.memory_space<vmem>>, %arg6: memref<8x512xbf16, #tpu.memory_space<vmem>>, %arg7: memref<8x512xf32, #tpu.memory_space<vmem>>) attributes {dimension_semantics = [#tpu.dimension_semantics<parallel>, #tpu.dimension_semantics<parallel>, #tpu.dimension_semantics<arbitrary>], iteration_bounds = array<i64: 1, 8, 3>, scalar_prefetch = 0 : i64, scratch_operands = 1 : i64, tpu.core_type = #tpu.core_type<tc>, window_params = [{transform_indices = @transform_0, window_bounds = array<i64: 8, 128>}, {transform_indices = @transform_1, window_bounds = array<i64: 128, 512>}, {transform_indices = @transform_2, window_bounds = array<i64: 1, 512>}, {transform_indices = @transform_3, window_bounds = array<i64: 8, 512>}]} {
    %c0_i32 = arith.constant 0 : i32
    %0 = arith.cmpi eq, %arg2, %c0_i32 : i32
    %1 = arith.extui %0 : i1 to i32
    %c0_i32_0 = arith.constant 0 : i32
    %2 = arith.cmpi ne, %1, %c0_i32_0 : i32
    scf.if %2 {
      %cst_9 = arith.constant 0.000000e+00 : f32
      %12 = vector.broadcast %cst_9 : f32 to vector<8x512xf32>
      %c0_10 = arith.constant 0 : index
      %c0_11 = arith.constant 0 : index
      %13 = vector.load %arg7[%c0_10, %c0_11] : memref<8x512xf32, #tpu.memory_space<vmem>>, vector<8x512xf32>
      tpu.vector_store %arg7[%c0_10, %c0_11], %12 {strides = array<i32>} : memref<8x512xf32, #tpu.memory_space<vmem>>, vector<8x512xf32>,
    } else {
    }
    %c0 = arith.constant 0 : index
    %c0_1 = arith.constant 0 : index
    %3 = vector.load %arg7[%c0, %c0_1] : memref<8x512xf32, #tpu.memory_space<vmem>>, vector<8x512xf32>
    %c0_2 = arith.constant 0 : index
    %c0_3 = arith.constant 0 : index
    %4 = vector.load %arg3[%c0_2, %c0_3] : memref<8x128xbf16, #tpu.memory_space<vmem>>, vector<8x128xbf16>
    %c0_4 = arith.constant 0 : index
    %c0_5 = arith.constant 0 : index
    %5 = vector.load %arg4[%c0_4, %c0_5] : memref<128x512xbf16, #tpu.memory_space<vmem>>, vector<128x512xbf16>
    %cst = arith.constant dense<0.000000e+00> : vector<8x512xf32>
    %6 = tpu.matmul %4, %5, %cst {dimension_numbers = #tpu.dot_dimension_numbers<[1], [0], [0], [1], [0, 0, 1, 1], [], []>} : vector<8x128xbf16>, vector<128x512xbf16>, vector<8x512xf32> -> vector<8x512xf32>
    %7 = arith.addf %3, %6 : vector<8x512xf32>
    %c0_6 = arith.constant 0 : index
    %c0_7 = arith.constant 0 : index
    %8 = vector.load %arg7[%c0_6, %c0_7] : memref<8x512xf32, #tpu.memory_space<vmem>>, vector<8x512xf32>
    tpu.vector_store %arg7[%c0_6, %c0_7], %7 {strides = array<i32>} : memref<8x512xf32, #tpu.memory_space<vmem>>, vector<8x512xf32>,
    %c2_i32 = arith.constant 2 : i32
    %9 = arith.cmpi eq, %arg2, %c2_i32 : i32
    %10 = arith.extui %9 : i1 to i32
    %c0_i32_8 = arith.constant 0 : i32
    %11 = arith.cmpi ne, %10, %c0_i32_8 : i32
    scf.if %11 {
      %c0_9 = arith.constant 0 : index
      %c0_10 = arith.constant 0 : index
      %12 = vector.load %arg7[%c0_9, %c0_10] : memref<8x512xf32, #tpu.memory_space<vmem>>, vector<8x512xf32>
      %c0_11 = arith.constant 0 : index
      %c0_12 = arith.constant 0 : index
      %13 = vector.load %arg5[%c0_11, %c0_12] : memref<1x512xf32, #tpu.memory_space<vmem>>, vector<1x512xf32>
      %14 = vector.broadcast %13 : vector<1x512xf32> to vector<8x512xf32>
      %15 = arith.addf %12, %14 : vector<8x512xf32>
      %cst_13 = arith.constant 0.000000e+00 : f32
      %16 = vector.broadcast %cst_13 : f32 to vector<8x512xf32>
      %17 = arith.maximumf %15, %16 : vector<8x512xf32>
      %18 = arith.truncf %17 : vector<8x512xf32> to vector<8x512xbf16>
      %c0_14 = arith.constant 0 : index
      %c0_15 = arith.constant 0 : index
      %19 = vector.load %arg6[%c0_14, %c0_15] : memref<8x512xbf16, #tpu.memory_space<vmem>>, vector<8x512xbf16>
      tpu.vector_store %arg6[%c0_14, %c0_15], %18 {strides = array<i32>} : memref<8x512xbf16, #tpu.memory_space<vmem>>, vector<8x512xbf16>,
    } else {
    }
    return
  }
  func.func @transform_0(%arg0: i32, %arg1: i32, %arg2: i32) -> (i32, i32) {
    %c0_i32 = arith.constant 0 : i32
    return %arg0, %arg2 : i32, i32
  }
  func.func @transform_1(%arg0: i32, %arg1: i32, %arg2: i32) -> (i32, i32) {
    %c0_i32 = arith.constant 0 : i32
    return %arg2, %arg1 : i32, i32
  }
  func.func @transform_2(%arg0: i32, %arg1: i32, %arg2: i32) -> (i32, i32) {
    %c0_i32 = arith.constant 0 : i32
    %c0_i32_0 = arith.constant 0 : i32
    return %c0_i32, %arg1 : i32, i32
  }
  func.func @transform_3(%arg0: i32, %arg1: i32, %arg2: i32) -> (i32, i32) {
    %c0_i32 = arith.constant 0 : i32
    return %arg0, %arg1 : i32, i32
  }
}

module attributes {stable_mosaic.version = 11 : i64} {
  func.func @_mm_bias_act_kernel(%arg0: i32, %arg1: i32, %arg2: i32, %arg3: memref<8x512xbf16, #tpu.memory_space<vmem>>, %arg4: memref<512x512xbf16, #tpu.memory_space<vmem>>, %arg5: memref<1x512xf32, #tpu.memory_space<vmem>>, %arg6: memref<8x512xbf16, #tpu.memory_space<vmem>>, %arg7: memref<8x512xf32, #tpu.memory_space<vmem>>) attributes {dimension_semantics = [#tpu.dimension_semantics<parallel>, #tpu.dimension_semantics<parallel>, #tpu.dimension_semantics<arbitrary>], iteration_bounds = array<i64: 1, 4, 8>, scalar_prefetch = 0 : i64, scratch_operands = 1 : i64, tpu.core_type = #tpu.core_type<tc>, window_params = [{transform_indices = @transform_0, window_bounds = array<i64: 8, 512>}, {transform_indices = @transform_1, window_bounds = array<i64: 512, 512>}, {transform_indices = @transform_2, window_bounds = array<i64: 1, 512>}, {transform_indices = @transform_3, window_bounds = array<i64: 8, 512>}]} {
    %c0_i32 = arith.constant 0 : i32
    %0 = arith.cmpi eq, %arg2, %c0_i32 : i32
    %1 = arith.extui %0 : i1 to i32
    %c0_i32_0 = arith.constant 0 : i32
    %2 = arith.cmpi ne, %1, %c0_i32_0 : i32
    scf.if %2 {
      %cst_9 = arith.constant 0.000000e+00 : f32
      %12 = vector.broadcast %cst_9 : f32 to vector<8x512xf32>
      %c0_10 = arith.constant 0 : index
      %c0_11 = arith.constant 0 : index
      %13 = vector.load %arg7[%c0_10, %c0_11] : memref<8x512xf32, #tpu.memory_space<vmem>>, vector<8x512xf32>
      tpu.vector_store %arg7[%c0_10, %c0_11], %12 {strides = array<i32>} : memref<8x512xf32, #tpu.memory_space<vmem>>, vector<8x512xf32>,
    } else {
    }
    %c0 = arith.constant 0 : index
    %c0_1 = arith.constant 0 : index
    %3 = vector.load %arg7[%c0, %c0_1] : memref<8x512xf32, #tpu.memory_space<vmem>>, vector<8x512xf32>
    %c0_2 = arith.constant 0 : index
    %c0_3 = arith.constant 0 : index
    %4 = vector.load %arg3[%c0_2, %c0_3] : memref<8x512xbf16, #tpu.memory_space<vmem>>, vector<8x512xbf16>
    %c0_4 = arith.constant 0 : index
    %c0_5 = arith.constant 0 : index
    %5 = vector.load %arg4[%c0_4, %c0_5] : memref<512x512xbf16, #tpu.memory_space<vmem>>, vector<512x512xbf16>
    %cst = arith.constant dense<0.000000e+00> : vector<8x512xf32>
    %6 = tpu.matmul %4, %5, %cst {dimension_numbers = #tpu.dot_dimension_numbers<[1], [0], [0], [1], [0, 0, 1, 1], [], []>} : vector<8x512xbf16>, vector<512x512xbf16>, vector<8x512xf32> -> vector<8x512xf32>
    %7 = arith.addf %3, %6 : vector<8x512xf32>
    %c0_6 = arith.constant 0 : index
    %c0_7 = arith.constant 0 : index
    %8 = vector.load %arg7[%c0_6, %c0_7] : memref<8x512xf32, #tpu.memory_space<vmem>>, vector<8x512xf32>
    tpu.vector_store %arg7[%c0_6, %c0_7], %7 {strides = array<i32>} : memref<8x512xf32, #tpu.memory_space<vmem>>, vector<8x512xf32>,
    %c7_i32 = arith.constant 7 : i32
    %9 = arith.cmpi eq, %arg2, %c7_i32 : i32
    %10 = arith.extui %9 : i1 to i32
    %c0_i32_8 = arith.constant 0 : i32
    %11 = arith.cmpi ne, %10, %c0_i32_8 : i32
    scf.if %11 {
      %c0_9 = arith.constant 0 : index
      %c0_10 = arith.constant 0 : index
      %12 = vector.load %arg7[%c0_9, %c0_10] : memref<8x512xf32, #tpu.memory_space<vmem>>, vector<8x512xf32>
      %c0_11 = arith.constant 0 : index
      %c0_12 = arith.constant 0 : index
      %13 = vector.load %arg5[%c0_11, %c0_12] : memref<1x512xf32, #tpu.memory_space<vmem>>, vector<1x512xf32>
      %14 = vector.broadcast %13 : vector<1x512xf32> to vector<8x512xf32>
      %15 = arith.addf %12, %14 : vector<8x512xf32>
      %cst_13 = arith.constant 0.000000e+00 : f32
      %16 = vector.broadcast %cst_13 : f32 to vector<8x512xf32>
      %17 = arith.maximumf %15, %16 : vector<8x512xf32>
      %18 = arith.truncf %17 : vector<8x512xf32> to vector<8x512xbf16>
      %c0_14 = arith.constant 0 : index
      %c0_15 = arith.constant 0 : index
      %19 = vector.load %arg6[%c0_14, %c0_15] : memref<8x512xbf16, #tpu.memory_space<vmem>>, vector<8x512xbf16>
      tpu.vector_store %arg6[%c0_14, %c0_15], %18 {strides = array<i32>} : memref<8x512xbf16, #tpu.memory_space<vmem>>, vector<8x512xbf16>,
    } else {
    }
    return
  }
  func.func @transform_0(%arg0: i32, %arg1: i32, %arg2: i32) -> (i32, i32) {
    %c0_i32 = arith.constant 0 : i32
    return %arg0, %arg2 : i32, i32
  }
  func.func @transform_1(%arg0: i32, %arg1: i32, %arg2: i32) -> (i32, i32) {
    %c0_i32 = arith.constant 0 : i32
    return %arg2, %arg1 : i32, i32
  }
  func.func @transform_2(%arg0: i32, %arg1: i32, %arg2: i32) -> (i32, i32) {
    %c0_i32 = arith.constant 0 : i32
    %c0_i32_0 = arith.constant 0 : i32
    return %c0_i32, %arg1 : i32, i32
  }
  func.func @transform_3(%arg0: i32, %arg1: i32, %arg2: i32) -> (i32, i32) {
    %c0_i32 = arith.constant 0 : i32
    return %arg0, %arg1 : i32, i32
  }
}

module attributes {stable_mosaic.version = 11 : i64} {
  func.func @_mm_bias_act_kernel(%arg0: i32, %arg1: i32, %arg2: i32, %arg3: memref<8x512xbf16, #tpu.memory_space<vmem>>, %arg4: memref<512x128xbf16, #tpu.memory_space<vmem>>, %arg5: memref<1x128xf32, #tpu.memory_space<vmem>>, %arg6: memref<8x128xf32, #tpu.memory_space<vmem>>, %arg7: memref<8x128xf32, #tpu.memory_space<vmem>>) attributes {dimension_semantics = [#tpu.dimension_semantics<parallel>, #tpu.dimension_semantics<parallel>, #tpu.dimension_semantics<arbitrary>], iteration_bounds = array<i64: 1, 1, 4>, scalar_prefetch = 0 : i64, scratch_operands = 1 : i64, tpu.core_type = #tpu.core_type<tc>, window_params = [{transform_indices = @transform_0, window_bounds = array<i64: 8, 512>}, {transform_indices = @transform_1, window_bounds = array<i64: 512, 128>}, {transform_indices = @transform_2, window_bounds = array<i64: 1, 128>}, {transform_indices = @transform_3, window_bounds = array<i64: 8, 128>}]} {
    %c0_i32 = arith.constant 0 : i32
    %0 = arith.cmpi eq, %arg2, %c0_i32 : i32
    %1 = arith.extui %0 : i1 to i32
    %c0_i32_0 = arith.constant 0 : i32
    %2 = arith.cmpi ne, %1, %c0_i32_0 : i32
    scf.if %2 {
      %cst_9 = arith.constant 0.000000e+00 : f32
      %12 = vector.broadcast %cst_9 : f32 to vector<8x128xf32>
      %c0_10 = arith.constant 0 : index
      %c0_11 = arith.constant 0 : index
      %13 = vector.load %arg7[%c0_10, %c0_11] : memref<8x128xf32, #tpu.memory_space<vmem>>, vector<8x128xf32>
      tpu.vector_store %arg7[%c0_10, %c0_11], %12 {strides = array<i32>} : memref<8x128xf32, #tpu.memory_space<vmem>>, vector<8x128xf32>,
    } else {
    }
    %c0 = arith.constant 0 : index
    %c0_1 = arith.constant 0 : index
    %3 = vector.load %arg7[%c0, %c0_1] : memref<8x128xf32, #tpu.memory_space<vmem>>, vector<8x128xf32>
    %c0_2 = arith.constant 0 : index
    %c0_3 = arith.constant 0 : index
    %4 = vector.load %arg3[%c0_2, %c0_3] : memref<8x512xbf16, #tpu.memory_space<vmem>>, vector<8x512xbf16>
    %c0_4 = arith.constant 0 : index
    %c0_5 = arith.constant 0 : index
    %5 = vector.load %arg4[%c0_4, %c0_5] : memref<512x128xbf16, #tpu.memory_space<vmem>>, vector<512x128xbf16>
    %cst = arith.constant dense<0.000000e+00> : vector<8x128xf32>
    %6 = tpu.matmul %4, %5, %cst {dimension_numbers = #tpu.dot_dimension_numbers<[1], [0], [0], [1], [0, 0, 1, 1], [], []>} : vector<8x512xbf16>, vector<512x128xbf16>, vector<8x128xf32> -> vector<8x128xf32>
    %7 = arith.addf %3, %6 : vector<8x128xf32>
    %c0_6 = arith.constant 0 : index
    %c0_7 = arith.constant 0 : index
    %8 = vector.load %arg7[%c0_6, %c0_7] : memref<8x128xf32, #tpu.memory_space<vmem>>, vector<8x128xf32>
    tpu.vector_store %arg7[%c0_6, %c0_7], %7 {strides = array<i32>} : memref<8x128xf32, #tpu.memory_space<vmem>>, vector<8x128xf32>,
    %c3_i32 = arith.constant 3 : i32
    %9 = arith.cmpi eq, %arg2, %c3_i32 : i32
    %10 = arith.extui %9 : i1 to i32
    %c0_i32_8 = arith.constant 0 : i32
    %11 = arith.cmpi ne, %10, %c0_i32_8 : i32
    scf.if %11 {
      %c0_9 = arith.constant 0 : index
      %c0_10 = arith.constant 0 : index
      %12 = vector.load %arg7[%c0_9, %c0_10] : memref<8x128xf32, #tpu.memory_space<vmem>>, vector<8x128xf32>
      %c0_11 = arith.constant 0 : index
      %c0_12 = arith.constant 0 : index
      %13 = vector.load %arg5[%c0_11, %c0_12] : memref<1x128xf32, #tpu.memory_space<vmem>>, vector<1x128xf32>
      %14 = vector.broadcast %13 : vector<1x128xf32> to vector<8x128xf32>
      %15 = arith.addf %12, %14 : vector<8x128xf32>
      %16 = tpu.iota {dimensions = array<i32: 1>} : vector<8x128xi32>
      %c10_i32 = arith.constant 10 : i32
      %17 = vector.broadcast %c10_i32 : i32 to vector<8x128xi32>
      %18 = arith.cmpi slt, %16, %17 : vector<8x128xi32>
      %cst_13 = arith.constant -1.000000e+30 : f32
      %19 = vector.broadcast %cst_13 : f32 to vector<8x128xf32>
      %20 = arith.select %18, %15, %19 : vector<8x128xi1>, vector<8x128xf32>
      %cst_14 = arith.constant dense<0xFF800000> : vector<8xf32>
      %21 = vector.multi_reduction <maximumf>, %20, %cst_14 [1] : vector<8x128xf32> to vector<8xf32>
      %22 = vector.shape_cast %21 : vector<8xf32> to vector<8x1xf32>
      %23 = vector.broadcast %22 : vector<8x1xf32> to vector<8x128xf32>
      %24 = arith.subf %15, %23 : vector<8x128xf32>
      %25 = math.exp %24 : vector<8x128xf32>
      %cst_15 = arith.constant 0.000000e+00 : f32
      %26 = vector.broadcast %cst_15 : f32 to vector<8x128xf32>
      %27 = arith.select %18, %25, %26 : vector<8x128xi1>, vector<8x128xf32>
      %cst_16 = arith.constant dense<0.000000e+00> : vector<8xf32>
      %28 = vector.multi_reduction <add>, %27, %cst_16 [1] : vector<8x128xf32> to vector<8xf32>
      %29 = vector.shape_cast %28 : vector<8xf32> to vector<8x1xf32>
      %30 = tpu.reciprocal %29 : vector<8x1xf32> -> vector<8x1xf32>
      %31 = vector.broadcast %30 : vector<8x1xf32> to vector<8x128xf32>
      %32 = arith.mulf %27, %31 : vector<8x128xf32>
      %c0_17 = arith.constant 0 : index
      %c0_18 = arith.constant 0 : index
      %33 = vector.load %arg6[%c0_17, %c0_18] : memref<8x128xf32, #tpu.memory_space<vmem>>, vector<8x128xf32>
      tpu.vector_store %arg6[%c0_17, %c0_18], %32 {strides = array<i32>} : memref<8x128xf32, #tpu.memory_space<vmem>>, vector<8x128xf32>,
    } else {
    }
    return
  }
  func.func @transform_0(%arg0: i32, %arg1: i32, %arg2: i32) -> (i32, i32) {
    %c0_i32 = arith.constant 0 : i32
    return %arg0, %arg2 : i32, i32
  }
  func.func @transform_1(%arg0: i32, %arg1: i32, %arg2: i32) -> (i32, i32) {
    %c0_i32 = arith.constant 0 : i32
    return %arg2, %arg1 : i32, i32
  }
  func.func @transform_2(%arg0: i32, %arg1: i32, %arg2: i32) -> (i32, i32) {
    %c0_i32 = arith.constant 0 : i32
    %c0_i32_0 = arith.constant 0 : i32
    return %c0_i32, %arg1 : i32, i32
  }
  func.func @transform_3(%arg0: i32, %arg1: i32, %arg2: i32) -> (i32, i32) {
    %c0_i32 = arith.constant 0 : i32
    return %arg0, %arg1 : i32, i32
  }
}

</mosaic_0001>

<bundles_post_ra>
// kernel: proto_cnn_forward.10
= control target key start
LH: loop header
LB: loop body
LE: loop exit
PB: predicated region body
PF: predicated region fallthrough
CT: control target
= control target key end

     0   :  { %s504_s6 = smov 0   ;;  %s819_s0 = inlined_call_operand.vmem [shape: bf16[2,13,2,13,128], index: 0, kind: input, shape index: {}]   ;;  %s820_s1 = inlined_call_operand.vmem [shape: bf16[2,13,13,64], index: 1, kind: output, shape index: {}]  }
   0x1 LB: > { %s463_s7 = sadd.s32 4294967295, %s490_s6   ;;  %p467_p0 = scmp.ge.s32.totalorder %s490_s6, 1  ;;  %s490_s6 = sphi %s504_s6, %s11_s6  }
   0x2   : > { %p87_p1 = scmp.lt.s32.totalorder %s490_s6, 3 }
   0x4   : > { %p88_p2 = pnand %p467_p0, %p87_p1 }
   0x5   : > { %p107_p3 = scmp.lt.s32.totalorder (!%p88_p2), %s463_s7, 1  ;;  %s492_s12 = smov (!%p88_p2), 64   ;;  %vm354_vm0 = vcmask (!%p88_p2), 518144   ;;  %vm355_vm1 = vsmask.f32 (!%p88_p2), 2304  ;;  %vm352_vm3 = vcmask (!%p88_p2), 519168  }
   0x6   : > { %91 = sbr.rel (%p88_p2) target bundleno = 189 (0xbd), region = 24  ;;  %vm683_vm2 = vmand (!%p88_p2), %vm354_vm0, %vm355_vm1 }
   0xd   : > { %s824_s7 = smov (!%p107_p3, %s463_s7), 1 }
   0xe   : > { %s472_s8 = smul.u32 208, %s824_s7 }
   0xf   : > { %s473_s13 = smul.u32 104, %s824_s7 }
  0x10   : > { %s518_s11 = scalar_lea.vmem %s819_s0, %s472_s8 }
  0x11   : > { %v127_v0 = vld [vmem:[%s518_s11 + $0x24] sm:$0x7]  ;;  %v129_v1 = vld [vmem:[%s518_s11 + $0x2c] sm:$0x7]  ;;  %v131_v5 = vld [vmem:[%s518_s11 + $0x34] sm:$0x7]  ;;  %s680_s16 = scalar_lea.vmem %s820_s1, %s473_s13 }
  0x12   : > { %v119_v2 = vld [vmem:[%s518_s11 + $0x4] sm:$0x7]  ;;  %v523_v3 = vmax.bf16 %v129_v1, %v127_v0  ;;  %v121_v4 = vld [vmem:[%s518_s11 + $0xc] sm:$0x7]  ;;  %v133_v6 = vld [vmem:[%s518_s11 + $0x3c] sm:$0x7] }
  0x13   : > { %v528_v7 = vmax.bf16 %v121_v4, %v119_v2  ;;  %v123_v8 = vld [vmem:[%s518_s11 + $0x14] sm:$0x7]  ;;  %v125_v9 = vld [vmem:[%s518_s11 + $0x1c] sm:$0x7]  ;;  %v534_v10 = vmax.bf16 %v133_v6, %v131_v5  ;;  %v135_v14 = vld [vmem:[%s518_s11 + $0x44] sm:$0x7] }
  0x14   : > { %232 = vrot.lane.b32.xlu1 %v523_v3, %s492_s12  ;;  %v538_v11 = vmax.bf16 %v125_v9, %v123_v8  ;;  %v139_v12 = vld [vmem:[%s518_s11 + $0x54] sm:$0x7]  ;;  %v141_v13 = vld [vmem:[%s518_s11 + $0x5c] sm:$0x7]  ;;  %v137_v15 = vld [vmem:[%s518_s11 + $0x4c] sm:$0x7] }
  0x15   : > { %224 = vrot.lane.b32.xlu0 %v528_v7, %s492_s12  ;;  %v546_v16 = vmax.bf16 %v141_v13, %v139_v12  ;;  %v550_v17 = vmax.bf16 %v137_v15, %v135_v14  ;;  %v147_v18 = vld [vmem:[%s518_s11 + $0x74] sm:$0x7]  ;;  %v149_v19 = vld [vmem:[%s518_s11 + $0x7c] sm:$0x7]  ;;  %v143_v20 = vld [vmem:[%s518_s11 + $0x64] sm:$0x7] }
  0x16   : > { %v145_v21 = vld [vmem:[%s518_s11 + $0x6c] sm:$0x7]  ;;  %v558_v22 = vmax.bf16 %v149_v19, %v147_v18  ;;  %v155_v24 = vld [vmem:[%s518_s11 + $0x94] sm:$0x7]  ;;  %v157_v25 = vld [vmem:[%s518_s11 + $0x9c] sm:$0x7] }
  0x17   : > { %v562_v23 = vmax.bf16 %v145_v21, %v143_v20  ;;  %v151_v26 = vld [vmem:[%s518_s11 + $0x84] sm:$0x7]  ;;  %v153_v27 = vld [vmem:[%s518_s11 + $0x8c] sm:$0x7]  ;;  %v570_v28 = vmax.bf16 %v157_v25, %v155_v24  ;;  %v163_v30 = vld [vmem:[%s518_s11 + $0xb4] sm:$0x7] }
  0x18   : > { %236 = vrot.lane.b32.xlu1 %v534_v10, %s492_s12  ;;  %v574_v29 = vmax.bf16 %v153_v27, %v151_v26  ;;  %v165_v31 = vld [vmem:[%s518_s11 + $0xbc] sm:$0x7]  ;;  %v159_v32 = vld [vmem:[%s518_s11 + $0xa4] sm:$0x7]  ;;  %v161_v33 = vld [vmem:[%s518_s11 + $0xac] sm:$0x7] }
  0x19   : > { %228 = vrot.lane.b32.xlu0 %v538_v11, %s492_s12  ;;  %v582_v34 = vmax.bf16 %v165_v31, %v163_v30  ;;  %v586_v35 = vmax.bf16 %v161_v33, %v159_v32  ;;  %v118_v36 = vld [vmem:[%s518_s11] sm:$0xf]  ;;  %v120_v37 = vld [vmem:[%s518_s11 + $0x8] sm:$0xf]  ;;  %v167_v38 = vld [vmem:[%s518_s11 + $0xc4] sm:$0x7] }
  0x1a   : > { %v169_v39 = vld [vmem:[%s518_s11 + $0xcc] sm:$0x7]  ;;  %v594_v40 = vmax.bf16 %v120_v37, %v118_v36  ;;  %v126_v42 = vld [vmem:[%s518_s11 + $0x20] sm:$0xf]  ;;  %v128_v43 = vld [vmem:[%s518_s11 + $0x28] sm:$0xf] }
  0x1b   : > { %v598_v41 = vmax.bf16 %v169_v39, %v167_v38  ;;  %v122_v44 = vld [vmem:[%s518_s11 + $0x10] sm:$0xf]  ;;  %v124_v45 = vld [vmem:[%s518_s11 + $0x18] sm:$0xf]  ;;  %v606_v46 = vmax.bf16 %v128_v43, %v126_v42  ;;  %v134_v48 = vld [vmem:[%s518_s11 + $0x40] sm:$0xf] }
  0x1c   : > { %244 = vrot.lane.b32.xlu1 %v546_v16, %s492_s12  ;;  %v610_v47 = vmax.bf16 %v124_v45, %v122_v44  ;;  %v136_v49 = vld [vmem:[%s518_s11 + $0x48] sm:$0xf]  ;;  %v130_v50 = vld [vmem:[%s518_s11 + $0x30] sm:$0xf]  ;;  %v132_v51 = vld [vmem:[%s518_s11 + $0x38] sm:$0xf] }
  0x1d   : > { %240 = vrot.lane.b32.xlu0 %v550_v17, %s492_s12  ;;  %v618_v52 = vmax.bf16 %v136_v49, %v134_v48  ;;  %v622_v53 = vmax.bf16 %v132_v51, %v130_v50  ;;  %v142_v54 = vld [vmem:[%s518_s11 + $0x60] sm:$0xf]  ;;  %v144_v55 = vld [vmem:[%s518_s11 + $0x68] sm:$0xf]  ;;  %v138_v56 = vld [vmem:[%s518_s11 + $0x50] sm:$0xf] }
  0x1e   : > { %v140_v57 = vld [vmem:[%s518_s11 + $0x58] sm:$0xf]  ;;  %v630_v58 = vmax.bf16 %v144_v55, %v142_v54  ;;  %v150_v60 = vld [vmem:[%s518_s11 + $0x80] sm:$0xf]  ;;  %v152_v61 = vld [vmem:[%s518_s11 + $0x88] sm:$0xf] }
  0x1f   : > { %v634_v59 = vmax.bf16 %v140_v57, %v138_v56  ;;  %v146_v62 = vld [vmem:[%s518_s11 + $0x70] sm:$0xf]  ;;  %v148_v63 = vld [vmem:[%s518_s11 + $0x78] sm:$0xf]  ;;  %v642_v0 = vmax.bf16 %v152_v61, %v150_v60  ;;  %v158_v2 = vld [vmem:[%s518_s11 + $0xa0] sm:$0xf] }
  0x20   : > { %252 = vrot.lane.b32.xlu1 %v558_v22, %s492_s12  ;;  %v646_v1 = vmax.bf16 %v148_v63, %v146_v62  ;;  %v160_v4 = vld [vmem:[%s518_s11 + $0xa8] sm:$0xf]  ;;  %v154_v5 = vld [vmem:[%s518_s11 + $0x90] sm:$0xf]  ;;  %v156_v6 = vld [vmem:[%s518_s11 + $0x98] sm:$0xf] }
  0x21   : > { %248 = vrot.lane.b32.xlu0 %v562_v23, %s492_s12  ;;  %v654_v8 = vmax.bf16 %v160_v4, %v158_v2  ;;  %v658_v9 = vmax.bf16 %v156_v6, %v154_v5  ;;  %v166_v12 = vld [vmem:[%s518_s11 + $0xc0] sm:$0xf]  ;;  %v168_v13 = vld [vmem:[%s518_s11 + $0xc8] sm:$0xf]  ;;  %v162_v14 = vld [vmem:[%s518_s11 + $0xb0] sm:$0xf] }
  0x22   : > { %v164_v15 = vld [vmem:[%s518_s11 + $0xb8] sm:$0xf]  ;;  %v666_v18 = vmax.bf16 %v168_v13, %v166_v12  ;;  %v365_v26 = vld [vmem:[%s680_s16 + $0x14] sm:$0x7]  ;;  %v493_v30 = vmov 0  }
  0x23   : > { %v670_v19 = vmax.bf16 %v164_v15, %v162_v14  ;;  %v357_v32 = vld [vmem:[%s680_s16 + $0x4] sm:$0x7]  ;;  %v369_v39 = vld [vmem:[%s680_s16 + $0x1c] sm:$0x7]  ;;  %v361_v44 = vld [vmem:[%s680_s16 + $0xc] sm:$0x7] }
  0x24   : > { %260 = vrot.lane.b32.xlu1 %v570_v28, %s492_s12  ;;  %v377_v51 = vld [vmem:[%s680_s16 + $0x2c] sm:$0x7]  ;;  %v373_v56 = vld [vmem:[%s680_s16 + $0x24] sm:$0x7]  ;;  %v385_v63 = vld [vmem:[%s680_s16 + $0x3c] sm:$0x7] }
  0x25   : > { %256 = vrot.lane.b32.xlu0 %v574_v29, %s492_s12  ;;  %v381_v5 = vld [vmem:[%s680_s16 + $0x34] sm:$0x7]  ;;  %v393_v15 = vld [vmem:[%s680_s16 + $0x4c] sm:$0x7] }
  0x28   : > { %268 = vrot.lane.b32.xlu1 %v582_v34, %s492_s12 }
  0x29   : > { %264 = vrot.lane.b32.xlu0 %v586_v35, %s492_s12 }
  0x2c   : > { %222 = vrot.lane.b32.xlu1 %v594_v40, %s492_s12 }
  0x2d   : > { %272 = vrot.lane.b32.xlu0 %v598_v41, %s492_s12 }
  0x30   : > { %230 = vrot.lane.b32.xlu1 %v606_v46, %s492_s12 }
  0x31   : > { %226 = vrot.lane.b32.xlu0 %v610_v47, %s492_s12 }
  0x34   : > { %238 = vrot.lane.b32.xlu1 %v618_v52, %s492_s12 }
  0x35   : > { %234 = vrot.lane.b32.xlu0 %v622_v53, %s492_s12 }
  0x38   : > { %246 = vrot.lane.b32.xlu1 %v630_v58, %s492_s12 }
  0x39   : > { %242 = vrot.lane.b32.xlu0 %v634_v59, %s492_s12 }
  0x3c   : > { %254 = vrot.lane.b32.xlu1 %v642_v0, %s492_s12 }
  0x3d   : > { %250 = vrot.lane.b32.xlu0 %v646_v1, %s492_s12 }
  0x40   : > { %262 = vrot.lane.b32.xlu1 %v654_v8, %s492_s12 }
  0x41   : > { %258 = vrot.lane.b32.xlu0 %v658_v9, %s492_s12 }
  0x44   : > { %270 = vrot.lane.b32.xlu1 %v666_v18, %s492_s12 }
  0x45   : > { %266 = vrot.lane.b32.xlu0 %v670_v19, %s492_s12 }
  0x86   : > { %v233_v20 = vpop.permute.xlu1 %232 }
  0x87   : > { %v305_v21 = vmax.bf16 %v233_v20, %v523_v3  ;;  %v225_v24 = vpop.permute.xlu0 %224 }
  0x88   : > { %v301_v27 = vmax.bf16 %v225_v24, %v528_v7  ;;  %v389_v24 = vld [vmem:[%s680_s16 + $0x44] sm:$0x7] }
  0x89   : > { %v331_v31 = vmax.bf16 %v493_v30, %v305_v21 }
  0x8a   : > { %v327_v33 = vmax.bf16 %v493_v30, %v301_v27  ;;  %v237_v36 = vpop.permute.xlu1 %236 }
  0x8b   : > { %v366_v3 = vsel %vm683_vm2, %v331_v31, %v365_v26  ;;  %v307_v37 = vmax.bf16 %v237_v36, %v534_v10  ;;  %v229_v38 = vpop.permute.xlu0 %228 }
  0x8c   : > { %367 = vst [vmem:[%s680_s16 + $0x14] sm:$0x7] %v366_v3  ;;  %v358_v7 = vsel %vm683_vm2, %v327_v33, %v357_v32  ;;  %v303_v42 = vmax.bf16 %v229_v38, %v538_v11 }
  0x8d   : > { %359 = vst [vmem:[%s680_s16 + $0x4] sm:$0x7] %v358_v7  ;;  %v333_v43 = vmax.bf16 %v493_v30, %v307_v37  ;;  %v397_v37 = vld [vmem:[%s680_s16 + $0x54] sm:$0x7] }
  0x8e   : > { %v329_v45 = vmax.bf16 %v493_v30, %v303_v42  ;;  %v245_v48 = vpop.permute.xlu1 %244 }
  0x8f   : > { %v370_v10 = vsel %vm683_vm2, %v333_v43, %v369_v39  ;;  %v311_v49 = vmax.bf16 %v245_v48, %v546_v16  ;;  %v241_v50 = vpop.permute.xlu0 %240 }
  0x90   : > { %371 = vst [vmem:[%s680_s16 + $0x1c] sm:$0x7] %v370_v10  ;;  %v362_v11 = vsel %vm683_vm2, %v329_v45, %v361_v44  ;;  %v309_v54 = vmax.bf16 %v241_v50, %v550_v17  ;;  %v405_v44 = vld [vmem:[%s680_s16 + $0x64] sm:$0x7] }
  0x91   : > { %363 = vst [vmem:[%s680_s16 + $0xc] sm:$0x7] %v362_v11  ;;  %v337_v55 = vmax.bf16 %v493_v30, %v311_v49 }
  0x92   : > { %v335_v57 = vmax.bf16 %v493_v30, %v309_v54  ;;  %v253_v60 = vpop.permute.xlu1 %252 }
  0x93   : > { %v378_v16 = vsel %vm683_vm2, %v337_v55, %v377_v51  ;;  %v315_v61 = vmax.bf16 %v253_v60, %v558_v22  ;;  %v249_v62 = vpop.permute.xlu0 %248 }
  0x94   : > { %379 = vst [vmem:[%s680_s16 + $0x2c] sm:$0x7] %v378_v16  ;;  %v374_v17 = vsel %vm683_vm2, %v335_v57, %v373_v56  ;;  %v313_v2 = vmax.bf16 %v249_v62, %v562_v23 }
  0x95   : > { %375 = vst [vmem:[%s680_s16 + $0x24] sm:$0x7] %v374_v17  ;;  %v341_v4 = vmax.bf16 %v493_v30, %v315_v61 }
  0x96   : > { %v339_v6 = vmax.bf16 %v493_v30, %v313_v2  ;;  %v261_v12 = vpop.permute.xlu1 %260 }
  0x97   : > { %v386_v22 = vsel %vm683_vm2, %v341_v4, %v385_v63  ;;  %v319_v13 = vmax.bf16 %v261_v12, %v570_v28  ;;  %v257_v14 = vpop.permute.xlu0 %256 }
  0x98   : > { %387 = vst [vmem:[%s680_s16 + $0x3c] sm:$0x7] %v386_v22  ;;  %v382_v23 = vsel %vm683_vm2, %v339_v6, %v381_v5  ;;  %v317_v20 = vmax.bf16 %v257_v14, %v574_v29  ;;  %v401_v29 = vld [vmem:[%s680_s16 + $0x5c] sm:$0x7] }
  0x99   : > { %383 = vst [vmem:[%s680_s16 + $0x34] sm:$0x7] %v382_v23  ;;  %v345_v21 = vmax.bf16 %v493_v30, %v319_v13 }
  0x9a   : > { %v343_v26 = vmax.bf16 %v493_v30, %v317_v20  ;;  %v269_v27 = vpop.permute.xlu1 %268 }
  0x9b   : > { %v394_v28 = vsel %vm683_vm2, %v345_v21, %v393_v15  ;;  %v323_v31 = vmax.bf16 %v269_v27, %v582_v34  ;;  %v265_v32 = vpop.permute.xlu0 %264 }
  0x9c   : > { %395 = vst [vmem:[%s680_s16 + $0x4c] sm:$0x7] %v394_v28  ;;  %v390_v33 = vsel %vm683_vm2, %v343_v26, %v389_v24  ;;  %v321_v36 = vmax.bf16 %v265_v32, %v586_v35 }
  0x9d   : > { %391 = vst [vmem:[%s680_s16 + $0x44] sm:$0x7] %v390_v33  ;;  %v349_v3 = vmax.bf16 %v493_v30, %v323_v31 }
  0x9e   : > { %v347_v38 = vmax.bf16 %v493_v30, %v321_v36  ;;  %v223_v7 = vpop.permute.xlu1 %222 }
  0x9f   : > { %v402_v34 = vsel %vm683_vm2, %v349_v3, %v401_v29  ;;  %v273_v39 = vpop.permute.xlu0 %272  ;;  %v300_v42 = vmax.bf16 %v223_v7, %v594_v40 }
  0xa0   : > { %403 = vst [vmem:[%s680_s16 + $0x5c] sm:$0x7] %v402_v34  ;;  %v398_v43 = vsel %vm683_vm2, %v347_v38, %v397_v37  ;;  %v325_v35 = vmax.bf16 %v273_v39, %v598_v41 }
  0xa1   : > { %399 = vst [vmem:[%s680_s16 + $0x54] sm:$0x7] %v398_v43  ;;  %v326_v45 = vmax.bf16 %v493_v30, %v300_v42 }
  0xa2   : > { %v351_v48 = vmax.bf16 %v493_v30, %v325_v35  ;;  %v231_v10 = vpop.permute.xlu1 %230 }
  0xa3   : > { %353 = vst.msk [vmem:[%s680_s16] sm:$0xf] %vm352_vm3, %v326_v45  ;;  %v227_v49 = vpop.permute.xlu0 %226  ;;  %v304_v40 = vmax.bf16 %v231_v10, %v606_v46 }
  0xa4   : > { %v406_v50 = vsel %vm683_vm2, %v351_v48, %v405_v44  ;;  %v302_v41 = vmax.bf16 %v227_v49, %v610_v47 }
  0xa5   : > { %407 = vst [vmem:[%s680_s16 + $0x64] sm:$0x7] %v406_v50  ;;  %v330_v11 = vmax.bf16 %v493_v30, %v304_v40 }
  0xa6   : > { %v328_v51 = vmax.bf16 %v493_v30, %v302_v41  ;;  %v239_v54 = vpop.permute.xlu1 %238 }
  0xa7   : > { %364 = vst.msk [vmem:[%s680_s16 + $0x10] sm:$0xf] %vm352_vm3, %v330_v11  ;;  %v235_v55 = vpop.permute.xlu0 %234  ;;  %v308_v56 = vmax.bf16 %v239_v54, %v618_v52 }
  0xa8   : > { %360 = vst.msk [vmem:[%s680_s16 + $0x8] sm:$0xf] %vm352_vm3, %v328_v51  ;;  %v306_v46 = vmax.bf16 %v235_v55, %v622_v53 }
  0xa9   : > { %v334_v47 = vmax.bf16 %v493_v30, %v308_v56 }
  0xaa   : > { %v332_v25 = vmax.bf16 %v493_v30, %v306_v46  ;;  %v247_v57 = vpop.permute.xlu1 %246 }
  0xab   : > { %372 = vst.msk [vmem:[%s680_s16 + $0x20] sm:$0xf] %vm352_vm3, %v334_v47  ;;  %v243_v60 = vpop.permute.xlu0 %242  ;;  %v312_v16 = vmax.bf16 %v247_v57, %v630_v58 }
  0xac   : > { %368 = vst.msk [vmem:[%s680_s16 + $0x18] sm:$0xf] %vm352_vm3, %v332_v25  ;;  %v310_v52 = vmax.bf16 %v243_v60, %v634_v59 }
  0xad   : > { %v338_v61 = vmax.bf16 %v493_v30, %v312_v16 }
  0xae   : > { %v336_v53 = vmax.bf16 %v493_v30, %v310_v52  ;;  %v255_v62 = vpop.permute.xlu1 %254 }
  0xaf   : > { %380 = vst.msk [vmem:[%s680_s16 + $0x30] sm:$0xf] %vm352_vm3, %v338_v61  ;;  %v251_v17 = vpop.permute.xlu0 %250  ;;  %v316_v63 = vmax.bf16 %v255_v62, %v642_v0 }
  0xb0   : > { %376 = vst.msk [vmem:[%s680_s16 + $0x28] sm:$0xf] %vm352_vm3, %v336_v53  ;;  %v314_v58 = vmax.bf16 %v251_v17, %v646_v1 }
  0xb1   : > { %v342_v2 = vmax.bf16 %v493_v30, %v316_v63 }
  0xb2   : > { %v340_v59 = vmax.bf16 %v493_v30, %v314_v58  ;;  %v263_v4 = vpop.permute.xlu1 %262 }
  0xb3   : > { %388 = vst.msk [vmem:[%s680_s16 + $0x40] sm:$0xf] %vm352_vm3, %v342_v2  ;;  %v259_v5 = vpop.permute.xlu0 %258  ;;  %v320_v6 = vmax.bf16 %v263_v4, %v654_v8 }
  0xb4   : > { %384 = vst.msk [vmem:[%s680_s16 + $0x38] sm:$0xf] %vm352_vm3, %v340_v59  ;;  %v318_v0 = vmax.bf16 %v259_v5, %v658_v9 }
  0xb5   : > { %v346_v12 = vmax.bf16 %v493_v30, %v320_v6 }
  0xb6   : > { %v344_v1 = vmax.bf16 %v493_v30, %v318_v0  ;;  %v271_v22 = vpop.permute.xlu1 %270 }
  0xb7   : > { %396 = vst.msk [vmem:[%s680_s16 + $0x50] sm:$0xf] %vm352_vm3, %v346_v12  ;;  %v267_v13 = vpop.permute.xlu0 %266  ;;  %v324_v14 = vmax.bf16 %v271_v22, %v666_v18 }
  0xb8   : > { %392 = vst.msk [vmem:[%s680_s16 + $0x48] sm:$0xf] %vm352_vm3, %v344_v1  ;;  %v322_v23 = vmax.bf16 %v267_v13, %v670_v19 }
  0xb9   : > { %v350_v8 = vmax.bf16 %v493_v30, %v324_v14 }
  0xba   : > { %v348_v15 = vmax.bf16 %v493_v30, %v322_v23 }
  0xbb   : > { %404 = vst.msk [vmem:[%s680_s16 + $0x60] sm:$0xf] %vm352_vm3, %v350_v8 }
  0xbc   : > { %400 = vst.msk [vmem:[%s680_s16 + $0x58] sm:$0xf] %vm352_vm3, %v348_v15 }
  0xbd PF: > { %s11_s6 = sadd.s32 1, %s490_s6  }
  0xbe   : > { %p8_p4 = scmp.ge.s32.totalorder %s11_s6, 4  }
  0xc0   :  { %10 = sbr.rel (!%p8_p4) target bundleno = 1 (0x1), region = 54 }

// kernel: proto_cnn_forward.9
= control target key start
LH: loop header
LB: loop body
LE: loop exit
PB: predicated region body
PF: predicated region fallthrough
CT: control target
= control target key end

     0   :  { %8 = vsyncpa [#allocation4], 0  ;;  %s2660_s0 = inlined_call_operand.vmem [shape: bf16[1536,128], index: 0, kind: input, shape index: {}]   ;;  %s2661_s1 = inlined_call_operand.hbm [shape: bf16[128,128], index: 1, kind: input, shape index: {}]   ;;  %s2662_s2 = inlined_call_operand.hbm [shape: f32[1,128], index: 2, kind: input, shape index: {}]   ;;  %s2663_s3 = inlined_call_operand.vmem [shape: bf16[1536,128], index: 3, kind: output, shape index: {}]  }
   0x1   :  { %9 = vsyncpa [#allocation6], 0  ;;  %s2406_s12 = smov 0   ;;  %s2408_s13 = smov 0  }
   0x2   :  { %s2410_s14 = smov 0  }
   0x3 LB: > { %s1696_s15 = sadd.s32 4294967295, %s2380_s14   ;;  %s34_s16 = sadd.s32 1, %s2376_s13  ;;  %s2380_s14 = sphi %s2410_s14, %s15_s14   ;;  %s2376_s13 = sphi %s2408_s13, %s2673_s13   ;;  %s2372_s12 = sphi %s2406_s12, %s2672_s12  }
   0x4   : > { %p36_p0 = scmp.ge.s32.totalorder %s34_s16, 3  ;;  %p1698_p1 = scmp.ge.s32.totalorder %s2380_s14, 1 }
   0x5   : > { %p149_p2 = scmp.lt.s32.totalorder %s2380_s14, 4  ;;  %p2431_p4 = scmp.eq.s32.totalorder %s1696_s15, 0 }
   0x6   : > { %s2675_s16 = smov (%p36_p0, %s34_s16), 0  ;;  %s2382_s19 = smov [#allocation3]  }
   0x7   : > { %p2427_p3 = pnand %p1698_p1, %p149_p2  ;;  %s165_s20 = sshll.u32 %s2382_s19, 4  ;;  %s166_s20 = int_to_ptr.vmem [resolvable:$true] %s165_s20 }
   0x8   : > { %s2668_s18 = scalar_select %p2431_p4, 1, 0 }
   0x9   : > { %s2667_s17 = scalar_select %p2427_p3, 1, 0 }
   0xa   : > { %p2215_p5 = pneg %p2427_p3  ;;  %s2383_s22 = smov [#allocation5]  }
   0xb   : > { %s181_s23 = sshll.u32 %s2383_s22, 4  ;;  %s2294_s26 = scalar_lea.hbm %s2661_s1, 1024  ;;  %s2443_s23 = int_to_ptr.vmem [resolvable:$true] %s181_s23 }
   0xc   : > { %p2439_p6 = pnand %p2431_p4, %p2215_p5  ;;  %p2295_p7 = scmp.ne.s32.totalorder %s2661_s1, %s2294_s26 }
   0xd   : > { %p2301_p11 = scmp.lt.u32.totalorder %s2294_s26, %s2661_s1 }
   0xe   : > { %p2296_p8 = pneg %p2439_p6 }
  0x10   : > { %p2297_p9 = pnand %p2296_p8, %p2295_p7 }
  0x12   : > { %p2298_p10 = pneg %p2297_p9 }
  0x14   : > { %p2303_p12 = pnand %p2301_p11, %p2298_p10 }
  0x16   : > { %2306 = shalt.err (!%p2303_p12)
}
  0x17   : > { %s2307_s4 = scalar_lea.vmem %s166_s20, 1024  ;;  %p2315_p2 = scmp.lt.s32.totalorder %s166_s20, %s166_s20 }
  0x18   : > { %p2308_p13 = scmp.ne.s32.totalorder %s166_s20, %s2307_s4  ;;  %p2316_p5 = scmp.lt.s32.totalorder %s2307_s4, %s2307_s4 }
  0x1a   : > { %p2310_p0 = pnand %p2308_p13, %p2296_p8  ;;  %p2317_p4 = por %p2316_p5, %p2315_p2 }
  0x1c   : > { %p2311_p1 = pneg %p2310_p0 }
  0x1e   : > { %p2318_p3 = pnand %p2317_p4, %p2311_p1 }
  0x20   : > { %2321 = shalt.err (!%p2318_p3)
}
  0x21   : > { %s2384_s5 = smov 64   ;;  %s2385_s6 = smov 4  }
  0x22   : > { %2218 = dma.hbm_to_vmem [thread:$0]  (!%p2439_p6), %s2661_s1, 1024, %s166_s20, [#allocation4], %s2384_s5, %s2384_s5, %s2385_s6  }
  0x23   : > { %s2322_s11 = scalar_lea.hbm %s2662_s2, 16 }
  0x24   : > { %p2323_p7 = scmp.ne.s32.totalorder %s2662_s2, %s2322_s11  ;;  %p2329_p9 = scmp.lt.u32.totalorder %s2322_s11, %s2662_s2 }
  0x26   : > { %p2325_p3 = pnand %p2323_p7, %p2296_p8 }
  0x28   : > { %p2326_p4 = pneg %p2325_p3 }
  0x2a   : > { %p2331_p10 = pnand %p2329_p9, %p2326_p4 }
  0x2c   : > { %2334 = shalt.err (!%p2331_p10)
}
  0x2d   : > { %s2335_s20 = scalar_lea.vmem %s2443_s23, 16  ;;  %s2342_s25 = scalar_lea.vmem %s2443_s23, 32 }
  0x2e   : > { %p2336_p11 = scmp.ne.s32.totalorder %s2443_s23, %s2335_s20  ;;  %p2343_p0 = scmp.lt.s32.totalorder %s2443_s23, %s2443_s23 }
  0x2f   : > { %p2344_p1 = scmp.lt.s32.totalorder %s2342_s25, %s2335_s20 }
  0x30   : > { %p2338_p12 = pnand %p2336_p11, %p2296_p8 }
  0x31   : > { %p2345_p2 = por %p2344_p1, %p2343_p0 }
  0x32   : > { %p2339_p13 = pneg %p2338_p12 }
  0x34   : > { %p2346_p5 = pnand %p2345_p2, %p2339_p13 }
  0x36   : > { %2349 = shalt.err (!%p2346_p5)
}
  0x37   : > { %2221 = dma.hbm_to_vmem [thread:$0]  (!%p2439_p6), %s2662_s2, 16, %s2443_s23, [#allocation6]  }
  0x38   : > { %p2670_p7 = scmp.ne.s32.totalorder %s2667_s17, 0 }
  0x39   : > { %p2671_p8 = scmp.ne.s32.totalorder (!%p2670_p7), %s2668_s18, 0 }
  0x3a   : > { %206 = sbr.rel (%p2670_p7) target bundleno = 377 (0x179), region = 32 }
  0x41   : > { %2363 = dma.done.wait (%p2671_p8), [#allocation4], 1024  }
  0x42   : > { %2365 = vsyncadd (%p2671_p8), [#allocation4], 4294966272 }
  0x43   : > { %2367 = dma.done.wait (%p2671_p8), [#allocation6], 16  }
  0x44   : > { %2369 = vsyncadd (%p2671_p8), [#allocation6], 4294967280  ;;  %s1705_s21 = sshll.u32 %s2372_s12, 6  ;;  %v2254_v0 = vld [vmem:[#allocation3] sm:$0xff]   ;;  %v2255_v1 = vld [vmem:[#allocation3 + $0x8] sm:$0xff]  }
  0x45   : > { %p241_p3 = scmp.lt.s32.totalorder %s1705_s21, 191  ;;  %2111 = vmatprep.subr.bf16.mxu0 %v2254_v0  ;;  %2191 = vmatprep.subr.bf16.mxu1 %v2254_v0  ;;  %v2256_v2 = vld [vmem:[#allocation3 + $0x10] sm:$0xff]   ;;  %v2257_v3 = vld [vmem:[#allocation3 + $0x18] sm:$0xff]   ;;  %v2258_v6 = vld [vmem:[#allocation3 + $0x20] sm:$0xff]  }
  0x46   : > { %2112 = vmatpush3.bf16.msra.mxu0 %v2254_v0  ;;  %2199 = vmatpush3.bf16.msra.mxu1 %v2254_v0  ;;  %v2259_v7 = vld [vmem:[#allocation3 + $0x28] sm:$0xff]   ;;  %v2260_v8 = vld [vmem:[#allocation3 + $0x30] sm:$0xff]   ;;  %v2261_v9 = vld [vmem:[#allocation3 + $0x38] sm:$0xff]  }
  0x47   : > { %s2677_s21 = smov (!%p241_p3, %s1705_s21), 191  ;;  %2113 = vmatprep.subr.bf16.mxu0 %v2255_v1  ;;  %2192 = vmatprep.subr.bf16.mxu1 %v2255_v1  ;;  %v2546_v41 = vld [vmem:[#allocation5] ss:$0 sm:$0xff] }
  0x48   : > { %s1706_s17 = sshll.u32 %s2677_s21, 2 }
  0x49   : > { %s2512_s12 = scalar_lea.vmem %s2660_s0, %s1706_s17  ;;  %s2559_s30 = scalar_lea.vmem %s2663_s3, %s1706_s17 }
  0x4a   : > { %2114 = vmatpush3.bf16.msra.mxu0 %v2255_v1  ;;  %2200 = vmatpush3.bf16.msra.mxu1 %v2255_v1  ;;  %v2262_v4 = vld [vmem:[%s2512_s12] sm:$0xff]   ;;  %v2264_v10 = vld [vmem:[%s2512_s12 + $0x8] sm:$0xff]   ;;  %v2266_v12 = vld [vmem:[%s2512_s12 + $0x10] sm:$0xff]  }
  0x4b   : > { %2115 = vmatprep.subr.bf16.mxu0 %v2256_v2  ;;  %2193 = vmatprep.subr.bf16.mxu1 %v2256_v2  ;;  %v2263_v5 = vld [vmem:[%s2512_s12 + $0x80] sm:$0xff]   ;;  %v2265_v11 = vld [vmem:[%s2512_s12 + $0x88] sm:$0xff]   ;;  %v2267_v13 = vld [vmem:[%s2512_s12 + $0x90] sm:$0xff]  }
  0x4c   : > { %2127 = vmatprep.mubr.bf16.mxu0 %v2262_v4  ;;  %2159 = vmatprep.mubr.bf16.mxu1 %v2263_v5  ;;  %v2268_v14 = vld [vmem:[%s2512_s12 + $0x18] sm:$0xff]   ;;  %v2270_v16 = vld [vmem:[%s2512_s12 + $0x20] sm:$0xff]   ;;  %v2272_v18 = vld [vmem:[%s2512_s12 + $0x28] sm:$0xff]  }
  0x4d   : > { %v2269_v15 = vld [vmem:[%s2512_s12 + $0x98] sm:$0xff]   ;;  %v2271_v17 = vld [vmem:[%s2512_s12 + $0xa0] sm:$0xff]   ;;  %v2273_v19 = vld [vmem:[%s2512_s12 + $0xa8] sm:$0xff]  }
  0x4e   : > { %2116 = vmatpush3.bf16.msra.mxu0 %v2256_v2  ;;  %2201 = vmatpush3.bf16.msra.mxu1 %v2256_v2  ;;  %v2274_v20 = vld [vmem:[%s2512_s12 + $0x30] sm:$0xff]   ;;  %v2276_v22 = vld [vmem:[%s2512_s12 + $0x38] sm:$0xff]   ;;  %v2278_v24 = vld [vmem:[%s2512_s12 + $0x40] sm:$0xff]  }
  0x4f   : > { %2117 = vmatprep.subr.bf16.mxu0 %v2257_v3  ;;  %2194 = vmatprep.subr.bf16.mxu1 %v2257_v3  ;;  %v2275_v21 = vld [vmem:[%s2512_s12 + $0xb0] sm:$0xff]   ;;  %v2277_v23 = vld [vmem:[%s2512_s12 + $0xb8] sm:$0xff]   ;;  %v2279_v25 = vld [vmem:[%s2512_s12 + $0xc0] sm:$0xff]  }
  0x50   : > { %v2280_v26 = vld [vmem:[%s2512_s12 + $0x48] sm:$0xff]   ;;  %v2282_v28 = vld [vmem:[%s2512_s12 + $0x50] sm:$0xff]   ;;  %v2284_v30 = vld [vmem:[%s2512_s12 + $0x58] sm:$0xff]  }
  0x51   : > { %v2281_v27 = vld [vmem:[%s2512_s12 + $0xc8] sm:$0xff]   ;;  %v2283_v29 = vld [vmem:[%s2512_s12 + $0xd0] sm:$0xff]   ;;  %v2285_v31 = vld [vmem:[%s2512_s12 + $0xd8] sm:$0xff]  }
  0x52   : > { %2118 = vmatpush3.bf16.msra.mxu0 %v2257_v3  ;;  %2202 = vmatpush3.bf16.msra.mxu1 %v2257_v3  ;;  %v2286_v32 = vld [vmem:[%s2512_s12 + $0x60] sm:$0xff]   ;;  %v2288_v34 = vld [vmem:[%s2512_s12 + $0x68] sm:$0xff]   ;;  %v2290_v36 = vld [vmem:[%s2512_s12 + $0x70] sm:$0xff]  }
  0x53   : > { %2119 = vmatprep.subr.bf16.mxu0 %v2258_v6  ;;  %2195 = vmatprep.subr.bf16.mxu1 %v2258_v6  ;;  %v2287_v33 = vld [vmem:[%s2512_s12 + $0xe0] sm:$0xff]   ;;  %v2289_v35 = vld [vmem:[%s2512_s12 + $0xe8] sm:$0xff]   ;;  %v2291_v37 = vld [vmem:[%s2512_s12 + $0xf0] sm:$0xff]  }
  0x54   : > { %v2292_v38 = vld [vmem:[%s2512_s12 + $0x78] sm:$0xff]  }
  0x55   : > { %v2293_v39 = vld [vmem:[%s2512_s12 + $0xf8] sm:$0xff]  }
  0x56   : > { %2120 = vmatpush3.bf16.msra.mxu0 %v2258_v6  ;;  %2203 = vmatpush3.bf16.msra.mxu1 %v2258_v6 }
  0x57   : > { %2121 = vmatprep.subr.bf16.mxu0 %v2259_v7  ;;  %2196 = vmatprep.subr.bf16.mxu1 %v2259_v7 }
  0x5a   : > { %2122 = vmatpush3.bf16.msra.mxu0 %v2259_v7  ;;  %2204 = vmatpush3.bf16.msra.mxu1 %v2259_v7 }
  0x5b   : > { %2123 = vmatprep.subr.bf16.mxu0 %v2260_v8  ;;  %2197 = vmatprep.subr.bf16.mxu1 %v2260_v8 }
  0x5e   : > { %2124 = vmatpush3.bf16.msra.mxu0 %v2260_v8  ;;  %2205 = vmatpush3.bf16.msra.mxu1 %v2260_v8 }
  0x5f   : > { %2125 = vmatprep.subr.bf16.mxu0 %v2261_v9  ;;  %2198 = vmatprep.subr.bf16.mxu1 %v2261_v9 }
  0x62   : > { %2126 = vmatpush3.bf16.msra.mxu0 %v2261_v9  ;;  %2206 = vmatpush3.bf16.msra.mxu1 %v2261_v9 }
  0x65   : > { %2128 = vmatmul.mubr.bf16.vlgmr.msra.gmra.mrb[0].mxu0 %v2264_v10  ;;  %2160 = vmatmul.mubr.bf16.vlgmr.msra.gmra.mrb[0].mxu1 %v2265_v11 }
  0x66   : > { %2131 = vmatprep.mubr.bf16.mxu0 %v2266_v12  ;;  %2163 = vmatprep.mubr.bf16.mxu1 %v2267_v13 }
  0x6d   : > { %2132 = vmatmul.mubr.bf16.gmra.mrb[4].mxu0 %v2268_v14  ;;  %2164 = vmatmul.mubr.bf16.gmra.mrb[4].mxu1 %v2269_v15 }
  0x6e   : > { %2135 = vmatprep.mubr.bf16.mxu0 %v2270_v16  ;;  %2167 = vmatprep.mubr.bf16.mxu1 %v2271_v17 }
  0x75   : > { %2136 = vmatmul.mubr.bf16.gmra.mrb[8].mxu0 %v2272_v18  ;;  %2168 = vmatmul.mubr.bf16.gmra.mrb[8].mxu1 %v2273_v19 }
  0x76   : > { %2139 = vmatprep.mubr.bf16.mxu0 %v2274_v20  ;;  %2171 = vmatprep.mubr.bf16.mxu1 %v2275_v21 }
  0x7d   : > { %2140 = vmatmul.mubr.bf16.gmra.mrb[12].mxu0 %v2276_v22  ;;  %2172 = vmatmul.mubr.bf16.gmra.mrb[12].mxu1 %v2277_v23 }
  0x7e   : > { %2143 = vmatprep.mubr.bf16.mxu0 %v2278_v24  ;;  %2175 = vmatprep.mubr.bf16.mxu1 %v2279_v25 }
  0x85   : > { %2144 = vmatmul.mubr.bf16.gmra.mrb[16].mxu0 %v2280_v26  ;;  %2176 = vmatmul.mubr.bf16.gmra.mrb[16].mxu1 %v2281_v27 }
  0x86   : > { %2147 = vmatprep.mubr.bf16.mxu0 %v2282_v28  ;;  %2179 = vmatprep.mubr.bf16.mxu1 %v2283_v29 }
  0x8d   : > { %2148 = vmatmul.mubr.bf16.gmra.mrb[20].mxu0 %v2284_v30  ;;  %2180 = vmatmul.mubr.bf16.gmra.mrb[20].mxu1 %v2285_v31 }
  0x8e   : > { %2151 = vmatprep.mubr.bf16.mxu0 %v2286_v32  ;;  %2183 = vmatprep.mubr.bf16.mxu1 %v2287_v33 }
  0x95   : > { %2152 = vmatmul.mubr.bf16.gmra.mrb[24].mxu0 %v2288_v34  ;;  %2184 = vmatmul.mubr.bf16.gmra.mrb[24].mxu1 %v2289_v35 }
  0x96   : > { %2155 = vmatprep.mubr.bf16.mxu0 %v2290_v36  ;;  %2187 = vmatprep.mubr.bf16.mxu1 %v2291_v37 }
  0x9d   : > { %2156 = vmatmul.mubr.bf16.gmra.mrb[28].mxu0 %v2292_v38  ;;  %2188 = vmatmul.mubr.bf16.gmra.mrb[28].mxu1 %v2293_v39 }
 0x138   : > { %v2129_v40 = vpop.f32.mrb[0].mxu0  ;;  %v2161_v42 = vpop.f32.mrb[0].mxu1 }
 0x139   : > { %v746_v43 = vpop.f32.mrb[1].mxu0  ;;  %v874_v44 = vpop.f32.mrb[1].mxu1  ;;  %v1205_v47 = vadd.f32 %v2129_v40, %v2546_v41  ;;  %v1237_v48 = vadd.f32 %v2161_v42, %v2546_v41 }
 0x13a   : > { %v2130_v45 = vpop.f32.mrb[2].mxu0  ;;  %v2162_v46 = vpop.f32.mrb[2].mxu1  ;;  %v1203_v53 = vadd.f32 %v2546_v41, %v746_v43  ;;  %v1235_v54 = vadd.f32 %v2546_v41, %v874_v44 }
 0x13b   : > { %v1206_v49 = vadd.f32 %v2130_v45, %v2546_v41  ;;  %v1238_v50 = vadd.f32 %v2162_v46, %v2546_v41  ;;  %v749_v51 = vpop.f32.mrb[3].mxu0  ;;  %v877_v52 = vpop.f32.mrb[3].mxu1 }
 0x13c   : > { %v1204_v55 = vadd.f32 %v2546_v41, %v749_v51  ;;  %v1236_v56 = vadd.f32 %v2546_v41, %v877_v52 }
 0x13d   : > { %v1888_v57 = vpack.c.bf16 %v1206_v49, %v1205_v47  ;;  %v1968_v58 = vpack.c.bf16 %v1238_v50, %v1237_v48 }
 0x13e   : > { %v1883_v59 = vpack.c.bf16 %v1204_v55, %v1203_v53  ;;  %v1963_v60 = vpack.c.bf16 %v1236_v56, %v1235_v54 }
 0x13f   : > { %2040 = vst [vmem:[%s2559_s30 + $0x8] sm:$0xff] %v1888_v57   ;;  %2056 = vst [vmem:[%s2559_s30 + $0x88] sm:$0xff] %v1968_v58  }
 0x140   : > { %1884 = vst [vmem:[%s2559_s30] sm:$0xff] %v1883_v59   ;;  %2055 = vst [vmem:[%s2559_s30 + $0x80] sm:$0xff] %v1963_v60   ;;  %v2133_v61 = vpop.f32.mrb[4].mxu0  ;;  %v2165_v62 = vpop.f32.mrb[4].mxu1 }
 0x141   : > { %v762_v63 = vpop.f32.mrb[5].mxu0  ;;  %v890_v0 = vpop.f32.mrb[5].mxu1  ;;  %v1209_v3 = vadd.f32 %v2133_v61, %v2546_v41  ;;  %v1241_v4 = vadd.f32 %v2165_v62, %v2546_v41 }
 0x142   : > { %v2134_v1 = vpop.f32.mrb[6].mxu0  ;;  %v2166_v2 = vpop.f32.mrb[6].mxu1  ;;  %v1207_v9 = vadd.f32 %v2546_v41, %v762_v63  ;;  %v1239_v10 = vadd.f32 %v2546_v41, %v890_v0 }
 0x143   : > { %v1210_v5 = vadd.f32 %v2134_v1, %v2546_v41  ;;  %v1242_v6 = vadd.f32 %v2166_v2, %v2546_v41  ;;  %v765_v7 = vpop.f32.mrb[7].mxu0  ;;  %v893_v8 = vpop.f32.mrb[7].mxu1 }
 0x144   : > { %v1208_v11 = vadd.f32 %v2546_v41, %v765_v7  ;;  %v1240_v12 = vadd.f32 %v2546_v41, %v893_v8 }
 0x145   : > { %v1898_v13 = vpack.c.bf16 %v1210_v5, %v1209_v3  ;;  %v1978_v14 = vpack.c.bf16 %v1242_v6, %v1241_v4 }
 0x146   : > { %v1893_v15 = vpack.c.bf16 %v1208_v11, %v1207_v9  ;;  %v1973_v16 = vpack.c.bf16 %v1240_v12, %v1239_v10 }
 0x147   : > { %2042 = vst [vmem:[%s2559_s30 + $0x18] sm:$0xff] %v1898_v13   ;;  %2058 = vst [vmem:[%s2559_s30 + $0x98] sm:$0xff] %v1978_v14  }
 0x148   : > { %2041 = vst [vmem:[%s2559_s30 + $0x10] sm:$0xff] %v1893_v15   ;;  %2057 = vst [vmem:[%s2559_s30 + $0x90] sm:$0xff] %v1973_v16   ;;  %v2137_v17 = vpop.f32.mrb[8].mxu0  ;;  %v2169_v18 = vpop.f32.mrb[8].mxu1 }
 0x149   : > { %v778_v19 = vpop.f32.mrb[9].mxu0  ;;  %v906_v20 = vpop.f32.mrb[9].mxu1  ;;  %v1213_v23 = vadd.f32 %v2137_v17, %v2546_v41  ;;  %v1245_v24 = vadd.f32 %v2169_v18, %v2546_v41 }
 0x14a   : > { %v2138_v21 = vpop.f32.mrb[10].mxu0  ;;  %v2170_v22 = vpop.f32.mrb[10].mxu1  ;;  %v1211_v29 = vadd.f32 %v2546_v41, %v778_v19  ;;  %v1243_v30 = vadd.f32 %v2546_v41, %v906_v20 }
 0x14b   : > { %v1214_v25 = vadd.f32 %v2138_v21, %v2546_v41  ;;  %v1246_v26 = vadd.f32 %v2170_v22, %v2546_v41  ;;  %v781_v27 = vpop.f32.mrb[11].mxu0  ;;  %v909_v28 = vpop.f32.mrb[11].mxu1 }
 0x14c   : > { %v1212_v31 = vadd.f32 %v2546_v41, %v781_v27  ;;  %v1244_v32 = vadd.f32 %v2546_v41, %v909_v28 }
 0x14d   : > { %v1908_v33 = vpack.c.bf16 %v1214_v25, %v1213_v23  ;;  %v1988_v34 = vpack.c.bf16 %v1246_v26, %v1245_v24 }
 0x14e   : > { %v1903_v35 = vpack.c.bf16 %v1212_v31, %v1211_v29  ;;  %v1983_v36 = vpack.c.bf16 %v1244_v32, %v1243_v30 }
 0x14f   : > { %2044 = vst [vmem:[%s2559_s30 + $0x28] sm:$0xff] %v1908_v33   ;;  %2060 = vst [vmem:[%s2559_s30 + $0xa8] sm:$0xff] %v1988_v34  }
 0x150   : > { %2043 = vst [vmem:[%s2559_s30 + $0x20] sm:$0xff] %v1903_v35   ;;  %2059 = vst [vmem:[%s2559_s30 + $0xa0] sm:$0xff] %v1983_v36   ;;  %v2141_v37 = vpop.f32.mrb[12].mxu0  ;;  %v2173_v38 = vpop.f32.mrb[12].mxu1 }
 0x151   : > { %v794_v39 = vpop.f32.mrb[13].mxu0  ;;  %v922_v40 = vpop.f32.mrb[13].mxu1  ;;  %v1217_v44 = vadd.f32 %v2141_v37, %v2546_v41  ;;  %v1249_v45 = vadd.f32 %v2173_v38, %v2546_v41 }
 0x152   : > { %v2142_v42 = vpop.f32.mrb[14].mxu0  ;;  %v2174_v43 = vpop.f32.mrb[14].mxu1  ;;  %v1215_v50 = vadd.f32 %v2546_v41, %v794_v39  ;;  %v1247_v51 = vadd.f32 %v2546_v41, %v922_v40 }
 0x153   : > { %v1218_v46 = vadd.f32 %v2142_v42, %v2546_v41  ;;  %v1250_v47 = vadd.f32 %v2174_v43, %v2546_v41  ;;  %v797_v48 = vpop.f32.mrb[15].mxu0  ;;  %v925_v49 = vpop.f32.mrb[15].mxu1 }
 0x154   : > { %v1216_v52 = vadd.f32 %v2546_v41, %v797_v48  ;;  %v1248_v53 = vadd.f32 %v2546_v41, %v925_v49 }
 0x155   : > { %v1918_v54 = vpack.c.bf16 %v1218_v46, %v1217_v44  ;;  %v1998_v55 = vpack.c.bf16 %v1250_v47, %v1249_v45 }
 0x156   : > { %v1913_v56 = vpack.c.bf16 %v1216_v52, %v1215_v50  ;;  %v1993_v57 = vpack.c.bf16 %v1248_v53, %v1247_v51 }
 0x157   : > { %2046 = vst [vmem:[%s2559_s30 + $0x38] sm:$0xff] %v1918_v54   ;;  %2062 = vst [vmem:[%s2559_s30 + $0xb8] sm:$0xff] %v1998_v55  }
 0x158   : > { %2045 = vst [vmem:[%s2559_s30 + $0x30] sm:$0xff] %v1913_v56   ;;  %2061 = vst [vmem:[%s2559_s30 + $0xb0] sm:$0xff] %v1993_v57   ;;  %v2145_v58 = vpop.f32.mrb[16].mxu0  ;;  %v2177_v59 = vpop.f32.mrb[16].mxu1 }
 0x159   : > { %v810_v60 = vpop.f32.mrb[17].mxu0  ;;  %v938_v61 = vpop.f32.mrb[17].mxu1  ;;  %v1221_v0 = vadd.f32 %v2145_v58, %v2546_v41  ;;  %v1253_v1 = vadd.f32 %v2177_v59, %v2546_v41 }
 0x15a   : > { %v2146_v62 = vpop.f32.mrb[18].mxu0  ;;  %v2178_v63 = vpop.f32.mrb[18].mxu1  ;;  %v1219_v6 = vadd.f32 %v2546_v41, %v810_v60  ;;  %v1251_v7 = vadd.f32 %v2546_v41, %v938_v61 }
 0x15b   : > { %v1222_v2 = vadd.f32 %v2146_v62, %v2546_v41  ;;  %v1254_v3 = vadd.f32 %v2178_v63, %v2546_v41  ;;  %v813_v4 = vpop.f32.mrb[19].mxu0  ;;  %v941_v5 = vpop.f32.mrb[19].mxu1 }
 0x15c   : > { %v1220_v8 = vadd.f32 %v2546_v41, %v813_v4  ;;  %v1252_v9 = vadd.f32 %v2546_v41, %v941_v5 }
 0x15d   : > { %v1928_v10 = vpack.c.bf16 %v1222_v2, %v1221_v0  ;;  %v2008_v11 = vpack.c.bf16 %v1254_v3, %v1253_v1 }
 0x15e   : > { %v1923_v12 = vpack.c.bf16 %v1220_v8, %v1219_v6  ;;  %v2003_v13 = vpack.c.bf16 %v1252_v9, %v1251_v7 }
 0x15f   : > { %2048 = vst [vmem:[%s2559_s30 + $0x48] sm:$0xff] %v1928_v10   ;;  %2064 = vst [vmem:[%s2559_s30 + $0xc8] sm:$0xff] %v2008_v11  }
 0x160   : > { %2047 = vst [vmem:[%s2559_s30 + $0x40] sm:$0xff] %v1923_v12   ;;  %2063 = vst [vmem:[%s2559_s30 + $0xc0] sm:$0xff] %v2003_v13   ;;  %v2149_v14 = vpop.f32.mrb[20].mxu0  ;;  %v2181_v15 = vpop.f32.mrb[20].mxu1 }
 0x161   : > { %v826_v16 = vpop.f32.mrb[21].mxu0  ;;  %v954_v17 = vpop.f32.mrb[21].mxu1  ;;  %v1225_v20 = vadd.f32 %v2149_v14, %v2546_v41  ;;  %v1257_v21 = vadd.f32 %v2181_v15, %v2546_v41 }
 0x162   : > { %v2150_v18 = vpop.f32.mrb[22].mxu0  ;;  %v2182_v19 = vpop.f32.mrb[22].mxu1  ;;  %v1223_v26 = vadd.f32 %v2546_v41, %v826_v16  ;;  %v1255_v27 = vadd.f32 %v2546_v41, %v954_v17 }
 0x163   : > { %v1226_v22 = vadd.f32 %v2150_v18, %v2546_v41  ;;  %v1258_v23 = vadd.f32 %v2182_v19, %v2546_v41  ;;  %v829_v24 = vpop.f32.mrb[23].mxu0  ;;  %v957_v25 = vpop.f32.mrb[23].mxu1 }
 0x164   : > { %v1224_v28 = vadd.f32 %v2546_v41, %v829_v24  ;;  %v1256_v29 = vadd.f32 %v2546_v41, %v957_v25 }
 0x165   : > { %v1938_v30 = vpack.c.bf16 %v1226_v22, %v1225_v20  ;;  %v2018_v31 = vpack.c.bf16 %v1258_v23, %v1257_v21 }
 0x166   : > { %v1933_v32 = vpack.c.bf16 %v1224_v28, %v1223_v26  ;;  %v2013_v33 = vpack.c.bf16 %v1256_v29, %v1255_v27 }
 0x167   : > { %2050 = vst [vmem:[%s2559_s30 + $0x58] sm:$0xff] %v1938_v30   ;;  %2066 = vst [vmem:[%s2559_s30 + $0xd8] sm:$0xff] %v2018_v31  }
 0x168   : > { %2049 = vst [vmem:[%s2559_s30 + $0x50] sm:$0xff] %v1933_v32   ;;  %2065 = vst [vmem:[%s2559_s30 + $0xd0] sm:$0xff] %v2013_v33   ;;  %v2153_v34 = vpop.f32.mrb[24].mxu0  ;;  %v2185_v35 = vpop.f32.mrb[24].mxu1 }
 0x169   : > { %v842_v36 = vpop.f32.mrb[25].mxu0  ;;  %v970_v37 = vpop.f32.mrb[25].mxu1  ;;  %v1229_v40 = vadd.f32 %v2153_v34, %v2546_v41  ;;  %v1261_v42 = vadd.f32 %v2185_v35, %v2546_v41 }
 0x16a   : > { %v2154_v38 = vpop.f32.mrb[26].mxu0  ;;  %v2186_v39 = vpop.f32.mrb[26].mxu1  ;;  %v1227_v47 = vadd.f32 %v2546_v41, %v842_v36  ;;  %v1259_v48 = vadd.f32 %v2546_v41, %v970_v37 }
 0x16b   : > { %v1230_v43 = vadd.f32 %v2154_v38, %v2546_v41  ;;  %v1262_v44 = vadd.f32 %v2186_v39, %v2546_v41  ;;  %v845_v45 = vpop.f32.mrb[27].mxu0  ;;  %v973_v46 = vpop.f32.mrb[27].mxu1 }
 0x16c   : > { %v1228_v49 = vadd.f32 %v2546_v41, %v845_v45  ;;  %v1260_v50 = vadd.f32 %v2546_v41, %v973_v46 }
 0x16d   : > { %v1948_v51 = vpack.c.bf16 %v1230_v43, %v1229_v40  ;;  %v2028_v52 = vpack.c.bf16 %v1262_v44, %v1261_v42 }
 0x16e   : > { %v1943_v53 = vpack.c.bf16 %v1228_v49, %v1227_v47  ;;  %v2023_v54 = vpack.c.bf16 %v1260_v50, %v1259_v48 }
 0x16f   : > { %2052 = vst [vmem:[%s2559_s30 + $0x68] sm:$0xff] %v1948_v51   ;;  %2068 = vst [vmem:[%s2559_s30 + $0xe8] sm:$0xff] %v2028_v52  }
 0x170   : > { %2051 = vst [vmem:[%s2559_s30 + $0x60] sm:$0xff] %v1943_v53   ;;  %2067 = vst [vmem:[%s2559_s30 + $0xe0] sm:$0xff] %v2023_v54   ;;  %v2157_v55 = vpop.f32.mrb[28].mxu0  ;;  %v2189_v56 = vpop.f32.mrb[28].mxu1 }
 0x171   : > { %v858_v57 = vpop.f32.mrb[29].mxu0  ;;  %v986_v58 = vpop.f32.mrb[29].mxu1  ;;  %v1233_v61 = vadd.f32 %v2157_v55, %v2546_v41  ;;  %v1265_v62 = vadd.f32 %v2189_v56, %v2546_v41 }
 0x172   : > { %v2158_v59 = vpop.f32.mrb[30].mxu0  ;;  %v2190_v60 = vpop.f32.mrb[30].mxu1  ;;  %v1231_v3 = vadd.f32 %v2546_v41, %v858_v57  ;;  %v1263_v4 = vadd.f32 %v2546_v41, %v986_v58 }
 0x173   : > { %v1234_v63 = vadd.f32 %v2158_v59, %v2546_v41  ;;  %v1266_v0 = vadd.f32 %v2190_v60, %v2546_v41  ;;  %v861_v1 = vpop.f32.mrb[31].mxu0  ;;  %v989_v2 = vpop.f32.mrb[31].mxu1 }
 0x174   : > { %v1232_v5 = vadd.f32 %v2546_v41, %v861_v1  ;;  %v1264_v6 = vadd.f32 %v2546_v41, %v989_v2 }
 0x175   : > { %v1958_v7 = vpack.c.bf16 %v1234_v63, %v1233_v61  ;;  %v2038_v8 = vpack.c.bf16 %v1266_v0, %v1265_v62 }
 0x176   : > { %v1953_v9 = vpack.c.bf16 %v1232_v5, %v1231_v3  ;;  %v2033_v10 = vpack.c.bf16 %v1264_v6, %v1263_v4 }
 0x177   : > { %2054 = vst [vmem:[%s2559_s30 + $0x78] sm:$0xff] %v1958_v7   ;;  %2070 = vst [vmem:[%s2559_s30 + $0xf8] sm:$0xff] %v2038_v8  }
 0x178   : > { %2053 = vst [vmem:[%s2559_s30 + $0x70] sm:$0xff] %v1953_v9   ;;  %2069 = vst [vmem:[%s2559_s30 + $0xf0] sm:$0xff] %v2033_v10  }
 0x179 PF: > { %s15_s14 = sadd.s32 1, %s2380_s14   ;;  %s2672_s12 = smov %s2376_s13 }
 0x17a   : > { %p12_p6 = scmp.ge.s32.totalorder %s15_s14, 5   ;;  %s2673_s13 = smov %s2675_s16 }
 0x17c   :  { %14 = sbr.rel (!%p12_p6) target bundleno = 3 (0x3), region = 81 }
 0x183   :  { %1615 = vsyncpa [#allocation4], 1 }
 0x184   :  { %1617 = vsyncpa [#allocation4 + $0x1], 1 }
 0x185   :  { %1618 = vsyncpa [#allocation6], 1 }

// kernel: proto_cnn_forward.11
= control target key start
LH: loop header
LB: loop body
LE: loop exit
PB: predicated region body
PF: predicated region fallthrough
CT: control target
= control target key end

     0   :  { %8 = vsyncpa [#allocation5], 0  ;;  %s2130_s0 = inlined_call_operand.vmem [shape: bf16[248,640], index: 0, kind: input, shape index: {}]   ;;  %s2131_s1 = inlined_call_operand.hbm [shape: bf16[640,128], index: 1, kind: input, shape index: {}]   ;;  %s2132_s2 = inlined_call_operand.hbm [shape: f32[1,128], index: 2, kind: input, shape index: {}]   ;;  %s2133_s3 = inlined_call_operand.vmem [shape: bf16[248,128], index: 3, kind: output, shape index: {}]  }
   0x1   :  { %10 = vsyncpa [#allocation5 + $0x1], 0 }
   0x2   :  { %11 = vsyncpa [#allocation7], 0  ;;  %s1797_s12 = smov 0   ;;  %s1799_s13 = smov 0  }
   0x3   :  { %s1801_s14 = smov 0   ;;  %s1803_s15 = smov 0  }
   0x4   :  { %s1805_s16 = smov 0   ;;  %s1807_s17 = smov 0  }
   0x5 LB: > { %s1288_s18 = sadd.s32 4294967295, %s1770_s17   ;;  %s29_s19 = sadd.s32 1, %s1766_s16  ;;  %s1770_s17 = sphi %s1807_s17, %s17_s17   ;;  %s1766_s16 = sphi %s1805_s16, %s2153_s16   ;;  %s1762_s15 = sphi %s1803_s15, %s2152_s15   ;;  %s1758_s14 = sphi %s1801_s14, %s2151_s14   ;;  %s1754_s13 = sphi %s1799_s13, %s2150_s13   ;;  %s1750_s12 = sphi %s1797_s12, %s2149_s12  }
   0x6   : > { %p30_p0 = scmp.ge.s32.totalorder %s29_s19, 5  ;;  %s45_s20 = sadd.s32 1, %s1758_s14 }
   0x7   : > { %p52_p1 = scmp.ne.s32.totalorder %s1758_s14, %s1754_s13  ;;  %p53_p2 = scmp.eq.s32.totalorder %s1770_s17, 0 }
   0x8   : > { %s2155_s19 = smov (%p30_p0, %s29_s19), 0  ;;  %p86_p4 = scmp.ne.s32.totalorder %s1754_s13, %s1750_s12 }
   0x9   : > { %p1833_p3 = por %p53_p2, %p52_p1  ;;  %s41_s22 = ssub.s32 %s1766_s16, %s2155_s19 }
   0xa   : > { %p1840_p5 = scmp.eq.s32.totalorder %s1288_s18, 0  ;;  %p43_p6 = scmp.eq.s32.totalorder %s41_s22, 0 }
   0xb   : > { %s2139_s21 = scalar_select %p1833_p3, 1, 0 }
   0xc   : > { %s2140_s23 = scalar_select %p1840_p5, 1, 0 }
   0xd   : > { %p1289_p7 = scmp.ge.s32.totalorder %s1770_s17, 1  ;;  %p1847_p8 = por %p1840_p5, %p86_p4 }
   0xe   : > { %p151_p9 = scmp.lt.s32.totalorder %s1770_s17, 6  ;;  %s1772_s27 = smov [#allocation6]  }
   0xf   : > { %s2141_s24 = scalar_select %p1847_p8, 1, 0 }
  0x10   : > { %s1853_s25 = scalar_select %p43_p6, %s1758_s14, %s45_s20  }
  0x11   : > { %p1855_p10 = pnand %p1289_p7, %p151_p9  ;;  %s166_s28 = sshll.u32 %s1772_s27, 4  ;;  %s167_s28 = int_to_ptr.vmem [resolvable:$true] %s166_s28 }
  0x12   : > { %s1660_s5 = scalar_lea.hbm %s2132_s2, 16 }
  0x13   : > { %s2142_s26 = scalar_select %p1855_p10, 1, 0 }
  0x14   : > { %p1578_p11 = pneg %p1855_p10  ;;  %p1661_p13 = scmp.ne.s32.totalorder %s2132_s2, %s1660_s5 }
  0x15   : > { %p1667_p4 = scmp.lt.u32.totalorder %s1660_s5, %s2132_s2 }
  0x16   : > { %p1863_p12 = pnand %p1578_p11, %p1840_p5 }
  0x18   : > { %p1662_p0 = pneg %p1863_p12 }
  0x1a   : > { %p1663_p1 = pnand %p1662_p0, %p1661_p13 }
  0x1c   : > { %p1664_p2 = pneg %p1663_p1 }
  0x1e   : > { %p1669_p6 = pnand %p1667_p4, %p1664_p2 }
  0x20   : > { %1672 = shalt.err (!%p1669_p6)
}
  0x21   : > { %s1673_s10 = scalar_lea.vmem %s167_s28, 16  ;;  %s1680_s11 = scalar_lea.vmem %s167_s28, 32 }
  0x22   : > { %p1674_p7 = scmp.ne.s32.totalorder %s167_s28, %s1673_s10  ;;  %p1681_p5 = scmp.lt.s32.totalorder %s167_s28, %s167_s28 }
  0x23   : > { %p1682_p8 = scmp.lt.s32.totalorder %s1680_s11, %s1673_s10 }
  0x24   : > { %p1676_p9 = pnand %p1674_p7, %p1662_p0 }
  0x25   : > { %p1683_p10 = por %p1682_p8, %p1681_p5 }
  0x26   : > { %p1677_p11 = pneg %p1676_p9 }
  0x28   : > { %p1684_p3 = pnand %p1683_p10, %p1677_p11 }
  0x2a   : > { %1687 = shalt.err (!%p1684_p3)
}
  0x2b   : > { %1581 = dma.hbm_to_vmem [thread:$0]  (!%p1863_p12), %s2132_s2, 16, %s167_s28, [#allocation7]  }
  0x2c   : > { %p1291_p13 = scmp.ge.s32.totalorder %s1770_s17, 5 }
  0x2d   : > { %p2144_p1 = scmp.ne.s32.totalorder (!%p1291_p13), %s2139_s21, 0 }
  0x2e   : > { %173 = sbr.rel (%p1291_p13) target bundleno = 105 (0x69), region = 20 }
  0x35   : > { %176 = sbr.rel (!%p2144_p1) target bundleno = 78 (0x4e), region = 24  ;;  %s178_s20 = sand.u32 (%p2144_p1), 1, %s1758_s14  }
  0x36   : > { %s1292_s22 = sshll.u32 (%p2144_p1), %s1766_s16, 2  ;;  %s1570_s27 = smul.u32 (%p2144_p1), 124, %s178_s20 }
  0x37   : > { %s1891_s5 = scalar_lea.vmem (%p2144_p1), %s2130_s0, %s1292_s22 }
  0x38   : > { %v201_v0 = vld [vmem:[%s1891_s5] sm:$0xf] (%p2144_p1)  ;;  %v203_v1 = vld [vmem:[%s1891_s5 + $0x14] sm:$0xf] (%p2144_p1)  ;;  %v205_v2 = vld [vmem:[%s1891_s5 + $0x28] sm:$0xf] (%p2144_p1) }
  0x39   : > { %v207_v3 = vld [vmem:[%s1891_s5 + $0x3c] sm:$0xf] (%p2144_p1)  ;;  %v209_v4 = vld [vmem:[%s1891_s5 + $0x50] sm:$0xf] (%p2144_p1)  ;;  %s1898_s28 = scalar_lea.vmem (%p2144_p1), [#allocation3], %s1570_s27 }
  0x3a   : > { %202 = vst [vmem:[%s1898_s28] sm:$0xf] (%p2144_p1), %v201_v0  ;;  %204 = vst [vmem:[%s1898_s28 + $0x4] sm:$0xf] (%p2144_p1), %v203_v1  ;;  %v211_v5 = vld [vmem:[%s1891_s5 + $0x64] sm:$0xf] (%p2144_p1) }
  0x3b   : > { %206 = vst [vmem:[%s1898_s28 + $0x8] sm:$0xf] (%p2144_p1), %v205_v2  ;;  %208 = vst [vmem:[%s1898_s28 + $0xc] sm:$0xf] (%p2144_p1), %v207_v3  ;;  %v213_v6 = vld [vmem:[%s1891_s5 + $0x78] sm:$0xf] (%p2144_p1) }
  0x3c   : > { %210 = vst [vmem:[%s1898_s28 + $0x10] sm:$0xf] %v209_v4  ;;  %v215_v7 = vld [vmem:[%s1891_s5 + $0x8c] sm:$0xf]  ;;  %212 = vst [vmem:[%s1898_s28 + $0x14] sm:$0xf] %v211_v5 }
  0x3d   : > { %214 = vst [vmem:[%s1898_s28 + $0x18] sm:$0xf] %v213_v6  ;;  %216 = vst [vmem:[%s1898_s28 + $0x1c] sm:$0xf] %v215_v7  ;;  %v217_v8 = vld [vmem:[%s1891_s5 + $0xa0] sm:$0xf] }
  0x3e   : > { %v219_v9 = vld [vmem:[%s1891_s5 + $0xb4] sm:$0xf]  ;;  %v221_v10 = vld [vmem:[%s1891_s5 + $0xc8] sm:$0xf]  ;;  %218 = vst [vmem:[%s1898_s28 + $0x20] sm:$0xf] %v217_v8 }
  0x3f   : > { %220 = vst [vmem:[%s1898_s28 + $0x24] sm:$0xf] %v219_v9  ;;  %222 = vst [vmem:[%s1898_s28 + $0x28] sm:$0xf] %v221_v10  ;;  %v223_v11 = vld [vmem:[%s1891_s5 + $0xdc] sm:$0xf] }
  0x40   : > { %v225_v12 = vld [vmem:[%s1891_s5 + $0xf0] sm:$0xf]  ;;  %v227_v13 = vld [vmem:[%s1891_s5 + $0x104] sm:$0xf]  ;;  %224 = vst [vmem:[%s1898_s28 + $0x2c] sm:$0xf] %v223_v11 }
  0x41   : > { %226 = vst [vmem:[%s1898_s28 + $0x30] sm:$0xf] %v225_v12  ;;  %228 = vst [vmem:[%s1898_s28 + $0x34] sm:$0xf] %v227_v13  ;;  %v229_v14 = vld [vmem:[%s1891_s5 + $0x118] sm:$0xf] }
  0x42   : > { %v231_v15 = vld [vmem:[%s1891_s5 + $0x12c] sm:$0xf]  ;;  %v233_v16 = vld [vmem:[%s1891_s5 + $0x140] sm:$0xf]  ;;  %230 = vst [vmem:[%s1898_s28 + $0x38] sm:$0xf] %v229_v14 }
  0x43   : > { %232 = vst [vmem:[%s1898_s28 + $0x3c] sm:$0xf] %v231_v15  ;;  %234 = vst [vmem:[%s1898_s28 + $0x40] sm:$0xf] %v233_v16  ;;  %v235_v17 = vld [vmem:[%s1891_s5 + $0x154] sm:$0xf] }
  0x44   : > { %v237_v18 = vld [vmem:[%s1891_s5 + $0x168] sm:$0xf]  ;;  %v239_v19 = vld [vmem:[%s1891_s5 + $0x17c] sm:$0xf]  ;;  %236 = vst [vmem:[%s1898_s28 + $0x44] sm:$0xf] %v235_v17 }
  0x45   : > { %238 = vst [vmem:[%s1898_s28 + $0x48] sm:$0xf] %v237_v18  ;;  %240 = vst [vmem:[%s1898_s28 + $0x4c] sm:$0xf] %v239_v19  ;;  %v241_v20 = vld [vmem:[%s1891_s5 + $0x190] sm:$0xf] }
  0x46   : > { %v243_v21 = vld [vmem:[%s1891_s5 + $0x1a4] sm:$0xf]  ;;  %v245_v22 = vld [vmem:[%s1891_s5 + $0x1b8] sm:$0xf]  ;;  %242 = vst [vmem:[%s1898_s28 + $0x50] sm:$0xf] %v241_v20 }
  0x47   : > { %244 = vst [vmem:[%s1898_s28 + $0x54] sm:$0xf] %v243_v21  ;;  %246 = vst [vmem:[%s1898_s28 + $0x58] sm:$0xf] %v245_v22  ;;  %v247_v23 = vld [vmem:[%s1891_s5 + $0x1cc] sm:$0xf] }
  0x48   : > { %v249_v24 = vld [vmem:[%s1891_s5 + $0x1e0] sm:$0xf]  ;;  %v251_v25 = vld [vmem:[%s1891_s5 + $0x1f4] sm:$0xf]  ;;  %248 = vst [vmem:[%s1898_s28 + $0x5c] sm:$0xf] %v247_v23 }
  0x49   : > { %250 = vst [vmem:[%s1898_s28 + $0x60] sm:$0xf] %v249_v24  ;;  %252 = vst [vmem:[%s1898_s28 + $0x64] sm:$0xf] %v251_v25  ;;  %v253_v26 = vld [vmem:[%s1891_s5 + $0x208] sm:$0xf] }
  0x4a   : > { %v255_v27 = vld [vmem:[%s1891_s5 + $0x21c] sm:$0xf]  ;;  %v257_v28 = vld [vmem:[%s1891_s5 + $0x230] sm:$0xf]  ;;  %254 = vst [vmem:[%s1898_s28 + $0x68] sm:$0xf] %v253_v26 }
  0x4b   : > { %256 = vst [vmem:[%s1898_s28 + $0x6c] sm:$0xf] %v255_v27  ;;  %258 = vst [vmem:[%s1898_s28 + $0x70] sm:$0xf] %v257_v28  ;;  %v259_v29 = vld [vmem:[%s1891_s5 + $0x244] sm:$0xf] }
  0x4c   : > { %v261_v30 = vld [vmem:[%s1891_s5 + $0x258] sm:$0xf]  ;;  %260 = vst [vmem:[%s1898_s28 + $0x74] sm:$0xf] %v259_v29 }
  0x4d   : > { %262 = vst [vmem:[%s1898_s28 + $0x78] sm:$0xf] %v261_v30 }
  0x4e PF: > { %s348_s29 = sand.u32 1, %s1758_s14   ;;  %s1361_s6 = sshll.u32 %s1766_s16, 10 }
  0x4f   : > { %s1293_s7 = sshll.u32 %s348_s29, 6  ;;  %s1962_s10 = scalar_lea.hbm %s2131_s1, %s1361_s6 }
  0x50   : > { %s352_s11 = scalar_lea.vmem [#allocation4], %s1293_s7  ;;  %s1966_s18 = scalar_lea.sflag [#allocation5], %s348_s29 }
  0x51   : > { %s360_s12 = sshll.u32 %s352_s11, 4  ;;  %s1688_s20 = scalar_lea.hbm %s1962_s10, 1024  ;;  %s1964_s12 = int_to_ptr.vmem [resolvable:$true] %s360_s12 }
  0x52   : > { %p1689_p3 = scmp.ne.s32.totalorder %s1962_s10, %s1688_s20  ;;  %p2145_p5 = scmp.ne.s32.totalorder %s2139_s21, 0 }
  0x53   : > { %s1692_s30 = scalar_lea.hbm %s2131_s1, 5120  ;;  %p1693_p12 = scmp.lt.u32.totalorder %s1962_s10, %s2131_s1 }
  0x54   : > { %p1690_p8 = pnand %p1689_p3, %p2145_p5  ;;  %p1694_p0 = scmp.lt.u32.totalorder %s1692_s30, %s1688_s20 }
  0x55   : > { %p1696_p4 = scmp.lt.u32.totalorder %s1688_s20, %s1962_s10 }
  0x56   : > { %p1691_p10 = pneg %p1690_p8  ;;  %p1695_p2 = por %p1694_p0, %p1693_p12 }
  0x58   : > { %p1697_p6 = por %p1696_p4, %p1695_p2 }
  0x5a   : > { %p1698_p7 = pnand %p1697_p6, %p1691_p10 }
  0x5c   : > { %1701 = shalt.err (!%p1698_p7)
}
  0x5d   : > { %s1702_s28 = scalar_lea.vmem %s1964_s12, 1024  ;;  %s1773_s29 = smov [#allocation4]  }
  0x5e   : > { %p1703_p9 = scmp.ne.s32.totalorder %s1964_s12, %s1702_s28  ;;  %s1706_s6 = sshll.u32 %s1773_s29, 4  ;;  %s1707_s6 = int_to_ptr.vmem [resolvable:$false] %s1706_s6 }
  0x5f   : > { %s1708_s7 = scalar_lea.vmem %s1707_s6, 2048  ;;  %p1709_p1 = scmp.lt.s32.totalorder %s1964_s12, %s1707_s6 }
  0x60   : > { %p1704_p11 = pnand %p1703_p9, %p2145_p5  ;;  %p1710_p3 = scmp.lt.s32.totalorder %s1708_s7, %s1702_s28 }
  0x62   : > { %p1705_p13 = pneg %p1704_p11  ;;  %p1711_p8 = por %p1710_p3, %p1709_p1 }
  0x64   : > { %p1712_p12 = pnand %p1711_p8, %p1705_p13 }
  0x66   : > { %1715 = shalt.err (!%p1712_p12)
}
  0x67   : > { %s1774_s8 = smov 64   ;;  %s1775_s9 = smov 4  }
  0x68   : > { %1574 = dma.hbm_to_vmem [thread:$0]  (%p2145_p5), %s1962_s10, 1024, %s1964_s12, %s1966_s18, %s1774_s8, %s1774_s8, %s1775_s9  }
  0x69 PF: > { %p2146_p10 = scmp.ne.s32.totalorder %s2142_s26, 0 }
  0x6a   : > { %s375_s11 = sand.u32 (!%p2146_p10), 1, %s1754_s13   ;;  %p2147_p0 = scmp.ne.s32.totalorder (!%p2146_p10), %s2141_s24, 0 }
  0x6b   : > { %372 = sbr.rel (%p2146_p10) target bundleno = 426 (0x1aa), region = 69  ;;  %s1297_s22 = sshll.u32 (!%p2146_p10), %s375_s11, 6 }
  0x6c   : > { %s1571_s20 = smul.u32 (!%p2146_p10), 124, %s375_s11  ;;  %s382_s30 = scalar_lea.sflag (!%p2146_p10), [#allocation5], %s375_s11 }
  0x6d   : > { %s1995_s4 = scalar_lea.vmem (!%p2146_p10), [#allocation4], %s1297_s22 }
  0x6e   : > { %s1993_s27 = scalar_lea.vmem (!%p2146_p10), [#allocation3], %s1571_s20 }
  0x72   : > { %1741 = dma.done.wait (%p2147_p0), %s382_s30, 1024  }
  0x73   : > { %1743 = vsyncadd (%p2147_p0), %s382_s30, 4294966272  ;;  %p2148_p5 = scmp.ne.s32.totalorder %s2140_s23, 0 }
  0x75   : > { %1745 = dma.done.wait (%p2148_p5), [#allocation7], 16  }
  0x76   : > { %1747 = vsyncadd (%p2148_p5), [#allocation7], 4294967280  ;;  %p1299_p2 = scmp.ne.s32.totalorder %s1762_s15, 0 }
  0x77   : > { %v1776_v31 = vmov (!%p1299_p2), 0.0  }
  0x78   : > { %434 = sbr.rel (%p1299_p2) target bundleno = 136 (0x88), region = 85  ;;  %435 = vst [vmem:[#allocation2] sm:$0xff] (!%p1299_p2), %v1776_v31  ;;  %436 = vst [vmem:[#allocation2 + $0x8] sm:$0xff] (!%p1299_p2), %v1776_v31 }
  0x79   : > { %437 = vst [vmem:[#allocation2 + $0x10] sm:$0xff] (!%p1299_p2), %v1776_v31  ;;  %438 = vst [vmem:[#allocation2 + $0x18] sm:$0xff] (!%p1299_p2), %v1776_v31 }
  0x7a   : > { %439 = vst [vmem:[#allocation2 + $0x20] sm:$0xff] (!%p1299_p2), %v1776_v31  ;;  %440 = vst [vmem:[#allocation2 + $0x28] sm:$0xff] (!%p1299_p2), %v1776_v31 }
  0x7b   : > { %441 = vst [vmem:[#allocation2 + $0x30] sm:$0xff] (!%p1299_p2), %v1776_v31  ;;  %442 = vst [vmem:[#allocation2 + $0x38] sm:$0xff] (!%p1299_p2), %v1776_v31 }
  0x7c   : > { %443 = vst [vmem:[#allocation2 + $0x40] sm:$0xff] (!%p1299_p2), %v1776_v31  ;;  %444 = vst [vmem:[#allocation2 + $0x48] sm:$0xff] (!%p1299_p2), %v1776_v31 }
  0x7d   : > { %445 = vst [vmem:[#allocation2 + $0x50] sm:$0xff] (!%p1299_p2), %v1776_v31  ;;  %446 = vst [vmem:[#allocation2 + $0x58] sm:$0xff] (!%p1299_p2), %v1776_v31 }
  0x7e   : > { %447 = vst [vmem:[#allocation2 + $0x60] sm:$0xff] (!%p1299_p2), %v1776_v31  ;;  %448 = vst [vmem:[#allocation2 + $0x68] sm:$0xff] (!%p1299_p2), %v1776_v31 }
  0x7f   : > { %449 = vst [vmem:[#allocation2 + $0x70] sm:$0xff] %v1776_v31  ;;  %450 = vst [vmem:[#allocation2 + $0x78] sm:$0xff] %v1776_v31 }
  0x80   : > { %451 = vst [vmem:[#allocation2 + $0x80] sm:$0xff] %v1776_v31  ;;  %452 = vst [vmem:[#allocation2 + $0x88] sm:$0xff] %v1776_v31 }
  0x81   : > { %453 = vst [vmem:[#allocation2 + $0x90] sm:$0xff] %v1776_v31  ;;  %454 = vst [vmem:[#allocation2 + $0x98] sm:$0xff] %v1776_v31 }
  0x82   : > { %455 = vst [vmem:[#allocation2 + $0xa0] sm:$0xff] %v1776_v31  ;;  %456 = vst [vmem:[#allocation2 + $0xa8] sm:$0xff] %v1776_v31 }
  0x83   : > { %457 = vst [vmem:[#allocation2 + $0xb0] sm:$0xff] %v1776_v31  ;;  %458 = vst [vmem:[#allocation2 + $0xb8] sm:$0xff] %v1776_v31 }
  0x84   : > { %459 = vst [vmem:[#allocation2 + $0xc0] sm:$0xff] %v1776_v31  ;;  %460 = vst [vmem:[#allocation2 + $0xc8] sm:$0xff] %v1776_v31 }
  0x85   : > { %461 = vst [vmem:[#allocation2 + $0xd0] sm:$0xff] %v1776_v31  ;;  %462 = vst [vmem:[#allocation2 + $0xd8] sm:$0xff] %v1776_v31 }
  0x86   : > { %463 = vst [vmem:[#allocation2 + $0xe0] sm:$0xff] %v1776_v31  ;;  %464 = vst [vmem:[#allocation2 + $0xe8] sm:$0xff] %v1776_v31 }
  0x87   : > { %465 = vst [vmem:[#allocation2 + $0xf0] sm:$0xff] %v1776_v31 }
  0x88 PF: > { %v1636_v32 = vld [vmem:[%s1995_s4] sm:$0xff]   ;;  %v1637_v33 = vld [vmem:[%s1995_s4 + $0x8] sm:$0xff]   ;;  %v1638_v34 = vld [vmem:[%s1995_s4 + $0x10] sm:$0xff]   ;;  %p1324_p4 = scmp.ne.s32.totalorder %s1762_s15, 4 }
  0x89   : > { %1506 = vmatprep.subr.bf16.mxu0 %v1636_v32  ;;  %1554 = vmatprep.subr.bf16.mxu1 %v1636_v32  ;;  %v1639_v35 = vld [vmem:[%s1995_s4 + $0x18] sm:$0xff]   ;;  %v1644_v36 = vld [vmem:[%s1993_s27] sm:$0xff]   ;;  %v1642_v40 = vld [vmem:[%s1995_s4 + $0x30] sm:$0xff]  }
  0x8a   : > { %1507 = vmatpush3.bf16.msra.mxu0 %v1636_v32  ;;  %1562 = vmatpush3.bf16.msra.mxu1 %v1636_v32  ;;  %v1645_v37 = vld [vmem:[%s1993_s27 + $0x40] sm:$0xff]   ;;  %v1643_v41 = vld [vmem:[%s1995_s4 + $0x38] sm:$0xff]   ;;  %v1646_v42 = vld [vmem:[%s1993_s27 + $0x8] sm:$0xff]  }
  0x8b   : > { %1508 = vmatprep.subr.bf16.mxu0 %v1637_v33  ;;  %1555 = vmatprep.subr.bf16.mxu1 %v1637_v33  ;;  %v1640_v38 = vld [vmem:[%s1995_s4 + $0x20] sm:$0xff]   ;;  %v1641_v39 = vld [vmem:[%s1995_s4 + $0x28] sm:$0xff]   ;;  %v1648_v44 = vld [vmem:[%s1993_s27 + $0x10] sm:$0xff]  }
  0x8c   : > { %1522 = vmatprep.mubr.bf16.mxu0 %v1644_v36  ;;  %1538 = vmatprep.mubr.bf16.mxu1 %v1645_v37  ;;  %v1647_v43 = vld [vmem:[%s1993_s27 + $0x48] sm:$0xff]   ;;  %v1649_v45 = vld [vmem:[%s1993_s27 + $0x50] sm:$0xff]   ;;  %v1650_v46 = vld [vmem:[%s1993_s27 + $0x18] sm:$0xff]  }
  0x8d   : > { %v1651_v47 = vld [vmem:[%s1993_s27 + $0x58] sm:$0xff]   ;;  %v1652_v48 = vld [vmem:[%s1993_s27 + $0x20] sm:$0xff]   ;;  %v1654_v50 = vld [vmem:[%s1993_s27 + $0x28] sm:$0xff]  }
  0x8e   : > { %1509 = vmatpush3.bf16.msra.mxu0 %v1637_v33  ;;  %1563 = vmatpush3.bf16.msra.mxu1 %v1637_v33  ;;  %v1653_v49 = vld [vmem:[%s1993_s27 + $0x60] sm:$0xff]   ;;  %v1655_v51 = vld [vmem:[%s1993_s27 + $0x68] sm:$0xff]   ;;  %v1656_v52 = vld [vmem:[%s1993_s27 + $0x30] sm:$0xff]  }
  0x8f   : > { %1510 = vmatprep.subr.bf16.mxu0 %v1638_v34  ;;  %1556 = vmatprep.subr.bf16.mxu1 %v1638_v34  ;;  %v1657_v53 = vld [vmem:[%s1993_s27 + $0x70] sm:$0xff]   ;;  %v1658_v54 = vld [vmem:[%s1993_s27 + $0x38] sm:$0xff]   ;;  %v469_v62 = vld [vmem:[#allocation2 + $0x18] sm:$0xff] }
  0x90   : > { %v1659_v55 = vld [vmem:[%s1993_s27 + $0x78] ss:$0 sps:$4 sm:$0xff]   ;;  %v466_v58 = vld [vmem:[#allocation2] sm:$0xff]  ;;  %v485_v63 = vld [vmem:[#allocation2 + $0x98] sm:$0xff] }
  0x91   : > { %v468_v56 = vld [vmem:[#allocation2 + $0x10] sm:$0xff]  ;;  %v482_v59 = vld [vmem:[#allocation2 + $0x80] sm:$0xff]  ;;  %v467_v4 = vld [vmem:[#allocation2 + $0x8] sm:$0xff] }
  0x92   : > { %1511 = vmatpush3.bf16.msra.mxu0 %v1638_v34  ;;  %1564 = vmatpush3.bf16.msra.mxu1 %v1638_v34  ;;  %v484_v57 = vld [vmem:[#allocation2 + $0x90] sm:$0xff]  ;;  %v483_v5 = vld [vmem:[#allocation2 + $0x88] sm:$0xff]  ;;  %v470_v18 = vld [vmem:[#allocation2 + $0x20] sm:$0xff] }
  0x93   : > { %1512 = vmatprep.subr.bf16.mxu0 %v1639_v35  ;;  %1557 = vmatprep.subr.bf16.mxu1 %v1639_v35  ;;  %v472_v16 = vld [vmem:[#allocation2 + $0x30] sm:$0xff]  ;;  %v486_v19 = vld [vmem:[#allocation2 + $0xa0] sm:$0xff]  ;;  %v473_v22 = vld [vmem:[#allocation2 + $0x38] sm:$0xff] }
  0x94   : > { %v488_v17 = vld [vmem:[#allocation2 + $0xb0] sm:$0xff]  ;;  %v489_v23 = vld [vmem:[#allocation2 + $0xb8] sm:$0xff]  ;;  %v471_v28 = vld [vmem:[#allocation2 + $0x28] sm:$0xff] }
  0x95   : > { %v487_v29 = vld [vmem:[#allocation2 + $0xa8] sm:$0xff] }
  0x96   : > { %1513 = vmatpush3.bf16.msra.mxu0 %v1639_v35  ;;  %1565 = vmatpush3.bf16.msra.mxu1 %v1639_v35 }
  0x97   : > { %1514 = vmatprep.subr.bf16.mxu0 %v1640_v38  ;;  %1558 = vmatprep.subr.bf16.mxu1 %v1640_v38 }
  0x9a   : > { %1515 = vmatpush3.bf16.msra.mxu0 %v1640_v38  ;;  %1566 = vmatpush3.bf16.msra.mxu1 %v1640_v38 }
  0x9b   : > { %1516 = vmatprep.subr.bf16.mxu0 %v1641_v39  ;;  %1559 = vmatprep.subr.bf16.mxu1 %v1641_v39 }
  0x9e   : > { %1517 = vmatpush3.bf16.msra.mxu0 %v1641_v39  ;;  %1567 = vmatpush3.bf16.msra.mxu1 %v1641_v39 }
  0x9f   : > { %1518 = vmatprep.subr.bf16.mxu0 %v1642_v40  ;;  %1560 = vmatprep.subr.bf16.mxu1 %v1642_v40 }
  0xa2   : > { %1519 = vmatpush3.bf16.msra.mxu0 %v1642_v40  ;;  %1568 = vmatpush3.bf16.msra.mxu1 %v1642_v40  ;;  %v476_v40 = vld [vmem:[#allocation2 + $0x50] sm:$0xff] }
  0xa3   : > { %1520 = vmatprep.subr.bf16.mxu0 %v1643_v41  ;;  %1561 = vmatprep.subr.bf16.mxu1 %v1643_v41 }
  0xa6   : > { %1521 = vmatpush3.bf16.msra.mxu0 %v1643_v41  ;;  %1569 = vmatpush3.bf16.msra.mxu1 %v1643_v41  ;;  %v492_v41 = vld [vmem:[#allocation2 + $0xd0] sm:$0xff] }
  0xa9   : > { %1523 = vmatmul.mubr.bf16.vlgmr.msra.gmra.mrb[0].mxu0 %v1646_v42  ;;  %1539 = vmatmul.mubr.bf16.vlgmr.msra.gmra.mrb[0].mxu1 %v1647_v43  ;;  %v474_v42 = vld [vmem:[#allocation2 + $0x40] sm:$0xff] }
  0xaa   : > { %1526 = vmatprep.mubr.bf16.mxu0 %v1648_v44  ;;  %1542 = vmatprep.mubr.bf16.mxu1 %v1649_v45  ;;  %v490_v43 = vld [vmem:[#allocation2 + $0xc0] sm:$0xff] }
  0xb1   : > { %1527 = vmatmul.mubr.bf16.gmra.mrb[4].mxu0 %v1650_v46  ;;  %1543 = vmatmul.mubr.bf16.gmra.mrb[4].mxu1 %v1651_v47  ;;  %v477_v46 = vld [vmem:[#allocation2 + $0x58] sm:$0xff] }
  0xb2   : > { %1530 = vmatprep.mubr.bf16.mxu0 %v1652_v48  ;;  %1546 = vmatprep.mubr.bf16.mxu1 %v1653_v49  ;;  %v493_v47 = vld [vmem:[#allocation2 + $0xd8] sm:$0xff] }
  0xb9   : > { %1531 = vmatmul.mubr.bf16.gmra.mrb[8].mxu0 %v1654_v50  ;;  %1547 = vmatmul.mubr.bf16.gmra.mrb[8].mxu1 %v1655_v51 }
  0xba   : > { %1534 = vmatprep.mubr.bf16.mxu0 %v1656_v52  ;;  %1550 = vmatprep.mubr.bf16.mxu1 %v1657_v53  ;;  %v475_v52 = vld [vmem:[#allocation2 + $0x48] sm:$0xff] }
  0xbb   : > { %v491_v53 = vld [vmem:[#allocation2 + $0xc8] sm:$0xff] }
  0xc1   : > { %1535 = vmatmul.mubr.bf16.gmra.mrb[12].mxu0 %v1658_v54  ;;  %1551 = vmatmul.mubr.bf16.gmra.mrb[12].mxu1 %v1659_v55 }
 0x17c   : > { %v1524_v60 = vpop.f32.mrb[0].mxu0  ;;  %v1540_v61 = vpop.f32.mrb[0].mxu1 }
 0x17d   : > { %v848_v0 = vadd.f32 %v1524_v60, %v468_v56  ;;  %v864_v1 = vadd.f32 %v1540_v61, %v484_v57  ;;  %v720_v2 = vpop.f32.mrb[1].mxu0  ;;  %v784_v3 = vpop.f32.mrb[1].mxu1 }
 0x17e   : > { %v846_v6 = vadd.f32 %v720_v2, %v466_v58  ;;  %v862_v7 = vadd.f32 %v784_v3, %v482_v59  ;;  %v1525_v8 = vpop.f32.mrb[2].mxu0  ;;  %v1541_v9 = vpop.f32.mrb[2].mxu1  ;;  %v478_v2 = vld [vmem:[#allocation2 + $0x60] sm:$0xff] }
 0x17f   : > { %879 = vst [vmem:[#allocation2 + $0x10] sm:$0xff] %v848_v0  ;;  %895 = vst [vmem:[#allocation2 + $0x90] sm:$0xff] %v864_v1  ;;  %v849_v10 = vadd.f32 %v1525_v8, %v469_v62  ;;  %v865_v11 = vadd.f32 %v1541_v9, %v485_v63  ;;  %v723_v12 = vpop.f32.mrb[3].mxu0  ;;  %v787_v13 = vpop.f32.mrb[3].mxu1  ;;  %v480_v0 = vld [vmem:[#allocation2 + $0x70] sm:$0xff]  ;;  %v494_v3 = vld [vmem:[#allocation2 + $0xe0] sm:$0xff] }
 0x180   : > { %877 = vst [vmem:[#allocation2] sm:$0xff] %v846_v6  ;;  %893 = vst [vmem:[#allocation2 + $0x80] sm:$0xff] %v862_v7  ;;  %v847_v14 = vadd.f32 %v723_v12, %v467_v4  ;;  %v863_v15 = vadd.f32 %v787_v13, %v483_v5  ;;  %v496_v1 = vld [vmem:[#allocation2 + $0xf0] sm:$0xff]  ;;  %v481_v6 = vld [vmem:[#allocation2 + $0x78] sm:$0xff] }
 0x181   : > { %880 = vst [vmem:[#allocation2 + $0x18] sm:$0xff] %v849_v10  ;;  %896 = vst [vmem:[#allocation2 + $0x98] sm:$0xff] %v865_v11  ;;  %v479_v11 = vld [vmem:[#allocation2 + $0x68] sm:$0xff] }
 0x182   : > { %878 = vst [vmem:[#allocation2 + $0x8] sm:$0xff] %v847_v14  ;;  %894 = vst [vmem:[#allocation2 + $0x88] sm:$0xff] %v863_v15  ;;  %v495_v12 = vld [vmem:[#allocation2 + $0xe8] sm:$0xff] }
 0x184   : > { %v1528_v20 = vpop.f32.mrb[4].mxu0  ;;  %v1544_v21 = vpop.f32.mrb[4].mxu1 }
 0x185   : > { %v852_v24 = vadd.f32 %v1528_v20, %v472_v16  ;;  %v868_v25 = vadd.f32 %v1544_v21, %v488_v17  ;;  %v736_v26 = vpop.f32.mrb[5].mxu0  ;;  %v800_v27 = vpop.f32.mrb[5].mxu1 }
 0x186   : > { %v850_v30 = vadd.f32 %v736_v26, %v470_v18  ;;  %v866_v31 = vadd.f32 %v800_v27, %v486_v19  ;;  %v1529_v32 = vpop.f32.mrb[6].mxu0  ;;  %v1545_v33 = vpop.f32.mrb[6].mxu1  ;;  %v914_v27 = vld [vmem:[#allocation2 + $0x10] sm:$0xff] (!%p1324_p4) }
 0x187   : > { %883 = vst [vmem:[#allocation2 + $0x30] sm:$0xff] %v852_v24  ;;  %899 = vst [vmem:[#allocation2 + $0xb0] sm:$0xff] %v868_v25  ;;  %v853_v34 = vadd.f32 %v1529_v32, %v473_v22  ;;  %v869_v35 = vadd.f32 %v1545_v33, %v489_v23  ;;  %v739_v36 = vpop.f32.mrb[7].mxu0  ;;  %v803_v37 = vpop.f32.mrb[7].mxu1  ;;  %v912_v22 = vld [vmem:[#allocation2] sm:$0xff] (!%p1324_p4) }
 0x188   : > { %881 = vst [vmem:[#allocation2 + $0x20] sm:$0xff] %v850_v30  ;;  %897 = vst [vmem:[#allocation2 + $0xa0] sm:$0xff] %v866_v31  ;;  %v851_v38 = vadd.f32 %v739_v36, %v471_v28  ;;  %v867_v39 = vadd.f32 %v803_v37, %v487_v29  ;;  %v2031_v24 = vld [vmem:[#allocation6] ss:$0 sm:$0xff] (!%p1324_p4)  ;;  %v915_v28 = vld [vmem:[#allocation2 + $0x18] sm:$0xff] (!%p1324_p4) }
 0x189   : > { %884 = vst [vmem:[#allocation2 + $0x38] sm:$0xff] %v853_v34  ;;  %900 = vst [vmem:[#allocation2 + $0xb8] sm:$0xff] %v869_v35  ;;  %v913_v23 = vld [vmem:[#allocation2 + $0x8] sm:$0xff] (!%p1324_p4)  ;;  %v950_v25 = vadd.f32 (!%p1324_p4), %v2031_v24, %v912_v22  ;;  %v952_v30 = vadd.f32 (!%p1324_p4), %v2031_v24, %v914_v27  ;;  %v953_v31 = vadd.f32 (!%p1324_p4), %v2031_v24, %v915_v28 }
 0x18a   : > { %882 = vst [vmem:[#allocation2 + $0x28] sm:$0xff] %v851_v38  ;;  %898 = vst [vmem:[#allocation2 + $0xa8] sm:$0xff] %v867_v39  ;;  %v951_v26 = vadd.f32 (!%p1324_p4), %v2031_v24, %v913_v23 }
 0x18b   : > { %v981_v36 = vmax.f32 (!%p1324_p4), %v950_v25, 0.0 }
 0x18c   : > { %v1532_v44 = vpop.f32.mrb[8].mxu0  ;;  %v1548_v45 = vpop.f32.mrb[8].mxu1  ;;  %v982_v37 = vmax.f32 (!%p1324_p4), %v951_v26, 0.0 }
 0x18d   : > { %v856_v48 = vadd.f32 %v1532_v44, %v476_v40  ;;  %v872_v49 = vadd.f32 %v1548_v45, %v492_v41  ;;  %v752_v50 = vpop.f32.mrb[9].mxu0  ;;  %v816_v51 = vpop.f32.mrb[9].mxu1  ;;  %v984_v44 = vmax.f32 (!%p1324_p4), %v953_v31, 0.0 }
 0x18e   : > { %v854_v54 = vadd.f32 %v752_v50, %v474_v42  ;;  %v870_v55 = vadd.f32 %v816_v51, %v490_v43  ;;  %v1533_v56 = vpop.f32.mrb[10].mxu0  ;;  %v1549_v57 = vpop.f32.mrb[10].mxu1  ;;  %v918_v34 = vld [vmem:[#allocation2 + $0x30] sm:$0xff] (!%p1324_p4)  ;;  %v983_v43 = vmax.f32 (!%p1324_p4), %v952_v30, 0.0 }
 0x18f   : > { %887 = vst [vmem:[#allocation2 + $0x50] sm:$0xff] %v856_v48  ;;  %903 = vst [vmem:[#allocation2 + $0xd0] sm:$0xff] %v872_v49  ;;  %v857_v58 = vadd.f32 %v1533_v56, %v477_v46  ;;  %v873_v59 = vadd.f32 %v1549_v57, %v493_v47  ;;  %v755_v60 = vpop.f32.mrb[11].mxu0  ;;  %v819_v61 = vpop.f32.mrb[11].mxu1  ;;  %v916_v29 = vld [vmem:[#allocation2 + $0x20] sm:$0xff] (!%p1324_p4)  ;;  %v956_v39 = vadd.f32 (!%p1324_p4), %v2031_v24, %v918_v34  ;;  %v934_v22 = vld [vmem:[#allocation2 + $0xb0] sm:$0xff] (!%p1324_p4) }
 0x190   : > { %885 = vst [vmem:[#allocation2 + $0x40] sm:$0xff] %v854_v54  ;;  %901 = vst [vmem:[#allocation2 + $0xc0] sm:$0xff] %v870_v55  ;;  %v855_v62 = vadd.f32 %v755_v60, %v475_v52  ;;  %v871_v63 = vadd.f32 %v819_v61, %v491_v53  ;;  %v954_v33 = vadd.f32 (!%p1324_p4), %v2031_v24, %v916_v29  ;;  %v919_v35 = vld [vmem:[#allocation2 + $0x38] sm:$0xff] (!%p1324_p4) }
 0x191   : > { %888 = vst [vmem:[#allocation2 + $0x58] sm:$0xff] %v857_v58  ;;  %904 = vst [vmem:[#allocation2 + $0xd8] sm:$0xff] %v873_v59  ;;  %v917_v32 = vld [vmem:[#allocation2 + $0x28] sm:$0xff] (!%p1324_p4)  ;;  %v957_v46 = vadd.f32 (!%p1324_p4), %v2031_v24, %v919_v35  ;;  %v1396_v49 = vpack.c.bf16 (!%p1324_p4), %v982_v37, %v981_v36  ;;  %v987_v51 = vmax.f32 (!%p1324_p4), %v956_v39, 0.0  ;;  %v1401_v54 = vpack.c.bf16 (!%p1324_p4), %v984_v44, %v983_v43  ;;  %v935_v23 = vld [vmem:[#allocation2 + $0xb8] sm:$0xff] (!%p1324_p4) }
 0x192   : > { %886 = vst [vmem:[#allocation2 + $0x48] sm:$0xff] %v855_v62  ;;  %902 = vst [vmem:[#allocation2 + $0xc8] sm:$0xff] %v871_v63  ;;  %v955_v38 = vadd.f32 (!%p1324_p4), %v2031_v24, %v917_v32  ;;  %v985_v45 = vmax.f32 (!%p1324_p4), %v954_v33, 0.0  ;;  %v973_v39 = vadd.f32 (!%p1324_p4), %v2031_v24, %v935_v23 }
 0x193   : > { %v988_v55 = vmax.f32 (!%p1324_p4), %v957_v46, 0.0  ;;  %1397 = vst [vmem:[%s2133_s3] sm:$0xff] (!%p1324_p4), %v1396_v49   ;;  %1468 = vst [vmem:[%s2133_s3 + $0x8] sm:$0xff] (!%p1324_p4), %v1401_v54  }
 0x194   : > { %v1536_v4 = vpop.f32.mrb[12].mxu0  ;;  %v1552_v5 = vpop.f32.mrb[12].mxu1  ;;  %911 = sbr.rel (%p1324_p4) target bundleno = 426 (0x1aa), region = 89  ;;  %v986_v50 = vmax.f32 (!%p1324_p4), %v955_v38, 0.0  ;;  %v972_v38 = vadd.f32 (!%p1324_p4), %v2031_v24, %v934_v22  ;;  %v1004_v49 = vmax.f32 (!%p1324_p4), %v973_v39, 0.0 }
 0x195   : > { %v860_v7 = vadd.f32 %v1536_v4, %v480_v0  ;;  %v876_v8 = vadd.f32 %v1552_v5, %v496_v1  ;;  %v768_v9 = vpop.f32.mrb[13].mxu0  ;;  %v832_v10 = vpop.f32.mrb[13].mxu1  ;;  %v928_v0 = vld [vmem:[#allocation2 + $0x80] sm:$0xff] (!%p1324_p4)  ;;  %v929_v1 = vld [vmem:[#allocation2 + $0x88] sm:$0xff] (!%p1324_p4) }
 0x196   : > { %v858_v13 = vadd.f32 %v768_v9, %v478_v2  ;;  %v874_v14 = vadd.f32 %v832_v10, %v494_v3  ;;  %v1537_v15 = vpop.f32.mrb[14].mxu0  ;;  %v1553_v16 = vpop.f32.mrb[14].mxu1  ;;  %v922_v42 = vld [vmem:[#allocation2 + $0x50] sm:$0xff] (!%p1324_p4)  ;;  %v1406_v60 = vpack.c.bf16 (!%p1324_p4), %v986_v50, %v985_v45  ;;  %v1411_v2 = vpack.c.bf16 (!%p1324_p4), %v988_v55, %v987_v51 }
 0x197   : > { %891 = vst [vmem:[#allocation2 + $0x70] sm:$0xff] %v860_v7  ;;  %907 = vst [vmem:[#allocation2 + $0xf0] sm:$0xff] %v876_v8  ;;  %v861_v17 = vadd.f32 %v1537_v15, %v481_v6  ;;  %v771_v18 = vpop.f32.mrb[15].mxu0  ;;  %v835_v19 = vpop.f32.mrb[15].mxu1  ;;  %v920_v40 = vld [vmem:[#allocation2 + $0x40] sm:$0xff] (!%p1324_p4)  ;;  %v960_v57 = vadd.f32 (!%p1324_p4), %v2031_v24, %v922_v42  ;;  %v930_v6 = vld [vmem:[#allocation2 + $0x90] sm:$0xff] (!%p1324_p4)  ;;  %v967_v15 = vadd.f32 (!%p1324_p4), %v2031_v24, %v929_v1 }
 0x198   : > { %889 = vst [vmem:[#allocation2 + $0x60] sm:$0xff] %v858_v13  ;;  %905 = vst [vmem:[#allocation2 + $0xe0] sm:$0xff] %v874_v14  ;;  %v859_v20 = vadd.f32 %v771_v18, %v479_v11  ;;  %v875_v21 = vadd.f32 %v835_v19, %v495_v12  ;;  %v923_v47 = vld [vmem:[#allocation2 + $0x58] sm:$0xff] (!%p1324_p4)  ;;  %v958_v52 = vadd.f32 (!%p1324_p4), %v2031_v24, %v920_v40  ;;  %v932_v16 = vld [vmem:[#allocation2 + $0xa0] sm:$0xff] (!%p1324_p4) }
 0x199   : > { %892 = vst [vmem:[#allocation2 + $0x78] sm:$0xff] %v861_v17  ;;  %v921_v41 = vld [vmem:[#allocation2 + $0x48] sm:$0xff] (!%p1324_p4)  ;;  %v961_v62 = vadd.f32 (!%p1324_p4), %v2031_v24, %v923_v47  ;;  %v991_v4 = vmax.f32 (!%p1324_p4), %v960_v57, 0.0  ;;  %1469 = vst [vmem:[%s2133_s3 + $0x10] sm:$0xff] (!%p1324_p4), %v1406_v60   ;;  %v931_v11 = vld [vmem:[#allocation2 + $0x98] sm:$0xff] (!%p1324_p4)  ;;  %v966_v14 = vadd.f32 (!%p1324_p4), %v2031_v24, %v928_v0  ;;  %v998_v27 = vmax.f32 (!%p1324_p4), %v967_v15, 0.0 }
 0x19a   : > { %890 = vst [vmem:[#allocation2 + $0x68] sm:$0xff] %v859_v20  ;;  %906 = vst [vmem:[#allocation2 + $0xe8] sm:$0xff] %v875_v21  ;;  %v959_v56 = vadd.f32 (!%p1324_p4), %v2031_v24, %v921_v41  ;;  %v989_v61 = vmax.f32 (!%p1324_p4), %v958_v52, 0.0  ;;  %v933_v17 = vld [vmem:[#allocation2 + $0xa8] sm:$0xff] (!%p1324_p4)  ;;  %v968_v21 = vadd.f32 (!%p1324_p4), %v2031_v24, %v930_v6  ;;  %v969_v28 = vadd.f32 (!%p1324_p4), %v2031_v24, %v931_v11  ;;  %v936_v29 = vld [vmem:[#allocation2 + $0xc0] sm:$0xff] (!%p1324_p4) }
 0x19b   : > { %v992_v7 = vmax.f32 %v961_v62, 0.0  ;;  %1470 = vst [vmem:[%s2133_s3 + $0x18] sm:$0xff] %v1411_v2   ;;  %v997_v26 = vmax.f32 %v966_v14, 0.0  ;;  %v937_v30 = vld [vmem:[#allocation2 + $0xc8] sm:$0xff]  ;;  %v970_v33 = vadd.f32 %v2031_v24, %v932_v16  ;;  %v971_v34 = vadd.f32 %v2031_v24, %v933_v17  ;;  %v938_v35 = vld [vmem:[#allocation2 + $0xd0] sm:$0xff]  ;;  %v939_v40 = vld [vmem:[#allocation2 + $0xd8] sm:$0xff] }
 0x19c   : > { %v990_v3 = vmax.f32 %v959_v56, 0.0  ;;  %v999_v32 = vmax.f32 %v968_v21, 0.0  ;;  %v1000_v37 = vmax.f32 %v969_v28, 0.0  ;;  %v974_v43 = vadd.f32 %v2031_v24, %v936_v29 }
 0x19d   : > { %v1421_v18 = vpack.c.bf16 %v992_v7, %v991_v4  ;;  %v1436_v36 = vpack.c.bf16 %v998_v27, %v997_v26  ;;  %v1001_v41 = vmax.f32 %v970_v33, 0.0  ;;  %v1002_v42 = vmax.f32 %v971_v34, 0.0 }
 0x19e   : > { %v926_v58 = vld [vmem:[#allocation2 + $0x70] sm:$0xff]  ;;  %v1416_v12 = vpack.c.bf16 %v990_v3, %v989_v61  ;;  %v975_v44 = vadd.f32 %v2031_v24, %v937_v30  ;;  %v1441_v47 = vpack.c.bf16 %v1000_v37, %v999_v32  ;;  %v976_v50 = vadd.f32 %v2031_v24, %v938_v35 }
 0x19f   : > { %v924_v48 = vld [vmem:[#allocation2 + $0x60] sm:$0xff]  ;;  %v964_v9 = vadd.f32 %v2031_v24, %v926_v58  ;;  %1472 = vst [vmem:[%s2133_s3 + $0x28] sm:$0xff] %v1421_v18   ;;  %1475 = vst [vmem:[%s2133_s3 + $0x40] sm:$0xff] %v1436_v36   ;;  %v942_v51 = vld [vmem:[#allocation2 + $0xf0] sm:$0xff]  ;;  %v1446_v52 = vpack.c.bf16 %v1002_v42, %v1001_v41  ;;  %v977_v55 = vadd.f32 %v2031_v24, %v939_v40 }
 0x1a0   : > { %v927_v59 = vld [vmem:[#allocation2 + $0x78] sm:$0xff]  ;;  %v962_v63 = vadd.f32 %v2031_v24, %v924_v48  ;;  %1471 = vst [vmem:[%s2133_s3 + $0x20] sm:$0xff] %v1416_v12   ;;  %v940_v45 = vld [vmem:[#allocation2 + $0xe0] sm:$0xff]  ;;  %v1003_v48 = vmax.f32 %v972_v38, 0.0  ;;  %v1006_v54 = vmax.f32 %v975_v44, 0.0  ;;  %1476 = vst [vmem:[%s2133_s3 + $0x48] sm:$0xff] %v1441_v47   ;;  %v980_v62 = vadd.f32 %v2031_v24, %v942_v51 }
 0x1a1   : > { %v925_v53 = vld [vmem:[#allocation2 + $0x68] sm:$0xff]  ;;  %v965_v10 = vadd.f32 %v2031_v24, %v927_v59  ;;  %v995_v19 = vmax.f32 %v964_v9, 0.0  ;;  %v1007_v57 = vmax.f32 %v976_v50, 0.0  ;;  %v978_v58 = vadd.f32 %v2031_v24, %v940_v45  ;;  %1477 = vst [vmem:[%s2133_s3 + $0x50] sm:$0xff] %v1446_v52  }
 0x1a2   : > { %v963_v5 = vadd.f32 %v2031_v24, %v925_v53  ;;  %v993_v8 = vmax.f32 %v962_v63, 0.0  ;;  %v941_v46 = vld [vmem:[#allocation2 + $0xe8] sm:$0xff]  ;;  %v1005_v53 = vmax.f32 %v974_v43, 0.0  ;;  %v1451_v56 = vpack.c.bf16 %v1004_v49, %v1003_v48 }
 0x1a3   : > { %v996_v20 = vmax.f32 %v965_v10, 0.0  ;;  %v979_v59 = vadd.f32 %v2031_v24, %v941_v46  ;;  %v1008_v61 = vmax.f32 %v977_v55, 0.0  ;;  %v1009_v63 = vmax.f32 %v978_v58, 0.0 }
 0x1a4   : > { %v994_v13 = vmax.f32 %v963_v5, 0.0  ;;  %v1456_v60 = vpack.c.bf16 %v1006_v54, %v1005_v53  ;;  %1478 = vst [vmem:[%s2133_s3 + $0x58] sm:$0xff] %v1451_v56   ;;  %v1011_v2 = vmax.f32 %v980_v62, 0.0 }
 0x1a5   : > { %v1431_v31 = vpack.c.bf16 %v996_v20, %v995_v19  ;;  %v1010_v0 = vmax.f32 %v979_v59, 0.0  ;;  %v1461_v1 = vpack.c.bf16 %v1008_v61, %v1007_v57 }
 0x1a6   : > { %v1426_v25 = vpack.c.bf16 %v994_v13, %v993_v8  ;;  %1479 = vst [vmem:[%s2133_s3 + $0x60] sm:$0xff] %v1456_v60   ;;  %v1392_v4 = vpack.c.bf16 %v1011_v2, %v1011_v2 }
 0x1a7   : > { %1474 = vst [vmem:[%s2133_s3 + $0x38] sm:$0xff] %v1431_v31   ;;  %v1466_v3 = vpack.c.bf16 %v1010_v0, %v1009_v63  ;;  %1480 = vst [vmem:[%s2133_s3 + $0x68] sm:$0xff] %v1461_v1  }
 0x1a8   : > { %1473 = vst [vmem:[%s2133_s3 + $0x30] sm:$0xff] %v1426_v25   ;;  %1167 = vst [vmem:[%s2133_s3 + $0x78] sm:$0xf] %v1392_v4 }
 0x1a9   : > { %1481 = vst [vmem:[%s2133_s3 + $0x70] sm:$0xff] %v1466_v3  }
 0x1aa PF: > { %s17_s17 = sadd.s32 1, %s1770_s17   ;;  %s2149_s12 = smov %s1754_s13 }
 0x1ab   : > { %p14_p6 = scmp.ge.s32.totalorder %s17_s17, 7   ;;  %s2150_s13 = smov %s1758_s14 }
 0x1ac   : > { %s2151_s14 = smov %s1853_s25  ;;  %s2152_s15 = smov %s1766_s16 }
 0x1ad   : > { %s2153_s16 = smov %s2155_s19  ;;  %16 = sbr.rel (!%p14_p6) target bundleno = 5 (0x5), region = 134 }
 0x1b4   :  { %1196 = vsyncpa [#allocation5], 1 }
 0x1b5   :  { %1198 = vsyncpa [#allocation5 + $0x1], 1 }
 0x1b6   :  { %1199 = vsyncpa [#allocation7], 1 }

// kernel: proto_cnn_forward.12
= control target key start
LH: loop header
LB: loop body
LE: loop exit
PB: predicated region body
PF: predicated region fallthrough
CT: control target
= control target key end

     0   :  { %8 = vsyncpa [#allocation5], 0  ;;  %s1829_s0 = inlined_call_operand.vmem [shape: bf16[168,1152], index: 0, kind: input, shape index: {}]   ;;  %s1830_s1 = inlined_call_operand.hbm [shape: bf16[1152,128], index: 1, kind: input, shape index: {}]   ;;  %s1831_s2 = inlined_call_operand.hbm [shape: f32[1,128], index: 2, kind: input, shape index: {}]   ;;  %s1832_s3 = inlined_call_operand.vmem [shape: bf16[168,128], index: 3, kind: output, shape index: {}]  }
   0x1   :  { %10 = vsyncpa [#allocation5 + $0x1], 0 }
   0x2   :  { %11 = vsyncpa [#allocation7], 0  ;;  %s1508_s12 = smov 0   ;;  %s1510_s13 = smov 0  }
   0x3   :  { %s1512_s14 = smov 0   ;;  %s1514_s15 = smov 0  }
   0x4   :  { %s1516_s16 = smov 0   ;;  %s1518_s17 = smov 0  }
   0x5 LB: > { %s1048_s18 = sadd.s32 4294967295, %s1479_s17   ;;  %s29_s19 = sadd.s32 1, %s1475_s16  ;;  %s1479_s17 = sphi %s1518_s17, %s17_s17   ;;  %s1475_s16 = sphi %s1516_s16, %s1852_s16   ;;  %s1471_s15 = sphi %s1514_s15, %s1851_s15   ;;  %s1467_s14 = sphi %s1512_s14, %s1850_s14   ;;  %s1463_s13 = sphi %s1510_s13, %s1849_s13   ;;  %s1459_s12 = sphi %s1508_s12, %s1848_s12  }
   0x6   : > { %p30_p0 = scmp.ge.s32.totalorder %s29_s19, 9  ;;  %s45_s20 = sadd.s32 1, %s1467_s14 }
   0x7   : > { %p52_p1 = scmp.ne.s32.totalorder %s1467_s14, %s1463_s13  ;;  %p53_p2 = scmp.eq.s32.totalorder %s1479_s17, 0 }
   0x8   : > { %s1854_s19 = smov (%p30_p0, %s29_s19), 0  ;;  %p86_p4 = scmp.ne.s32.totalorder %s1463_s13, %s1459_s12 }
   0x9   : > { %p1544_p3 = por %p53_p2, %p52_p1  ;;  %s41_s22 = ssub.s32 %s1475_s16, %s1854_s19 }
   0xa   : > { %p1551_p5 = scmp.eq.s32.totalorder %s1048_s18, 0  ;;  %p43_p6 = scmp.eq.s32.totalorder %s41_s22, 0 }
   0xb   : > { %s1838_s21 = scalar_select %p1544_p3, 1, 0 }
   0xc   : > { %s1839_s23 = scalar_select %p1551_p5, 1, 0 }
   0xd   : > { %p1049_p7 = scmp.ge.s32.totalorder %s1479_s17, 1  ;;  %p1558_p8 = por %p1551_p5, %p86_p4 }
   0xe   : > { %p151_p9 = scmp.lt.s32.totalorder %s1479_s17, 10  ;;  %s1481_s27 = smov [#allocation6]  }
   0xf   : > { %s1840_s24 = scalar_select %p1558_p8, 1, 0 }
  0x10   : > { %s1564_s25 = scalar_select %p43_p6, %s1467_s14, %s45_s20  }
  0x11   : > { %p1566_p10 = pnand %p1049_p7, %p151_p9  ;;  %s166_s28 = sshll.u32 %s1481_s27, 4  ;;  %s167_s28 = int_to_ptr.vmem [resolvable:$true] %s166_s28 }
  0x12   : > { %s1369_s5 = scalar_lea.hbm %s1831_s2, 16 }
  0x13   : > { %s1841_s26 = scalar_select %p1566_p10, 1, 0 }
  0x14   : > { %p1290_p11 = pneg %p1566_p10  ;;  %p1370_p13 = scmp.ne.s32.totalorder %s1831_s2, %s1369_s5 }
  0x15   : > { %p1376_p4 = scmp.lt.u32.totalorder %s1369_s5, %s1831_s2 }
  0x16   : > { %p1574_p12 = pnand %p1290_p11, %p1551_p5 }
  0x18   : > { %p1371_p0 = pneg %p1574_p12 }
  0x1a   : > { %p1372_p1 = pnand %p1371_p0, %p1370_p13 }
  0x1c   : > { %p1373_p2 = pneg %p1372_p1 }
  0x1e   : > { %p1378_p6 = pnand %p1376_p4, %p1373_p2 }
  0x20   : > { %1381 = shalt.err (!%p1378_p6)
}
  0x21   : > { %s1382_s10 = scalar_lea.vmem %s167_s28, 16  ;;  %s1389_s11 = scalar_lea.vmem %s167_s28, 32 }
  0x22   : > { %p1383_p7 = scmp.ne.s32.totalorder %s167_s28, %s1382_s10  ;;  %p1390_p5 = scmp.lt.s32.totalorder %s167_s28, %s167_s28 }
  0x23   : > { %p1391_p8 = scmp.lt.s32.totalorder %s1389_s11, %s1382_s10 }
  0x24   : > { %p1385_p9 = pnand %p1383_p7, %p1371_p0 }
  0x25   : > { %p1392_p10 = por %p1391_p8, %p1390_p5 }
  0x26   : > { %p1386_p11 = pneg %p1385_p9 }
  0x28   : > { %p1393_p3 = pnand %p1392_p10, %p1386_p11 }
  0x2a   : > { %1396 = shalt.err (!%p1393_p3)
}
  0x2b   : > { %1293 = dma.hbm_to_vmem [thread:$0]  (!%p1574_p12), %s1831_s2, 16, %s167_s28, [#allocation7]  }
  0x2c   : > { %p1051_p13 = scmp.ge.s32.totalorder %s1479_s17, 9 }
  0x2d   : > { %p1843_p1 = scmp.ne.s32.totalorder (!%p1051_p13), %s1838_s21, 0 }
  0x2e   : > { %173 = sbr.rel (%p1051_p13) target bundleno = 98 (0x62), region = 20 }
  0x35   : > { %176 = sbr.rel (!%p1843_p1) target bundleno = 71 (0x47), region = 24  ;;  %s178_s20 = sand.u32 (%p1843_p1), 1, %s1467_s14  }
  0x36   : > { %s1052_s22 = sshll.u32 (%p1843_p1), %s1475_s16, 2  ;;  %s1282_s27 = smul.u32 (%p1843_p1), 84, %s178_s20 }
  0x37   : > { %s1602_s5 = scalar_lea.vmem (%p1843_p1), %s1829_s0, %s1052_s22 }
  0x38   : > { %v201_v0 = vld [vmem:[%s1602_s5] sm:$0xf] (%p1843_p1)  ;;  %v203_v1 = vld [vmem:[%s1602_s5 + $0x24] sm:$0xf] (%p1843_p1)  ;;  %v205_v2 = vld [vmem:[%s1602_s5 + $0x48] sm:$0xf] (%p1843_p1) }
  0x39   : > { %v207_v3 = vld [vmem:[%s1602_s5 + $0x6c] sm:$0xf] (%p1843_p1)  ;;  %v209_v4 = vld [vmem:[%s1602_s5 + $0x90] sm:$0xf] (%p1843_p1)  ;;  %s1609_s28 = scalar_lea.vmem (%p1843_p1), [#allocation3], %s1282_s27 }
  0x3a   : > { %202 = vst [vmem:[%s1609_s28] sm:$0xf] (%p1843_p1), %v201_v0  ;;  %204 = vst [vmem:[%s1609_s28 + $0x4] sm:$0xf] (%p1843_p1), %v203_v1  ;;  %v211_v5 = vld [vmem:[%s1602_s5 + $0xb4] sm:$0xf] (%p1843_p1) }
  0x3b   : > { %206 = vst [vmem:[%s1609_s28 + $0x8] sm:$0xf] (%p1843_p1), %v205_v2  ;;  %208 = vst [vmem:[%s1609_s28 + $0xc] sm:$0xf] (%p1843_p1), %v207_v3  ;;  %v213_v6 = vld [vmem:[%s1602_s5 + $0xd8] sm:$0xf] (%p1843_p1) }
  0x3c   : > { %210 = vst [vmem:[%s1609_s28 + $0x10] sm:$0xf] %v209_v4  ;;  %v215_v7 = vld [vmem:[%s1602_s5 + $0xfc] sm:$0xf]  ;;  %212 = vst [vmem:[%s1609_s28 + $0x14] sm:$0xf] %v211_v5 }
  0x3d   : > { %214 = vst [vmem:[%s1609_s28 + $0x18] sm:$0xf] %v213_v6  ;;  %216 = vst [vmem:[%s1609_s28 + $0x1c] sm:$0xf] %v215_v7  ;;  %v217_v8 = vld [vmem:[%s1602_s5 + $0x120] sm:$0xf] }
  0x3e   : > { %v219_v9 = vld [vmem:[%s1602_s5 + $0x144] sm:$0xf]  ;;  %v221_v10 = vld [vmem:[%s1602_s5 + $0x168] sm:$0xf]  ;;  %218 = vst [vmem:[%s1609_s28 + $0x20] sm:$0xf] %v217_v8 }
  0x3f   : > { %220 = vst [vmem:[%s1609_s28 + $0x24] sm:$0xf] %v219_v9  ;;  %222 = vst [vmem:[%s1609_s28 + $0x28] sm:$0xf] %v221_v10  ;;  %v223_v11 = vld [vmem:[%s1602_s5 + $0x18c] sm:$0xf] }
  0x40   : > { %v225_v12 = vld [vmem:[%s1602_s5 + $0x1b0] sm:$0xf]  ;;  %v227_v13 = vld [vmem:[%s1602_s5 + $0x1d4] sm:$0xf]  ;;  %224 = vst [vmem:[%s1609_s28 + $0x2c] sm:$0xf] %v223_v11 }
  0x41   : > { %226 = vst [vmem:[%s1609_s28 + $0x30] sm:$0xf] %v225_v12  ;;  %228 = vst [vmem:[%s1609_s28 + $0x34] sm:$0xf] %v227_v13  ;;  %v229_v14 = vld [vmem:[%s1602_s5 + $0x1f8] sm:$0xf] }
  0x42   : > { %v231_v15 = vld [vmem:[%s1602_s5 + $0x21c] sm:$0xf]  ;;  %v233_v16 = vld [vmem:[%s1602_s5 + $0x240] sm:$0xf]  ;;  %230 = vst [vmem:[%s1609_s28 + $0x38] sm:$0xf] %v229_v14 }
  0x43   : > { %232 = vst [vmem:[%s1609_s28 + $0x3c] sm:$0xf] %v231_v15  ;;  %234 = vst [vmem:[%s1609_s28 + $0x40] sm:$0xf] %v233_v16  ;;  %v235_v17 = vld [vmem:[%s1602_s5 + $0x264] sm:$0xf] }
  0x44   : > { %v237_v18 = vld [vmem:[%s1602_s5 + $0x288] sm:$0xf]  ;;  %v239_v19 = vld [vmem:[%s1602_s5 + $0x2ac] sm:$0xf]  ;;  %236 = vst [vmem:[%s1609_s28 + $0x44] sm:$0xf] %v235_v17 }
  0x45   : > { %238 = vst [vmem:[%s1609_s28 + $0x48] sm:$0xf] %v237_v18  ;;  %240 = vst [vmem:[%s1609_s28 + $0x4c] sm:$0xf] %v239_v19  ;;  %v241_v20 = vld [vmem:[%s1602_s5 + $0x2d0] sm:$0xf] }
  0x46   : > { %242 = vst [vmem:[%s1609_s28 + $0x50] sm:$0xf] %v241_v20 }
  0x47 PF: > { %s308_s29 = sand.u32 1, %s1467_s14   ;;  %s1106_s6 = sshll.u32 %s1475_s16, 10 }
  0x48   : > { %s1053_s7 = sshll.u32 %s308_s29, 6  ;;  %s1653_s10 = scalar_lea.hbm %s1830_s1, %s1106_s6 }
  0x49   : > { %s312_s11 = scalar_lea.vmem [#allocation4], %s1053_s7  ;;  %s1657_s18 = scalar_lea.sflag [#allocation5], %s308_s29 }
  0x4a   : > { %s320_s12 = sshll.u32 %s312_s11, 4  ;;  %s1397_s20 = scalar_lea.hbm %s1653_s10, 1024  ;;  %s1655_s12 = int_to_ptr.vmem [resolvable:$true] %s320_s12 }
  0x4b   : > { %p1398_p3 = scmp.ne.s32.totalorder %s1653_s10, %s1397_s20  ;;  %p1844_p5 = scmp.ne.s32.totalorder %s1838_s21, 0 }
  0x4c   : > { %s1401_s30 = scalar_lea.hbm %s1830_s1, 9216  ;;  %p1402_p12 = scmp.lt.u32.totalorder %s1653_s10, %s1830_s1 }
  0x4d   : > { %p1399_p8 = pnand %p1398_p3, %p1844_p5  ;;  %p1403_p0 = scmp.lt.u32.totalorder %s1401_s30, %s1397_s20 }
  0x4e   : > { %p1405_p4 = scmp.lt.u32.totalorder %s1397_s20, %s1653_s10 }
  0x4f   : > { %p1400_p10 = pneg %p1399_p8  ;;  %p1404_p2 = por %p1403_p0, %p1402_p12 }
  0x51   : > { %p1406_p6 = por %p1405_p4, %p1404_p2 }
  0x53   : > { %p1407_p7 = pnand %p1406_p6, %p1400_p10 }
  0x55   : > { %1410 = shalt.err (!%p1407_p7)
}
  0x56   : > { %s1411_s28 = scalar_lea.vmem %s1655_s12, 1024  ;;  %s1482_s29 = smov [#allocation4]  }
  0x57   : > { %p1412_p9 = scmp.ne.s32.totalorder %s1655_s12, %s1411_s28  ;;  %s1415_s6 = sshll.u32 %s1482_s29, 4  ;;  %s1416_s6 = int_to_ptr.vmem [resolvable:$false] %s1415_s6 }
  0x58   : > { %s1417_s7 = scalar_lea.vmem %s1416_s6, 2048  ;;  %p1418_p1 = scmp.lt.s32.totalorder %s1655_s12, %s1416_s6 }
  0x59   : > { %p1413_p11 = pnand %p1412_p9, %p1844_p5  ;;  %p1419_p3 = scmp.lt.s32.totalorder %s1417_s7, %s1411_s28 }
  0x5b   : > { %p1414_p13 = pneg %p1413_p11  ;;  %p1420_p8 = por %p1419_p3, %p1418_p1 }
  0x5d   : > { %p1421_p12 = pnand %p1420_p8, %p1414_p13 }
  0x5f   : > { %1424 = shalt.err (!%p1421_p12)
}
  0x60   : > { %s1483_s8 = smov 64   ;;  %s1484_s9 = smov 4  }
  0x61   : > { %1286 = dma.hbm_to_vmem [thread:$0]  (%p1844_p5), %s1653_s10, 1024, %s1655_s12, %s1657_s18, %s1483_s8, %s1483_s8, %s1484_s9  }
  0x62 PF: > { %p1845_p10 = scmp.ne.s32.totalorder %s1841_s26, 0 }
  0x63   : > { %s335_s11 = sand.u32 (!%p1845_p10), 1, %s1463_s13   ;;  %p1846_p0 = scmp.ne.s32.totalorder (!%p1845_p10), %s1840_s24, 0 }
  0x64   : > { %332 = sbr.rel (%p1845_p10) target bundleno = 428 (0x1ac), region = 69  ;;  %s1057_s22 = sshll.u32 (!%p1845_p10), %s335_s11, 6 }
  0x65   : > { %s1283_s20 = smul.u32 (!%p1845_p10), 84, %s335_s11  ;;  %s342_s30 = scalar_lea.sflag (!%p1845_p10), [#allocation5], %s335_s11 }
  0x66   : > { %s1686_s4 = scalar_lea.vmem (!%p1845_p10), [#allocation4], %s1057_s22 }
  0x67   : > { %s1684_s27 = scalar_lea.vmem (!%p1845_p10), [#allocation3], %s1283_s20 }
  0x6b   : > { %1450 = dma.done.wait (%p1846_p0), %s342_s30, 1024  }
  0x6c   : > { %1452 = vsyncadd (%p1846_p0), %s342_s30, 4294966272  ;;  %p1847_p5 = scmp.ne.s32.totalorder %s1839_s23, 0 }
  0x6e   : > { %1454 = dma.done.wait (%p1847_p5), [#allocation7], 16  }
  0x6f   : > { %1456 = vsyncadd (%p1847_p5), [#allocation7], 4294967280  ;;  %p1059_p2 = scmp.ne.s32.totalorder %s1471_s15, 0 }
  0x70   : > { %v1485_v21 = vmov (!%p1059_p2), 0.0  }
  0x71   : > { %394 = sbr.rel (%p1059_p2) target bundleno = 124 (0x7c), region = 85  ;;  %395 = vst [vmem:[#allocation2] sm:$0xff] (!%p1059_p2), %v1485_v21  ;;  %396 = vst [vmem:[#allocation2 + $0x8] sm:$0xff] (!%p1059_p2), %v1485_v21 }
  0x72   : > { %397 = vst [vmem:[#allocation2 + $0x10] sm:$0xff] (!%p1059_p2), %v1485_v21  ;;  %398 = vst [vmem:[#allocation2 + $0x18] sm:$0xff] (!%p1059_p2), %v1485_v21 }
  0x73   : > { %399 = vst [vmem:[#allocation2 + $0x20] sm:$0xff] (!%p1059_p2), %v1485_v21  ;;  %400 = vst [vmem:[#allocation2 + $0x28] sm:$0xff] (!%p1059_p2), %v1485_v21 }
  0x74   : > { %401 = vst [vmem:[#allocation2 + $0x30] sm:$0xff] (!%p1059_p2), %v1485_v21  ;;  %402 = vst [vmem:[#allocation2 + $0x38] sm:$0xff] (!%p1059_p2), %v1485_v21 }
  0x75   : > { %403 = vst [vmem:[#allocation2 + $0x40] sm:$0xff] (!%p1059_p2), %v1485_v21  ;;  %404 = vst [vmem:[#allocation2 + $0x48] sm:$0xff] (!%p1059_p2), %v1485_v21 }
  0x76   : > { %405 = vst [vmem:[#allocation2 + $0x50] sm:$0xff] (!%p1059_p2), %v1485_v21  ;;  %406 = vst [vmem:[#allocation2 + $0x58] sm:$0xff] (!%p1059_p2), %v1485_v21 }
  0x77   : > { %407 = vst [vmem:[#allocation2 + $0x60] sm:$0xff] (!%p1059_p2), %v1485_v21  ;;  %408 = vst [vmem:[#allocation2 + $0x68] sm:$0xff] (!%p1059_p2), %v1485_v21 }
  0x78   : > { %409 = vst [vmem:[#allocation2 + $0x70] sm:$0xff] %v1485_v21  ;;  %410 = vst [vmem:[#allocation2 + $0x78] sm:$0xff] %v1485_v21 }
  0x79   : > { %411 = vst [vmem:[#allocation2 + $0x80] sm:$0xff] %v1485_v21  ;;  %412 = vst [vmem:[#allocation2 + $0x88] sm:$0xff] %v1485_v21 }
  0x7a   : > { %413 = vst [vmem:[#allocation2 + $0x90] sm:$0xff] %v1485_v21  ;;  %414 = vst [vmem:[#allocation2 + $0x98] sm:$0xff] %v1485_v21 }
  0x7b   : > { %415 = vst [vmem:[#allocation2 + $0xa0] sm:$0xff] %v1485_v21 }
  0x7c PF: > { %v1350_v22 = vld [vmem:[%s1686_s4] sm:$0xff]   ;;  %v1486_v23 = vmov 0.0   ;;  %v1351_v24 = vld [vmem:[%s1686_s4 + $0x8] sm:$0xff]   ;;  %vm1487_vm0 = vmmov 0   ;;  %v1352_v25 = vld [vmem:[%s1686_s4 + $0x10] sm:$0xff]   ;;  %p1079_p4 = scmp.ne.s32.totalorder %s1471_s15, 8 }
  0x7d   : > { %1206 = vmatprep.subr.bf16.mxu0 %v1486_v23  ;;  %1266 = vmatprep.subr.bf16.mxu1 %v1486_v23  ;;  %v1353_v26 = vld [vmem:[%s1686_s4 + $0x18] sm:$0xff]   ;;  %v1354_v27 = vld [vmem:[%s1686_s4 + $0x20] sm:$0xff]   ;;  %v1355_v28 = vld [vmem:[%s1686_s4 + $0x28] sm:$0xff]  }
  0x7e   : > { %1207 = vmatpush3.bf16.msra.mxu0 %v1350_v22  ;;  %1274 = vmatpush3.bf16.msra.mxu1 %v1350_v22  ;;  %v1356_v29 = vld [vmem:[%s1686_s4 + $0x30] sm:$0xff]   ;;  %v1357_v30 = vld [vmem:[%s1686_s4 + $0x38] sm:$0xff]   ;;  %v418_v58 = vld [vmem:[#allocation2 + $0x10] sm:$0xff] }
  0x7f   : > { %1208 = vmatprep.subr.bf16.mxu0 %v1486_v23  ;;  %1267 = vmatprep.subr.bf16.mxu1 %v1486_v23  ;;  %v1358_v31 = vld [vmem:[%s1684_s27] sm:$0xff]   ;;  %v1359_v32 = vld [vmem:[%s1684_s27 + $0x30] sm:$0xff]   ;;  %v1360_v33 = vld [vmem:[%s1684_s27 + $0x8] sm:$0xff]  }
  0x80   : > { %1222 = vmatprep.mubr.msk.bf16.mxu0 %vm1487_vm0, %v1486_v23  ;;  %1246 = vmatprep.mubr.msk.bf16.mxu1 %vm1487_vm0, %v1486_v23  ;;  %v1361_v34 = vld [vmem:[%s1684_s27 + $0x38] sm:$0xff]   ;;  %v1362_v35 = vld [vmem:[%s1684_s27 + $0x10] sm:$0xff]   ;;  %v1363_v36 = vld [vmem:[%s1684_s27 + $0x40] sm:$0xff]  }
  0x81   : > { %v1364_v37 = vld [vmem:[%s1684_s27 + $0x18] sm:$0xff]   ;;  %v1365_v38 = vld [vmem:[%s1684_s27 + $0x48] sm:$0xff]   ;;  %v1366_v39 = vld [vmem:[%s1684_s27 + $0x20] sm:$0xff]  }
  0x82   : > { %1209 = vmatpush3.bf16.msra.mxu0 %v1351_v24  ;;  %1275 = vmatpush3.bf16.msra.mxu1 %v1351_v24  ;;  %v1367_v40 = vld [vmem:[%s1684_s27 + $0x50] ss:$0 sps:$4 sm:$0xff]   ;;  %v1368_v41 = vld [vmem:[%s1684_s27 + $0x28] sm:$0xff]  }
  0x83   : > { %1210 = vmatprep.subr.bf16.mxu0 %v1486_v23  ;;  %1268 = vmatprep.subr.bf16.mxu1 %v1486_v23  ;;  %v416_v42 = vld [vmem:[#allocation2] sm:$0xff]  ;;  %v417_v45 = vld [vmem:[#allocation2 + $0x8] sm:$0xff]  ;;  %v430_v59 = vld [vmem:[#allocation2 + $0x70] sm:$0xff] }
  0x84   : > { %v428_v43 = vld [vmem:[#allocation2 + $0x60] sm:$0xff]  ;;  %v429_v47 = vld [vmem:[#allocation2 + $0x68] sm:$0xff]  ;;  %v419_v61 = vld [vmem:[#allocation2 + $0x18] sm:$0xff] }
  0x85   : > { %v431_v63 = vld [vmem:[#allocation2 + $0x78] sm:$0xff]  ;;  %v420_v10 = vld [vmem:[#allocation2 + $0x20] sm:$0xff]  ;;  %v421_v13 = vld [vmem:[#allocation2 + $0x28] sm:$0xff] }
  0x86   : > { %1211 = vmatpush3.bf16.msra.mxu0 %v1352_v25  ;;  %1276 = vmatpush3.bf16.msra.mxu1 %v1352_v25  ;;  %v432_v11 = vld [vmem:[#allocation2 + $0x80] sm:$0xff]  ;;  %v433_v15 = vld [vmem:[#allocation2 + $0x88] sm:$0xff] }
  0x87   : > { %1212 = vmatprep.subr.bf16.mxu0 %v1486_v23  ;;  %1269 = vmatprep.subr.bf16.mxu1 %v1486_v23 }
  0x8a   : > { %1213 = vmatpush3.bf16.msra.mxu0 %v1353_v26  ;;  %1277 = vmatpush3.bf16.msra.mxu1 %v1353_v26  ;;  %v422_v26 = vld [vmem:[#allocation2 + $0x30] sm:$0xff] }
  0x8b   : > { %1214 = vmatprep.subr.bf16.mxu0 %v1486_v23  ;;  %1270 = vmatprep.subr.bf16.mxu1 %v1486_v23 }
  0x8e   : > { %1215 = vmatpush3.bf16.msra.mxu0 %v1354_v27  ;;  %1278 = vmatpush3.bf16.msra.mxu1 %v1354_v27  ;;  %v434_v27 = vld [vmem:[#allocation2 + $0x90] sm:$0xff] }
  0x8f   : > { %1216 = vmatprep.subr.bf16.mxu0 %v1486_v23  ;;  %1271 = vmatprep.subr.bf16.mxu1 %v1486_v23 }
  0x92   : > { %1217 = vmatpush3.bf16.msra.mxu0 %v1355_v28  ;;  %1279 = vmatpush3.bf16.msra.mxu1 %v1355_v28 }
  0x93   : > { %1218 = vmatprep.subr.bf16.mxu0 %v1486_v23  ;;  %1272 = vmatprep.subr.bf16.mxu1 %v1486_v23 }
  0x96   : > { %1219 = vmatpush3.bf16.msra.mxu0 %v1356_v29  ;;  %1280 = vmatpush3.bf16.msra.mxu1 %v1356_v29  ;;  %v423_v29 = vld [vmem:[#allocation2 + $0x38] sm:$0xff] }
  0x97   : > { %1220 = vmatprep.subr.bf16.mxu0 %v1486_v23  ;;  %1273 = vmatprep.subr.bf16.mxu1 %v1486_v23 }
  0x9a   : > { %1221 = vmatpush3.bf16.msra.mxu0 %v1357_v30  ;;  %1281 = vmatpush3.bf16.msra.mxu1 %v1357_v30 }
  0x9d   : > { %1223 = vmatmul.mubr.bf16.vlgmr.msra.gmra.mrb[0].mxu0 %v1358_v31  ;;  %1247 = vmatmul.mubr.bf16.vlgmr.msra.gmra.mrb[0].mxu1 %v1359_v32  ;;  %v435_v31 = vld [vmem:[#allocation2 + $0x98] sm:$0xff] }
  0x9e   : > { %1226 = vmatprep.mubr.msk.bf16.mxu0 %vm1487_vm0, %v1486_v23  ;;  %1250 = vmatprep.mubr.msk.bf16.mxu1 %vm1487_vm0, %v1486_v23 }
  0xa5   : > { %1227 = vmatmul.mubr.bf16.gmra.mrb[4].mxu0 %v1360_v33  ;;  %1251 = vmatmul.mubr.bf16.gmra.mrb[4].mxu1 %v1361_v34 }
  0xa6   : > { %1230 = vmatprep.mubr.msk.bf16.mxu0 %vm1487_vm0, %v1486_v23  ;;  %1254 = vmatprep.mubr.msk.bf16.mxu1 %vm1487_vm0, %v1486_v23 }
  0xad   : > { %1231 = vmatmul.mubr.bf16.gmra.mrb[8].mxu0 %v1362_v35  ;;  %1255 = vmatmul.mubr.bf16.gmra.mrb[8].mxu1 %v1363_v36 }
  0xae   : > { %1234 = vmatprep.mubr.msk.bf16.mxu0 %vm1487_vm0, %v1486_v23  ;;  %1258 = vmatprep.mubr.msk.bf16.mxu1 %vm1487_vm0, %v1486_v23 }
  0xb5   : > { %1235 = vmatmul.mubr.bf16.gmra.mrb[12].mxu0 %v1364_v37  ;;  %1259 = vmatmul.mubr.bf16.gmra.mrb[12].mxu1 %v1365_v38 }
  0xb6   : > { %1238 = vmatprep.mubr.msk.bf16.mxu0 %vm1487_vm0, %v1486_v23  ;;  %1262 = vmatprep.mubr.msk.bf16.mxu1 %vm1487_vm0, %v1486_v23 }
  0xbd   : > { %1239 = vmatmul.mubr.bf16.gmra.mrb[16].mxu0 %v1366_v39  ;;  %1263 = vmatmul.mubr.bf16.gmra.mrb[16].mxu1 %v1367_v40 }
  0xbe   : > { %1242 = vmatprep.mubr.msk.bf16.mxu0 %vm1487_vm0, %v1486_v23 }
  0xc5   : > { %1243 = vmatmul.mubr.bf16.gmra.mrb[20].mxu0 %v1368_v41 }
 0x170   : > { %v620_v44 = vpop.f32.mrb[0].mxu0  ;;  %v668_v46 = vpop.f32.mrb[0].mxu1 }
 0x171   : > { %v706_v48 = vadd.f32 %v620_v44, %v416_v42  ;;  %v1224_v49 = vpop.f32.mrb[1].mxu0  ;;  %v718_v50 = vadd.f32 %v668_v46, %v428_v43  ;;  %v1248_v51 = vpop.f32.mrb[1].mxu1  ;;  %v424_v42 = vld [vmem:[#allocation2 + $0x40] sm:$0xff] }
 0x172   : > { %v623_v52 = vpop.f32.mrb[2].mxu0  ;;  %v671_v53 = vpop.f32.mrb[2].mxu1  ;;  %v436_v43 = vld [vmem:[#allocation2 + $0xa0] sm:$0xff] }
 0x173   : > { %727 = vst [vmem:[#allocation2] sm:$0xff] %v706_v48  ;;  %v707_v54 = vadd.f32 %v623_v52, %v417_v45  ;;  %v1225_v55 = vpop.f32.mrb[3].mxu0  ;;  %739 = vst [vmem:[#allocation2 + $0x60] sm:$0xff] %v718_v50  ;;  %v719_v56 = vadd.f32 %v671_v53, %v429_v47  ;;  %v1249_v57 = vpop.f32.mrb[3].mxu1  ;;  %v425_v45 = vld [vmem:[#allocation2 + $0x48] sm:$0xff] }
 0x175   : > { %728 = vst [vmem:[#allocation2 + $0x8] sm:$0xff] %v707_v54  ;;  %740 = vst [vmem:[#allocation2 + $0x68] sm:$0xff] %v719_v56  ;;  %v426_v56 = vld [vmem:[#allocation2 + $0x50] sm:$0xff] }
 0x178   : > { %v628_v60 = vpop.f32.mrb[4].mxu0  ;;  %v676_v62 = vpop.f32.mrb[4].mxu1 }
 0x179   : > { %v708_v0 = vadd.f32 %v628_v60, %v418_v58  ;;  %v1228_v1 = vpop.f32.mrb[5].mxu0  ;;  %v720_v2 = vadd.f32 %v676_v62, %v430_v59  ;;  %v1252_v3 = vpop.f32.mrb[5].mxu1  ;;  %v427_v58 = vld [vmem:[#allocation2 + $0x58] sm:$0xff] }
 0x17a   : > { %v631_v4 = vpop.f32.mrb[6].mxu0  ;;  %v679_v5 = vpop.f32.mrb[6].mxu1 }
 0x17b   : > { %729 = vst [vmem:[#allocation2 + $0x10] sm:$0xff] %v708_v0  ;;  %v709_v6 = vadd.f32 %v631_v4, %v419_v61  ;;  %v1229_v7 = vpop.f32.mrb[7].mxu0  ;;  %741 = vst [vmem:[#allocation2 + $0x70] sm:$0xff] %v720_v2  ;;  %v721_v8 = vadd.f32 %v679_v5, %v431_v63  ;;  %v1253_v9 = vpop.f32.mrb[7].mxu1  ;;  %v752_v0 = vld [vmem:[#allocation2] sm:$0xff] (!%p1079_p4) }
 0x17c   : > { %v753_v1 = vld [vmem:[#allocation2 + $0x8] sm:$0xff] (!%p1079_p4)  ;;  %v1755_v2 = vld [vmem:[#allocation6] ss:$0 sm:$0xff] (!%p1079_p4) }
 0x17d   : > { %730 = vst [vmem:[#allocation2 + $0x18] sm:$0xff] %v709_v6  ;;  %742 = vst [vmem:[#allocation2 + $0x78] sm:$0xff] %v721_v8  ;;  %v780_v3 = vadd.f32 (!%p1079_p4), %v1755_v2, %v752_v0  ;;  %v781_v4 = vadd.f32 (!%p1079_p4), %v1755_v2, %v753_v1 }
 0x180   : > { %v636_v12 = vpop.f32.mrb[8].mxu0  ;;  %v684_v14 = vpop.f32.mrb[8].mxu1 }
 0x181   : > { %v710_v16 = vadd.f32 %v636_v12, %v420_v10  ;;  %v1232_v17 = vpop.f32.mrb[9].mxu0  ;;  %v722_v18 = vadd.f32 %v684_v14, %v432_v11  ;;  %v1256_v19 = vpop.f32.mrb[9].mxu1  ;;  %v801_v14 = vmax.f32 (!%p1079_p4), %v780_v3, 0.0 }
 0x182   : > { %v639_v20 = vpop.f32.mrb[10].mxu0  ;;  %v687_v21 = vpop.f32.mrb[10].mxu1  ;;  %v754_v5 = vld [vmem:[#allocation2 + $0x10] sm:$0xff] (!%p1079_p4) }
 0x183   : > { %731 = vst [vmem:[#allocation2 + $0x20] sm:$0xff] %v710_v16  ;;  %v711_v22 = vadd.f32 %v639_v20, %v421_v13  ;;  %v1233_v23 = vpop.f32.mrb[11].mxu0  ;;  %743 = vst [vmem:[#allocation2 + $0x80] sm:$0xff] %v722_v18  ;;  %v723_v24 = vadd.f32 %v687_v21, %v433_v15  ;;  %v1257_v25 = vpop.f32.mrb[11].mxu1  ;;  %v782_v8 = vadd.f32 (!%p1079_p4), %v1755_v2, %v754_v5  ;;  %v802_v15 = vmax.f32 (!%p1079_p4), %v781_v4, 0.0 }
 0x184   : > { %v755_v6 = vld [vmem:[#allocation2 + $0x18] sm:$0xff] (!%p1079_p4) }
 0x185   : > { %732 = vst [vmem:[#allocation2 + $0x28] sm:$0xff] %v711_v22  ;;  %744 = vst [vmem:[#allocation2 + $0x88] sm:$0xff] %v723_v24  ;;  %v783_v9 = vadd.f32 (!%p1079_p4), %v1755_v2, %v755_v6  ;;  %v803_v21 = vmax.f32 (!%p1079_p4), %v782_v8, 0.0 }
 0x187   : > { %v804_v22 = vmax.f32 (!%p1079_p4), %v783_v9, 0.0 }
 0x188   : > { %v644_v28 = vpop.f32.mrb[12].mxu0  ;;  %v692_v30 = vpop.f32.mrb[12].mxu1 }
 0x189   : > { %v712_v32 = vadd.f32 %v644_v28, %v422_v26  ;;  %v1236_v33 = vpop.f32.mrb[13].mxu0  ;;  %v724_v34 = vadd.f32 %v692_v30, %v434_v27  ;;  %v1260_v35 = vpop.f32.mrb[13].mxu1  ;;  %v764_v26 = vld [vmem:[#allocation2 + $0x60] sm:$0xff] (!%p1079_p4)  ;;  %v1131_v27 = vpack.c.bf16 (!%p1079_p4), %v802_v15, %v801_v14 }
 0x18a   : > { %v647_v36 = vpop.f32.mrb[14].mxu0  ;;  %v695_v37 = vpop.f32.mrb[14].mxu1  ;;  %v756_v7 = vld [vmem:[#allocation2 + $0x20] sm:$0xff] (!%p1079_p4) }
 0x18b   : > { %733 = vst [vmem:[#allocation2 + $0x30] sm:$0xff] %v712_v32  ;;  %v713_v38 = vadd.f32 %v647_v36, %v423_v29  ;;  %v1237_v39 = vpop.f32.mrb[15].mxu0  ;;  %745 = vst [vmem:[#allocation2 + $0x90] sm:$0xff] %v724_v34  ;;  %v725_v40 = vadd.f32 %v695_v37, %v435_v31  ;;  %v1261_v41 = vpop.f32.mrb[15].mxu1  ;;  %v784_v11 = vadd.f32 (!%p1079_p4), %v1755_v2, %v756_v7  ;;  %v765_v31 = vld [vmem:[#allocation2 + $0x68] sm:$0xff] (!%p1079_p4)  ;;  %v766_v36 = vld [vmem:[#allocation2 + $0x70] sm:$0xff] (!%p1079_p4) }
 0x18c   : > { %v757_v10 = vld [vmem:[#allocation2 + $0x28] sm:$0xff] (!%p1079_p4)  ;;  %v1136_v32 = vpack.c.bf16 (!%p1079_p4), %v804_v22, %v803_v21  ;;  %v767_v37 = vld [vmem:[#allocation2 + $0x78] sm:$0xff] (!%p1079_p4)  ;;  %1132 = vst [vmem:[%s1832_s3] sm:$0xff] (!%p1079_p4), %v1131_v27   ;;  %v792_v41 = vadd.f32 (!%p1079_p4), %v1755_v2, %v764_v26 }
 0x18d   : > { %734 = vst [vmem:[#allocation2 + $0x38] sm:$0xff] %v713_v38  ;;  %746 = vst [vmem:[#allocation2 + $0x98] sm:$0xff] %v725_v40  ;;  %v785_v16 = vadd.f32 (!%p1079_p4), %v1755_v2, %v757_v10  ;;  %v805_v23 = vmax.f32 (!%p1079_p4), %v784_v11, 0.0 }
 0x18e   : > { %1178 = vst [vmem:[%s1832_s3 + $0x8] sm:$0xff] (!%p1079_p4), %v1136_v32  }
 0x18f   : > { %v806_v28 = vmax.f32 (!%p1079_p4), %v785_v16, 0.0 }
 0x190   : > { %v652_v44 = vpop.f32.mrb[16].mxu0  ;;  %v700_v46 = vpop.f32.mrb[16].mxu1 }
 0x191   : > { %v714_v47 = vadd.f32 %v652_v44, %v424_v42  ;;  %v1240_v48 = vpop.f32.mrb[17].mxu0  ;;  %v726_v49 = vadd.f32 %v700_v46, %v436_v43  ;;  %v1264_v50 = vpop.f32.mrb[17].mxu1  ;;  %v1141_v38 = vpack.c.bf16 (!%p1079_p4), %v806_v28, %v805_v23  ;;  %v768_v42 = vld [vmem:[#allocation2 + $0x80] sm:$0xff] (!%p1079_p4)  ;;  %v769_v43 = vld [vmem:[#allocation2 + $0x88] sm:$0xff] (!%p1079_p4) }
 0x192   : > { %v655_v51 = vpop.f32.mrb[18].mxu0  ;;  %v703_v52 = vpop.f32.mrb[18].mxu1  ;;  %v758_v12 = vld [vmem:[#allocation2 + $0x30] sm:$0xff] (!%p1079_p4)  ;;  %v813_v50 = vmax.f32 (!%p1079_p4), %v792_v41, 0.0 }
 0x193   : > { %735 = vst [vmem:[#allocation2 + $0x40] sm:$0xff] %v714_v47  ;;  %v715_v53 = vadd.f32 %v655_v51, %v425_v45  ;;  %v1241_v54 = vpop.f32.mrb[19].mxu0  ;;  %747 = vst [vmem:[#allocation2 + $0xa0] sm:$0xff] %v726_v49  ;;  %v1265_v55 = vpop.f32.mrb[19].mxu1  ;;  %v786_v17 = vadd.f32 (!%p1079_p4), %v1755_v2, %v758_v12  ;;  %v793_v47 = vadd.f32 (!%p1079_p4), %v1755_v2, %v765_v31  ;;  %v770_v48 = vld [vmem:[#allocation2 + $0x90] sm:$0xff] (!%p1079_p4) }
 0x194   : > { %v759_v13 = vld [vmem:[#allocation2 + $0x38] sm:$0xff] (!%p1079_p4)  ;;  %1179 = vst [vmem:[%s1832_s3 + $0x10] sm:$0xff] (!%p1079_p4), %v1141_v38   ;;  %v794_v51 = vadd.f32 (!%p1079_p4), %v1755_v2, %v766_v36  ;;  %v795_v52 = vadd.f32 (!%p1079_p4), %v1755_v2, %v767_v37 }
 0x195   : > { %736 = vst [vmem:[#allocation2 + $0x48] sm:$0xff] %v715_v53  ;;  %v787_v24 = vadd.f32 (!%p1079_p4), %v1755_v2, %v759_v13  ;;  %v807_v29 = vmax.f32 (!%p1079_p4), %v786_v17, 0.0  ;;  %v771_v53 = vld [vmem:[#allocation2 + $0x98] sm:$0xff] (!%p1079_p4)  ;;  %v814_v55 = vmax.f32 (!%p1079_p4), %v793_v47, 0.0 }
 0x196   : > { %v799_v3 = vadd.f32 (!%p1079_p4), %v1755_v2, %v771_v53 }
 0x197   : > { %751 = sbr.rel (%p1079_p4) target bundleno = 428 (0x1ac), region = 89  ;;  %v808_v33 = vmax.f32 (!%p1079_p4), %v787_v24, 0.0 }
 0x198   : > { %v660_v57 = vpop.f32.mrb[20].mxu0  ;;  %v820_v8 = vmax.f32 (!%p1079_p4), %v799_v3, 0.0 }
 0x199   : > { %v716_v59 = vadd.f32 %v660_v57, %v426_v56  ;;  %v1244_v60 = vpop.f32.mrb[21].mxu0  ;;  %v1146_v44 = vpack.c.bf16 (!%p1079_p4), %v808_v33, %v807_v29  ;;  %v796_v56 = vadd.f32 (!%p1079_p4), %v1755_v2, %v768_v42  ;;  %v797_v57 = vadd.f32 (!%p1079_p4), %v1755_v2, %v769_v43 }
 0x19a   : > { %v663_v61 = vpop.f32.mrb[22].mxu0  ;;  %v760_v18 = vld [vmem:[#allocation2 + $0x40] sm:$0xff] (!%p1079_p4)  ;;  %v815_v60 = vmax.f32 (!%p1079_p4), %v794_v51, 0.0 }
 0x19b   : > { %737 = vst [vmem:[#allocation2 + $0x50] sm:$0xff] %v716_v59  ;;  %v717_v62 = vadd.f32 %v663_v61, %v427_v58  ;;  %v1245_v63 = vpop.f32.mrb[23].mxu0  ;;  %v788_v30 = vadd.f32 (!%p1079_p4), %v1755_v2, %v760_v18  ;;  %1180 = vst [vmem:[%s1832_s3 + $0x18] sm:$0xff] (!%p1079_p4), %v1146_v44   ;;  %v772_v58 = vld [vmem:[#allocation2 + $0xa0] sm:$0xff] (!%p1079_p4)  ;;  %v816_v61 = vmax.f32 (!%p1079_p4), %v795_v52, 0.0  ;;  %v817_v0 = vmax.f32 (!%p1079_p4), %v796_v56, 0.0 }
 0x19c   : > { %v761_v19 = vld [vmem:[#allocation2 + $0x48] sm:$0xff] (!%p1079_p4)  ;;  %v1161_v63 = vpack.c.bf16 (!%p1079_p4), %v814_v55, %v813_v50  ;;  %v818_v1 = vmax.f32 (!%p1079_p4), %v797_v57, 0.0  ;;  %v800_v6 = vadd.f32 (!%p1079_p4), %v1755_v2, %v772_v58 }
 0x19d   : > { %738 = vst [vmem:[#allocation2 + $0x58] sm:$0xff] %v717_v62  ;;  %v789_v34 = vadd.f32 (!%p1079_p4), %v1755_v2, %v761_v19  ;;  %v809_v39 = vmax.f32 (!%p1079_p4), %v788_v30, 0.0  ;;  %v798_v62 = vadd.f32 (!%p1079_p4), %v1755_v2, %v770_v48  ;;  %v1166_v4 = vpack.c.bf16 (!%p1079_p4), %v816_v61, %v815_v60 }
 0x19e   : > { %1183 = vst [vmem:[%s1832_s3 + $0x30] sm:$0xff] %v1161_v63   ;;  %v1171_v7 = vpack.c.bf16 %v818_v1, %v817_v0  ;;  %v821_v9 = vmax.f32 %v800_v6, 0.0 }
 0x19f   : > { %v810_v45 = vmax.f32 %v789_v34, 0.0  ;;  %v819_v5 = vmax.f32 %v798_v62, 0.0  ;;  %1184 = vst [vmem:[%s1832_s3 + $0x38] sm:$0xff] %v1166_v4  }
 0x1a0   : > { %1185 = vst [vmem:[%s1832_s3 + $0x40] sm:$0xff] %v1171_v7   ;;  %v1127_v11 = vpack.c.bf16 %v821_v9, %v821_v9 }
 0x1a1   : > { %v1151_v54 = vpack.c.bf16 %v810_v45, %v809_v39  ;;  %v1176_v10 = vpack.c.bf16 %v820_v8, %v819_v5 }
 0x1a2   : > { %v762_v20 = vld [vmem:[#allocation2 + $0x50] sm:$0xff]  ;;  %927 = vst [vmem:[%s1832_s3 + $0x50] sm:$0xf] %v1127_v11 }
 0x1a3   : > { %v790_v35 = vadd.f32 %v1755_v2, %v762_v20  ;;  %1181 = vst [vmem:[%s1832_s3 + $0x20] sm:$0xff] %v1151_v54   ;;  %1186 = vst [vmem:[%s1832_s3 + $0x48] sm:$0xff] %v1176_v10  }
 0x1a4   : > { %v763_v25 = vld [vmem:[#allocation2 + $0x58] sm:$0xff] }
 0x1a5   : > { %v791_v40 = vadd.f32 %v1755_v2, %v763_v25  ;;  %v811_v46 = vmax.f32 %v790_v35, 0.0 }
 0x1a7   : > { %v812_v49 = vmax.f32 %v791_v40, 0.0 }
 0x1a9   : > { %v1156_v59 = vpack.c.bf16 %v812_v49, %v811_v46 }
 0x1ab   : > { %1182 = vst [vmem:[%s1832_s3 + $0x28] sm:$0xff] %v1156_v59  }
 0x1ac PF: > { %s17_s17 = sadd.s32 1, %s1479_s17   ;;  %s1848_s12 = smov %s1463_s13 }
 0x1ad   : > { %p14_p6 = scmp.ge.s32.totalorder %s17_s17, 11   ;;  %s1849_s13 = smov %s1467_s14 }
 0x1ae   : > { %s1850_s14 = smov %s1564_s25  ;;  %s1851_s15 = smov %s1475_s16 }
 0x1af   : > { %s1852_s16 = smov %s1854_s19  ;;  %16 = sbr.rel (!%p14_p6) target bundleno = 5 (0x5), region = 134 }
 0x1b6   :  { %956 = vsyncpa [#allocation5], 1 }
 0x1b7   :  { %958 = vsyncpa [#allocation5 + $0x1], 1 }
 0x1b8   :  { %959 = vsyncpa [#allocation7], 1 }

// kernel: proto_cnn_forward.14
= control target key start
LH: loop header
LB: loop body
LE: loop exit
PB: predicated region body
PF: predicated region fallthrough
CT: control target
= control target key end

     0   :  { %s253_s6 = smov 0   ;;  %s280_s0 = inlined_call_operand.vmem [shape: bf16[2,3,2,3,64], index: 0, kind: input, shape index: {}]   ;;  %s281_s1 = inlined_call_operand.vmem [shape: bf16[2,3,3,32], index: 1, kind: output, shape index: {}]  }
   0x1 LB: > { %s212_s7 = sadd.s32 4294967295, %s239_s6   ;;  %p216_p0 = scmp.ge.s32.totalorder %s239_s6, 1  ;;  %s239_s6 = sphi %s253_s6, %s11_s6  }
   0x2   : > { %p87_p1 = scmp.lt.s32.totalorder %s239_s6, 3 }
   0x4   : > { %p88_p2 = pnand %p216_p0, %p87_p1 }
   0x5   : > { %p107_p3 = scmp.lt.s32.totalorder (!%p88_p2), %s212_s7, 1  ;;  %s241_s12 = smov (!%p88_p2), 96   ;;  %vm145_vm0 = vcmask (!%p88_p2), 254976   ;;  %vm146_vm1 = vsmask.f32 (!%p88_p2), 1280  ;;  %v242_v15 = vmov (!%p88_p2), 0  }
   0x6   : > { %91 = sbr.rel (%p88_p2) target bundleno = 145 (0x91), region = 24  ;;  %vm267_vm2 = vmand (!%p88_p2), %vm145_vm0, %vm146_vm1 }
   0xd   : > { %s285_s7 = smov (!%p107_p3, %s212_s7), 1 }
   0xe   : > { %s221_s8 = smul.u32 12, %s285_s7 }
   0xf   : > { %s222_s13 = smul.u32 6, %s285_s7 }
  0x10   : > { %s111_s11 = scalar_lea.vmem %s280_s0, %s221_s8 }
  0x11   : > { %v118_v0 = vld [vmem:[%s111_s11] sm:$0x3]  ;;  %v119_v1 = vld [vmem:[%s111_s11 + $0x2] sm:$0x3]  ;;  %v122_v2 = vld [vmem:[%s111_s11 + $0x8] sm:$0x3]  ;;  %s116_s16 = scalar_lea.vmem %s281_s1, %s222_s13 }
  0x12   : > { %v124_v3 = vmax.bf16 %v119_v1, %v118_v0  ;;  %v123_v4 = vld [vmem:[%s111_s11 + $0xa] sm:$0x3]  ;;  %v120_v5 = vld [vmem:[%s111_s11 + $0x4] sm:$0x3]  ;;  %v121_v6 = vld [vmem:[%s111_s11 + $0x6] sm:$0x3] }
  0x13   : > { %v126_v7 = vmax.bf16 %v123_v4, %v122_v2  ;;  %v125_v8 = vmax.bf16 %v121_v6, %v120_v5  ;;  %v148_v13 = vld [vmem:[%s116_s16] sm:$0x3]  ;;  %v154_v17 = vld [vmem:[%s116_s16 + $0x4] sm:$0x3]  ;;  %v151_v23 = vld [vmem:[%s116_s16 + $0x2] sm:$0x3] }
  0x14   : > { %130 = vrot.lane.b32.xlu0 %v124_v3, %s241_s12 }
  0x15   : > { %134 = vrot.lane.b32.xlu1 %v126_v7, %s241_s12 }
  0x18   : > { %132 = vrot.lane.b32.xlu0 %v125_v8, %s241_s12 }
  0x86   : > { %v131_v9 = vpop.permute.xlu0 %130 }
  0x87   : > { %v139_v10 = vmax.bf16 %v131_v9, %v124_v3  ;;  %v135_v11 = vpop.permute.xlu1 %134 }
  0x88   : > { %v141_v14 = vmax.bf16 %v135_v11, %v126_v7 }
  0x89   : > { %v142_v16 = vmax.bf16 %v242_v15, %v139_v10 }
  0x8a   : > { %v144_v18 = vmax.bf16 %v242_v15, %v141_v14  ;;  %v133_v19 = vpop.permute.xlu0 %132 }
  0x8b   : > { %v149_v20 = vsel %vm267_vm2, %v142_v16, %v148_v13  ;;  %v140_v21 = vmax.bf16 %v133_v19, %v125_v8 }
  0x8c   : > { %150 = vst [vmem:[%s116_s16] sm:$0x3] %v149_v20  ;;  %v155_v22 = vsel %vm267_vm2, %v144_v18, %v154_v17 }
  0x8d   : > { %156 = vst [vmem:[%s116_s16 + $0x4] sm:$0x3] %v155_v22  ;;  %v143_v24 = vmax.bf16 %v242_v15, %v140_v21 }
  0x8f   : > { %v152_v25 = vsel %vm267_vm2, %v143_v24, %v151_v23 }
  0x90   : > { %153 = vst [vmem:[%s116_s16 + $0x2] sm:$0x3] %v152_v25 }
  0x91 PF: > { %s11_s6 = sadd.s32 1, %s239_s6  }
  0x92   : > { %p8_p4 = scmp.ge.s32.totalorder %s11_s6, 4  }
  0x94   :  { %10 = sbr.rel (!%p8_p4) target bundleno = 1 (0x1), region = 54 }

// kernel: proto_cnn_forward.13
= control target key start
LH: loop header
LB: loop body
LE: loop exit
PB: predicated region body
PF: predicated region fallthrough
CT: control target
= control target key end

     0   :  { %s1105_s12 = smov 0   ;;  %s1107_s13 = smov 0   ;;  %s1222_s0 = inlined_call_operand.vmem [shape: bf16[104,1152], index: 0, kind: input, shape index: {}]   ;;  %s1223_s1 = inlined_call_operand.vmem [shape: bf16[1152,128], index: 1, kind: input, shape index: {}]   ;;  %s1224_s2 = inlined_call_operand.vmem [shape: f32[1,128], index: 2, kind: input, shape index: {}]   ;;  %s1225_s3 = inlined_call_operand.vmem [shape: bf16[104,128], index: 3, kind: output, shape index: {}]  }
   0x1   :  { %s1109_s14 = smov 0   ;;  %s1111_s15 = smov 0  }
   0x2   :  { %s1113_s16 = smov 0  }
   0x3 LB: > { %s25_s17 = sadd.s32 1, %s1076_s15  ;;  %p48_p1 = scmp.ne.s32.totalorder %s1068_s13, %s1064_s12  ;;  %s1080_s16 = sphi %s1113_s16, %s13_s16   ;;  %s1076_s15 = sphi %s1111_s15, %s1229_s15   ;;  %s1072_s14 = sphi %s1109_s14, %s1228_s14   ;;  %s1068_s13 = sphi %s1107_s13, %s1227_s13   ;;  %s1064_s12 = sphi %s1105_s12, %s1226_s12  }
   0x4   : > { %p26_p0 = scmp.ge.s32.totalorder %s25_s17, 9  ;;  %p49_p2 = scmp.eq.s32.totalorder %s1080_s16, 0 }
   0x5   : > { %s41_s19 = sadd.s32 1, %s1068_s13  ;;  %p819_p5 = scmp.ge.s32.totalorder %s1080_s16, 9 }
   0x6   : > { %s1231_s17 = smov (%p26_p0, %s25_s17), 0  ;;  %p50_p3 = por %p49_p2, %p48_p1 }
   0x7   : > { %s37_s18 = ssub.s32 %s1076_s15, %s1231_s17  ;;  %162 = sbr.rel (%p819_p5) target bundleno = 27 (0x1b), region = 20 }
   0x8   : > { %p39_p4 = scmp.eq.s32.totalorder %s37_s18, 0 }
   0xa   : > { %s1140_s20 = scalar_select %p39_p4, %s1068_s13, %s41_s19  }
   0xe   : > { %165 = sbr.rel (!%p50_p3) target bundleno = 27 (0x1b), region = 24  ;;  %s167_s21 = sand.u32 (%p50_p3), 1, %s1068_s13  }
   0xf   : > { %s820_s22 = sshll.u32 (%p50_p3), %s1076_s15, 2  ;;  %s982_s23 = smul.u32 (%p50_p3), 52, %s167_s21 }
  0x10   : > { %s174_s26 = scalar_lea.vmem (%p50_p3), %s1222_s0, %s820_s22 }
  0x11   : > { %v190_v0 = vld [vmem:[%s174_s26] sm:$0xf] (%p50_p3)  ;;  %v192_v1 = vld [vmem:[%s174_s26 + $0x24] sm:$0xf] (%p50_p3)  ;;  %v194_v2 = vld [vmem:[%s174_s26 + $0x48] sm:$0xf] (%p50_p3) }
  0x12   : > { %v196_v3 = vld [vmem:[%s174_s26 + $0x6c] sm:$0xf] (%p50_p3)  ;;  %v198_v4 = vld [vmem:[%s174_s26 + $0x90] sm:$0xf] (%p50_p3)  ;;  %s169_s27 = scalar_lea.vmem (%p50_p3), [#allocation3], %s982_s23 }
  0x13   : > { %191 = vst [vmem:[%s169_s27] sm:$0xf] (%p50_p3), %v190_v0  ;;  %193 = vst [vmem:[%s169_s27 + $0x4] sm:$0xf] (%p50_p3), %v192_v1  ;;  %v200_v5 = vld [vmem:[%s174_s26 + $0xb4] sm:$0xf] (%p50_p3) }
  0x14   : > { %195 = vst [vmem:[%s169_s27 + $0x8] sm:$0xf] (%p50_p3), %v194_v2  ;;  %197 = vst [vmem:[%s169_s27 + $0xc] sm:$0xf] (%p50_p3), %v196_v3  ;;  %v202_v6 = vld [vmem:[%s174_s26 + $0xd8] sm:$0xf] (%p50_p3) }
  0x15   : > { %199 = vst [vmem:[%s169_s27 + $0x10] sm:$0xf] %v198_v4  ;;  %v204_v7 = vld [vmem:[%s174_s26 + $0xfc] sm:$0xf]  ;;  %201 = vst [vmem:[%s169_s27 + $0x14] sm:$0xf] %v200_v5 }
  0x16   : > { %203 = vst [vmem:[%s169_s27 + $0x18] sm:$0xf] %v202_v6  ;;  %205 = vst [vmem:[%s169_s27 + $0x1c] sm:$0xf] %v204_v7  ;;  %v206_v8 = vld [vmem:[%s174_s26 + $0x120] sm:$0xf] }
  0x17   : > { %v208_v9 = vld [vmem:[%s174_s26 + $0x144] sm:$0xf]  ;;  %v210_v10 = vld [vmem:[%s174_s26 + $0x168] sm:$0xf]  ;;  %207 = vst [vmem:[%s169_s27 + $0x20] sm:$0xf] %v206_v8 }
  0x18   : > { %209 = vst [vmem:[%s169_s27 + $0x24] sm:$0xf] %v208_v9  ;;  %211 = vst [vmem:[%s169_s27 + $0x28] sm:$0xf] %v210_v10  ;;  %v212_v11 = vld [vmem:[%s174_s26 + $0x18c] sm:$0xf] }
  0x19   : > { %v214_v12 = vld [vmem:[%s174_s26 + $0x1b0] sm:$0xf]  ;;  %213 = vst [vmem:[%s169_s27 + $0x2c] sm:$0xf] %v212_v11 }
  0x1a   : > { %215 = vst [vmem:[%s169_s27 + $0x30] sm:$0xf] %v214_v12 }
  0x1b PF: > { %p821_p6 = scmp.ge.s32.totalorder %s1080_s16, 1  ;;  %p275_p7 = scmp.lt.s32.totalorder %s1080_s16, 10 }
  0x1d   : > { %p276_p8 = pnand %p821_p6, %p275_p7 }
  0x1e   : > { %s282_s28 = sand.u32 (!%p276_p8), 1, %s1064_s12   ;;  %s822_s29 = sshll.u32 (!%p276_p8), %s1072_s14, 4 }
  0x1f   : > { %279 = sbr.rel (%p276_p8) target bundleno = 333 (0x14d), region = 69  ;;  %p321_p9 = scmp.lt.s32.totalorder (!%p276_p8), %s822_s29, 143 }
  0x20   : > { %s983_s30 = smul.u32 (!%p276_p8), 52, %s282_s28  ;;  %p824_p10 = scmp.ne.s32.totalorder (!%p276_p8), %s1072_s14, 0 }
  0x22   : > { %s1157_s8 = scalar_lea.vmem (!%p276_p8), [#allocation3], %s983_s30 }
  0x26   : > { %s1233_s29 = smov (!%p321_p9, %s822_s29), 143  ;;  %345 = sbr.rel (%p824_p10) target bundleno = 47 (0x2f), region = 77 }
  0x27   : > { %s823_s4 = sshll.u32 %s1233_s29, 2  ;;  %v1082_v13 = vmov (!%p824_p10), 0.0  }
  0x28   : > { %s1155_s7 = scalar_lea.vmem %s1223_s1, %s823_s4  ;;  %346 = vst [vmem:[#allocation2] sm:$0xff] (!%p824_p10), %v1082_v13  ;;  %347 = vst [vmem:[#allocation2 + $0x8] sm:$0xff] (!%p824_p10), %v1082_v13 }
  0x29   : > { %348 = vst [vmem:[#allocation2 + $0x10] sm:$0xff] (!%p824_p10), %v1082_v13  ;;  %349 = vst [vmem:[#allocation2 + $0x18] sm:$0xff] (!%p824_p10), %v1082_v13 }
  0x2a   : > { %350 = vst [vmem:[#allocation2 + $0x20] sm:$0xff] (!%p824_p10), %v1082_v13  ;;  %351 = vst [vmem:[#allocation2 + $0x28] sm:$0xff] (!%p824_p10), %v1082_v13 }
  0x2b   : > { %352 = vst [vmem:[#allocation2 + $0x30] sm:$0xff] (!%p824_p10), %v1082_v13  ;;  %353 = vst [vmem:[#allocation2 + $0x38] sm:$0xff] (!%p824_p10), %v1082_v13 }
  0x2c   : > { %354 = vst [vmem:[#allocation2 + $0x40] sm:$0xff] (!%p824_p10), %v1082_v13  ;;  %355 = vst [vmem:[#allocation2 + $0x48] sm:$0xff] (!%p824_p10), %v1082_v13 }
  0x2d   : > { %356 = vst [vmem:[#allocation2 + $0x50] sm:$0xff] %v1082_v13  ;;  %357 = vst [vmem:[#allocation2 + $0x58] sm:$0xff] %v1082_v13 }
  0x2e   : > { %358 = vst [vmem:[#allocation2 + $0x60] sm:$0xff] %v1082_v13 }
  0x2f PF: > { %v1027_v14 = vld [vmem:[%s1155_s7] sm:$0xff]   ;;  %v1083_v15 = vmov 0.0   ;;  %v1028_v16 = vld [vmem:[%s1155_s7 + $0x8] sm:$0xff]   ;;  %vm1084_vm0 = vmmov 0   ;;  %v1029_v17 = vld [vmem:[%s1155_s7 + $0x10] sm:$0xff]   ;;  %p840_p11 = scmp.ne.s32.totalorder %s1072_s14, 8 }
  0x30   : > { %922 = vmatprep.subr.bf16.mxu0 %v1083_v15  ;;  %966 = vmatprep.subr.bf16.mxu1 %v1083_v15  ;;  %v1030_v18 = vld [vmem:[%s1155_s7 + $0x18] sm:$0xff]   ;;  %v1031_v19 = vld [vmem:[%s1155_s7 + $0x20] sm:$0xff]   ;;  %v1032_v20 = vld [vmem:[%s1155_s7 + $0x28] sm:$0xff]  }
  0x31   : > { %923 = vmatpush3.bf16.msra.mxu0 %v1027_v14  ;;  %974 = vmatpush3.bf16.msra.mxu1 %v1027_v14  ;;  %v1033_v21 = vld [vmem:[%s1155_s7 + $0x30] sm:$0xff]   ;;  %v1034_v22 = vld [vmem:[%s1155_s7 + $0x38] sm:$0xff]   ;;  %v359_v30 = vld [vmem:[#allocation2] sm:$0xff] }
  0x32   : > { %924 = vmatprep.subr.bf16.mxu0 %v1083_v15  ;;  %967 = vmatprep.subr.bf16.mxu1 %v1083_v15  ;;  %v1035_v23 = vld [vmem:[%s1157_s8] sm:$0xff]   ;;  %v1037_v25 = vld [vmem:[%s1157_s8 + $0x8] sm:$0xff]   ;;  %v1039_v27 = vld [vmem:[%s1157_s8 + $0x10] sm:$0xff]  }
  0x33   : > { %938 = vmatprep.mubr.msk.bf16.mxu0 %vm1084_vm0, %v1083_v15  ;;  %954 = vmatprep.mubr.msk.bf16.mxu1 %vm1084_vm0, %v1083_v15  ;;  %v1036_v24 = vld [vmem:[%s1157_s8 + $0x20] sm:$0xff]   ;;  %v1038_v26 = vld [vmem:[%s1157_s8 + $0x28] sm:$0xff]   ;;  %v1040_v28 = vld [vmem:[%s1157_s8 + $0x30] ss:$0 sps:$4 sm:$0xff]  }
  0x34   : > { %v1041_v29 = vld [vmem:[%s1157_s8 + $0x18] sm:$0xff]   ;;  %v360_v33 = vld [vmem:[#allocation2 + $0x8] sm:$0xff] }
  0x35   : > { %925 = vmatpush3.bf16.msra.mxu0 %v1028_v16  ;;  %975 = vmatpush3.bf16.msra.mxu1 %v1028_v16  ;;  %v367_v31 = vld [vmem:[#allocation2 + $0x40] sm:$0xff]  ;;  %v368_v35 = vld [vmem:[#allocation2 + $0x48] sm:$0xff]  ;;  %v361_v46 = vld [vmem:[#allocation2 + $0x10] sm:$0xff] }
  0x36   : > { %926 = vmatprep.subr.bf16.mxu0 %v1083_v15  ;;  %968 = vmatprep.subr.bf16.mxu1 %v1083_v15  ;;  %v369_v47 = vld [vmem:[#allocation2 + $0x50] sm:$0xff]  ;;  %v362_v49 = vld [vmem:[#allocation2 + $0x18] sm:$0xff]  ;;  %v363_v62 = vld [vmem:[#allocation2 + $0x20] sm:$0xff] }
  0x37   : > { %v370_v51 = vld [vmem:[#allocation2 + $0x58] sm:$0xff]  ;;  %v371_v63 = vld [vmem:[#allocation2 + $0x60] sm:$0xff]  ;;  %v364_v1 = vld [vmem:[#allocation2 + $0x28] sm:$0xff] }
  0x38   : > { %v365_v12 = vld [vmem:[#allocation2 + $0x30] sm:$0xff]  ;;  %v366_v14 = vld [vmem:[#allocation2 + $0x38] sm:$0xff] }
  0x39   : > { %927 = vmatpush3.bf16.msra.mxu0 %v1029_v17  ;;  %976 = vmatpush3.bf16.msra.mxu1 %v1029_v17 }
  0x3a   : > { %928 = vmatprep.subr.bf16.mxu0 %v1083_v15  ;;  %969 = vmatprep.subr.bf16.mxu1 %v1083_v15 }
  0x3d   : > { %929 = vmatpush3.bf16.msra.mxu0 %v1030_v18  ;;  %977 = vmatpush3.bf16.msra.mxu1 %v1030_v18 }
  0x3e   : > { %930 = vmatprep.subr.bf16.mxu0 %v1083_v15  ;;  %970 = vmatprep.subr.bf16.mxu1 %v1083_v15 }
  0x41   : > { %931 = vmatpush3.bf16.msra.mxu0 %v1031_v19  ;;  %978 = vmatpush3.bf16.msra.mxu1 %v1031_v19 }
  0x42   : > { %932 = vmatprep.subr.bf16.mxu0 %v1083_v15  ;;  %971 = vmatprep.subr.bf16.mxu1 %v1083_v15 }
  0x45   : > { %933 = vmatpush3.bf16.msra.mxu0 %v1032_v20  ;;  %979 = vmatpush3.bf16.msra.mxu1 %v1032_v20 }
  0x46   : > { %934 = vmatprep.subr.bf16.mxu0 %v1083_v15  ;;  %972 = vmatprep.subr.bf16.mxu1 %v1083_v15 }
  0x49   : > { %935 = vmatpush3.bf16.msra.mxu0 %v1033_v21  ;;  %980 = vmatpush3.bf16.msra.mxu1 %v1033_v21 }
  0x4a   : > { %936 = vmatprep.subr.bf16.mxu0 %v1083_v15  ;;  %973 = vmatprep.subr.bf16.mxu1 %v1083_v15 }
  0x4d   : > { %937 = vmatpush3.bf16.msra.mxu0 %v1034_v22  ;;  %981 = vmatpush3.bf16.msra.mxu1 %v1034_v22  ;;  %v841_v22 = vld [vmem:[%s1224_s2] ss:$0 sm:$0xff] (!%p840_p11) }
  0x50   : > { %939 = vmatmul.mubr.bf16.vlgmr.msra.gmra.mrb[0].mxu0 %v1035_v23  ;;  %955 = vmatmul.mubr.bf16.vlgmr.msra.gmra.mrb[0].mxu1 %v1036_v24 }
  0x51   : > { %942 = vmatprep.mubr.msk.bf16.mxu0 %vm1084_vm0, %v1083_v15  ;;  %958 = vmatprep.mubr.msk.bf16.mxu1 %vm1084_vm0, %v1083_v15 }
  0x58   : > { %943 = vmatmul.mubr.bf16.gmra.mrb[4].mxu0 %v1037_v25  ;;  %959 = vmatmul.mubr.bf16.gmra.mrb[4].mxu1 %v1038_v26 }
  0x59   : > { %946 = vmatprep.mubr.msk.bf16.mxu0 %vm1084_vm0, %v1083_v15  ;;  %962 = vmatprep.mubr.msk.bf16.mxu1 %vm1084_vm0, %v1083_v15 }
  0x60   : > { %947 = vmatmul.mubr.bf16.gmra.mrb[8].mxu0 %v1039_v27  ;;  %963 = vmatmul.mubr.bf16.gmra.mrb[8].mxu1 %v1040_v28 }
  0x61   : > { %950 = vmatprep.mubr.msk.bf16.mxu0 %vm1084_vm0, %v1083_v15 }
  0x68   : > { %951 = vmatmul.mubr.bf16.gmra.mrb[12].mxu0 %v1041_v29 }
 0x123   : > { %v523_v32 = vpop.f32.mrb[0].mxu0  ;;  %v555_v34 = vpop.f32.mrb[0].mxu1 }
 0x124   : > { %v577_v36 = vadd.f32 %v523_v32, %v359_v30  ;;  %v940_v37 = vpop.f32.mrb[1].mxu0  ;;  %v585_v38 = vadd.f32 %v555_v34, %v367_v31  ;;  %v956_v39 = vpop.f32.mrb[1].mxu1 }
 0x125   : > { %v526_v40 = vpop.f32.mrb[2].mxu0  ;;  %v558_v41 = vpop.f32.mrb[2].mxu1 }
 0x126   : > { %590 = vst [vmem:[#allocation2] sm:$0xff] %v577_v36  ;;  %v578_v42 = vadd.f32 %v526_v40, %v360_v33  ;;  %v941_v43 = vpop.f32.mrb[3].mxu0  ;;  %598 = vst [vmem:[#allocation2 + $0x40] sm:$0xff] %v585_v38  ;;  %v586_v44 = vadd.f32 %v558_v41, %v368_v35  ;;  %v957_v45 = vpop.f32.mrb[3].mxu1 }
 0x128   : > { %591 = vst [vmem:[#allocation2 + $0x8] sm:$0xff] %v578_v42  ;;  %599 = vst [vmem:[#allocation2 + $0x48] sm:$0xff] %v586_v44 }
 0x12b   : > { %v531_v48 = vpop.f32.mrb[4].mxu0  ;;  %v563_v50 = vpop.f32.mrb[4].mxu1 }
 0x12c   : > { %v579_v52 = vadd.f32 %v531_v48, %v361_v46  ;;  %v944_v53 = vpop.f32.mrb[5].mxu0  ;;  %v587_v54 = vadd.f32 %v563_v50, %v369_v47  ;;  %v960_v55 = vpop.f32.mrb[5].mxu1 }
 0x12d   : > { %v534_v56 = vpop.f32.mrb[6].mxu0  ;;  %v566_v57 = vpop.f32.mrb[6].mxu1  ;;  %v607_v20 = vld [vmem:[#allocation2] sm:$0xff] (!%p840_p11) }
 0x12e   : > { %592 = vst [vmem:[#allocation2 + $0x10] sm:$0xff] %v579_v52  ;;  %v580_v58 = vadd.f32 %v534_v56, %v362_v49  ;;  %v945_v59 = vpop.f32.mrb[7].mxu0  ;;  %600 = vst [vmem:[#allocation2 + $0x50] sm:$0xff] %v587_v54  ;;  %v588_v60 = vadd.f32 %v566_v57, %v370_v51  ;;  %v961_v61 = vpop.f32.mrb[7].mxu1  ;;  %v627_v23 = vadd.f32 (!%p840_p11), %v841_v22, %v607_v20  ;;  %v615_v38 = vld [vmem:[#allocation2 + $0x40] sm:$0xff] (!%p840_p11) }
 0x12f   : > { %v608_v21 = vld [vmem:[#allocation2 + $0x8] sm:$0xff] (!%p840_p11)  ;;  %v635_v42 = vadd.f32 (!%p840_p11), %v841_v22, %v615_v38 }
 0x130   : > { %593 = vst [vmem:[#allocation2 + $0x18] sm:$0xff] %v580_v58  ;;  %601 = vst [vmem:[#allocation2 + $0x58] sm:$0xff] %v588_v60  ;;  %v628_v24 = vadd.f32 (!%p840_p11), %v841_v22, %v608_v21  ;;  %v616_v39 = vld [vmem:[#allocation2 + $0x48] sm:$0xff] (!%p840_p11) }
 0x131   : > { %v636_v43 = vadd.f32 (!%p840_p11), %v841_v22, %v616_v39 }
 0x132   : > { %v875_v34 = vpack.c.bf16 (!%p840_p11), %v628_v24, %v627_v23 }
 0x133   : > { %v539_v0 = vpop.f32.mrb[8].mxu0  ;;  %v571_v2 = vpop.f32.mrb[8].mxu1  ;;  %v895_v51 = vpack.c.bf16 (!%p840_p11), %v636_v43, %v635_v42 }
 0x134   : > { %v581_v3 = vadd.f32 %v539_v0, %v363_v62  ;;  %v948_v4 = vpop.f32.mrb[9].mxu0  ;;  %v589_v5 = vadd.f32 %v571_v2, %v371_v63  ;;  %v964_v6 = vpop.f32.mrb[9].mxu1  ;;  %876 = vst [vmem:[%s1225_s3] sm:$0xff] (!%p840_p11), %v875_v34  }
 0x135   : > { %v542_v7 = vpop.f32.mrb[10].mxu0  ;;  %v574_v8 = vpop.f32.mrb[10].mxu1  ;;  %v609_v25 = vld [vmem:[#allocation2 + $0x10] sm:$0xff] (!%p840_p11)  ;;  %905 = vst [vmem:[%s1225_s3 + $0x20] sm:$0xff] (!%p840_p11), %v895_v51  }
 0x136   : > { %594 = vst [vmem:[#allocation2 + $0x20] sm:$0xff] %v581_v3  ;;  %v582_v9 = vadd.f32 %v542_v7, %v364_v1  ;;  %v949_v10 = vpop.f32.mrb[11].mxu0  ;;  %602 = vst [vmem:[#allocation2 + $0x60] sm:$0xff] %v589_v5  ;;  %v965_v11 = vpop.f32.mrb[11].mxu1  ;;  %v629_v28 = vadd.f32 (!%p840_p11), %v841_v22, %v609_v25  ;;  %v617_v40 = vld [vmem:[#allocation2 + $0x50] sm:$0xff] (!%p840_p11) }
 0x137   : > { %v610_v26 = vld [vmem:[#allocation2 + $0x18] sm:$0xff] (!%p840_p11)  ;;  %v637_v45 = vadd.f32 (!%p840_p11), %v841_v22, %v617_v40 }
 0x138   : > { %595 = vst [vmem:[#allocation2 + $0x28] sm:$0xff] %v582_v9  ;;  %v630_v29 = vadd.f32 (!%p840_p11), %v841_v22, %v610_v26  ;;  %v618_v44 = vld [vmem:[#allocation2 + $0x58] sm:$0xff] (!%p840_p11) }
 0x139   : > { %v638_v49 = vadd.f32 (!%p840_p11), %v841_v22, %v618_v44 }
 0x13a   : > { %606 = sbr.rel (%p840_p11) target bundleno = 333 (0x14d), region = 81  ;;  %v880_v41 = vpack.c.bf16 (!%p840_p11), %v630_v29, %v629_v28 }
 0x13b   : > { %v547_v13 = vpop.f32.mrb[12].mxu0  ;;  %v900_v52 = vpack.c.bf16 (!%p840_p11), %v638_v49, %v637_v45 }
 0x13c   : > { %v583_v15 = vadd.f32 %v547_v13, %v365_v12  ;;  %v952_v16 = vpop.f32.mrb[13].mxu0  ;;  %902 = vst [vmem:[%s1225_s3 + $0x8] sm:$0xff] (!%p840_p11), %v880_v41  }
 0x13d   : > { %v550_v17 = vpop.f32.mrb[14].mxu0  ;;  %v611_v27 = vld [vmem:[#allocation2 + $0x20] sm:$0xff] (!%p840_p11)  ;;  %906 = vst [vmem:[%s1225_s3 + $0x28] sm:$0xff] (!%p840_p11), %v900_v52  }
 0x13e   : > { %596 = vst [vmem:[#allocation2 + $0x30] sm:$0xff] %v583_v15  ;;  %v584_v18 = vadd.f32 %v550_v17, %v366_v14  ;;  %v953_v19 = vpop.f32.mrb[15].mxu0  ;;  %v631_v31 = vadd.f32 (!%p840_p11), %v841_v22, %v611_v27  ;;  %v619_v46 = vld [vmem:[#allocation2 + $0x60] sm:$0xff] (!%p840_p11) }
 0x13f   : > { %v612_v30 = vld [vmem:[#allocation2 + $0x28] sm:$0xff] (!%p840_p11)  ;;  %v639_v50 = vadd.f32 (!%p840_p11), %v841_v22, %v619_v46 }
 0x140   : > { %597 = vst [vmem:[#allocation2 + $0x38] sm:$0xff] %v584_v18  ;;  %v632_v35 = vadd.f32 (!%p840_p11), %v841_v22, %v612_v30 }
 0x141   : > { %v871_v53 = vpack.c.bf16 %v639_v50, %v639_v50 }
 0x142   : > { %v885_v47 = vpack.c.bf16 %v632_v35, %v631_v31 }
 0x143   : > { %705 = vst [vmem:[%s1225_s3 + $0x30] sm:$0xf] %v871_v53 }
 0x144   : > { %903 = vst [vmem:[%s1225_s3 + $0x10] sm:$0xff] %v885_v47  }
 0x145   : > { %v613_v32 = vld [vmem:[#allocation2 + $0x30] sm:$0xff] }
 0x146   : > { %v633_v36 = vadd.f32 %v841_v22, %v613_v32 }
 0x147   : > { %v614_v33 = vld [vmem:[#allocation2 + $0x38] sm:$0xff] }
 0x148   : > { %v634_v37 = vadd.f32 %v841_v22, %v614_v33 }
 0x14a   : > { %v890_v48 = vpack.c.bf16 %v634_v37, %v633_v36 }
 0x14c   : > { %904 = vst [vmem:[%s1225_s3 + $0x18] sm:$0xff] %v890_v48  }
 0x14d PF: > { %s13_s16 = sadd.s32 1, %s1080_s16   ;;  %s1226_s12 = smov %s1068_s13 }
 0x14e   : > { %p10_p12 = scmp.ge.s32.totalorder %s13_s16, 11   ;;  %s1227_s13 = smov %s1140_s20 }
 0x14f   : > { %s1228_s14 = smov %s1076_s15  ;;  %s1229_s15 = smov %s1231_s17 }
 0x150   :  { %12 = sbr.rel (!%p10_p12) target bundleno = 3 (0x3), region = 122 }

// kernel: proto_cnn_forward.15
= control target key start
LH: loop header
LB: loop body
LE: loop exit
PB: predicated region body
PF: predicated region fallthrough
CT: control target
= control target key end

     0   :  { %s1055_s12 = smov 0   ;;  %s1057_s13 = smov 0   ;;  %s1271_s0 = inlined_call_operand.vmem [shape: bf16[8,384], index: 0, kind: input, shape index: {}]   ;;  %s1272_s1 = inlined_call_operand.vmem [shape: bf16[384,4096], index: 1, kind: input, shape index: {}]   ;;  %s1273_s2 = inlined_call_operand.vmem [shape: f32[1,4096], index: 2, kind: input, shape index: {}]   ;;  %s1274_s3 = inlined_call_operand.vmem [shape: bf16[8,4096], index: 3, kind: output, shape index: {}]  }
   0x1   :  { %s1059_s14 = smov 0   ;;  %s1061_s15 = smov 0  }
   0x2   :  { %s1063_s16 = smov 0   ;;  %s1065_s17 = smov 0  }
   0x3   :  { %s1067_s18 = smov 0  }
   0x4 LB: > { %s25_s19 = sadd.s32 1, %s1023_s16  ;;  %s28_s20 = sadd.s32 1, %s1027_s17  ;;  %s1031_s18 = sphi %s1067_s18, %s13_s18   ;;  %s1027_s17 = sphi %s1065_s17, %s1280_s17   ;;  %s1023_s16 = sphi %s1063_s16, %s1279_s16   ;;  %s1019_s15 = sphi %s1061_s15, %s1278_s15   ;;  %s1015_s14 = sphi %s1059_s14, %s1277_s14   ;;  %s1011_s13 = sphi %s1057_s13, %s1276_s13   ;;  %s1007_s12 = sphi %s1055_s12, %s1275_s12  }
   0x5   : > { %p26_p0 = scmp.ge.s32.totalorder %s25_s19, 3  ;;  %p76_p1 = scmp.ne.s32.totalorder %s1011_s13, %s1007_s12 }
   0x6   : > { %p77_p2 = scmp.eq.s32.totalorder %s1031_s18, 0  ;;  %s69_s24 = sadd.s32 1, %s1011_s13 }
   0x7   : > { %s1282_s19 = smov (%p26_p0, %s25_s19), 0  ;;  %s1284_s20 = smov (!%p26_p0, %s28_s20), %s1027_s17 }
   0x8   : > { %p78_p3 = por %p77_p2, %p76_p1  ;;  %p30_p4 = scmp.ge.s32.totalorder %s1284_s20, 8 }
   0x9   : > { %s64_s21 = ssub.s32 %s1023_s16, %s1282_s19  ;;  %p818_p6 = scmp.ge.s32.totalorder %s1031_s18, 24 }
   0xa   : > { %s1286_s20 = smov (%p30_p4, %s1284_s20), 0 }
   0xb   : > { %s65_s22 = ssub.s32 %s1027_s17, %s1286_s20  ;;  %156 = sbr.rel (%p818_p6) target bundleno = 41 (0x29), region = 16 }
   0xc   : > { %s66_s23 = sor.u32 %s65_s22, %s64_s21 }
   0xd   : > { %p67_p5 = scmp.eq.s32.totalorder %s66_s23, 0 }
   0xf   : > { %s1106_s25 = scalar_select %p67_p5, %s1011_s13, %s69_s24  }
  0x12   : > { %170 = sbr.rel (!%p78_p3) target bundleno = 41 (0x29), region = 24  ;;  %s172_s26 = sand.u32 (%p78_p3), 1, %s1011_s13  }
  0x13   : > { %s821_s27 = sshll.u32 (%p78_p3), %s1027_s17, 2  ;;  %s819_s28 = sshll.u32 (%p78_p3), %s172_s26, 8 }
  0x14   : > { %s868_s29 = sshll.u32 (%p78_p3), %s1023_s16, 9  ;;  %s1120_s8 = scalar_lea.vmem (%p78_p3), [#allocation3], %s819_s28 }
  0x15   : > { %s178_s30 = sadd.s32 (%p78_p3), %s868_s29, %s821_s27 }
  0x16   : > { %s823_s4 = sshll.u32 (%p78_p3), %s178_s30, 2 }
  0x17   : > { %s1115_s7 = scalar_lea.vmem (%p78_p3), %s1272_s1, %s823_s4 }
  0x18   : > { %v193_v0 = vld [vmem:[%s1115_s7] sm:$0xff] (%p78_p3)  ;;  %v195_v1 = vld [vmem:[%s1115_s7 + $0x8] sm:$0xff] (%p78_p3) }
  0x19   : > { %v197_v2 = vld [vmem:[%s1115_s7 + $0x80] sm:$0xff]  ;;  %194 = vst [vmem:[%s1120_s8] sm:$0xff] %v193_v0  ;;  %196 = vst [vmem:[%s1120_s8 + $0x8] sm:$0xff] %v195_v1  ;;  %v199_v3 = vld [vmem:[%s1115_s7 + $0x88] sm:$0xff] }
  0x1a   : > { %198 = vst [vmem:[%s1120_s8 + $0x10] sm:$0xff] %v197_v2  ;;  %v201_v4 = vld [vmem:[%s1115_s7 + $0x100] sm:$0xff]  ;;  %v203_v5 = vld [vmem:[%s1115_s7 + $0x108] sm:$0xff]  ;;  %200 = vst [vmem:[%s1120_s8 + $0x18] sm:$0xff] %v199_v3 }
  0x1b   : > { %202 = vst [vmem:[%s1120_s8 + $0x20] sm:$0xff] %v201_v4  ;;  %204 = vst [vmem:[%s1120_s8 + $0x28] sm:$0xff] %v203_v5  ;;  %v205_v6 = vld [vmem:[%s1115_s7 + $0x180] sm:$0xff]  ;;  %v207_v7 = vld [vmem:[%s1115_s7 + $0x188] sm:$0xff] }
  0x1c   : > { %v209_v8 = vld [vmem:[%s1115_s7 + $0x200] sm:$0xff]  ;;  %206 = vst [vmem:[%s1120_s8 + $0x30] sm:$0xff] %v205_v6  ;;  %208 = vst [vmem:[%s1120_s8 + $0x38] sm:$0xff] %v207_v7  ;;  %v211_v9 = vld [vmem:[%s1115_s7 + $0x208] sm:$0xff] }
  0x1d   : > { %210 = vst [vmem:[%s1120_s8 + $0x40] sm:$0xff] %v209_v8  ;;  %v213_v10 = vld [vmem:[%s1115_s7 + $0x280] sm:$0xff]  ;;  %v215_v11 = vld [vmem:[%s1115_s7 + $0x288] sm:$0xff]  ;;  %212 = vst [vmem:[%s1120_s8 + $0x48] sm:$0xff] %v211_v9 }
  0x1e   : > { %214 = vst [vmem:[%s1120_s8 + $0x50] sm:$0xff] %v213_v10  ;;  %216 = vst [vmem:[%s1120_s8 + $0x58] sm:$0xff] %v215_v11  ;;  %v217_v12 = vld [vmem:[%s1115_s7 + $0x300] sm:$0xff]  ;;  %v219_v13 = vld [vmem:[%s1115_s7 + $0x308] sm:$0xff] }
  0x1f   : > { %v221_v14 = vld [vmem:[%s1115_s7 + $0x380] sm:$0xff]  ;;  %218 = vst [vmem:[%s1120_s8 + $0x60] sm:$0xff] %v217_v12  ;;  %220 = vst [vmem:[%s1120_s8 + $0x68] sm:$0xff] %v219_v13  ;;  %v223_v15 = vld [vmem:[%s1115_s7 + $0x388] sm:$0xff] }
  0x20   : > { %222 = vst [vmem:[%s1120_s8 + $0x70] sm:$0xff] %v221_v14  ;;  %v225_v16 = vld [vmem:[%s1115_s7 + $0x400] sm:$0xff]  ;;  %v227_v17 = vld [vmem:[%s1115_s7 + $0x408] sm:$0xff]  ;;  %224 = vst [vmem:[%s1120_s8 + $0x78] sm:$0xff] %v223_v15 }
  0x21   : > { %226 = vst [vmem:[%s1120_s8 + $0x80] sm:$0xff] %v225_v16  ;;  %228 = vst [vmem:[%s1120_s8 + $0x88] sm:$0xff] %v227_v17  ;;  %v229_v18 = vld [vmem:[%s1115_s7 + $0x480] sm:$0xff]  ;;  %v231_v19 = vld [vmem:[%s1115_s7 + $0x488] sm:$0xff] }
  0x22   : > { %v233_v20 = vld [vmem:[%s1115_s7 + $0x500] sm:$0xff]  ;;  %230 = vst [vmem:[%s1120_s8 + $0x90] sm:$0xff] %v229_v18  ;;  %232 = vst [vmem:[%s1120_s8 + $0x98] sm:$0xff] %v231_v19  ;;  %v235_v21 = vld [vmem:[%s1115_s7 + $0x508] sm:$0xff] }
  0x23   : > { %234 = vst [vmem:[%s1120_s8 + $0xa0] sm:$0xff] %v233_v20  ;;  %v237_v22 = vld [vmem:[%s1115_s7 + $0x580] sm:$0xff]  ;;  %v239_v23 = vld [vmem:[%s1115_s7 + $0x588] sm:$0xff]  ;;  %236 = vst [vmem:[%s1120_s8 + $0xa8] sm:$0xff] %v235_v21 }
  0x24   : > { %238 = vst [vmem:[%s1120_s8 + $0xb0] sm:$0xff] %v237_v22  ;;  %240 = vst [vmem:[%s1120_s8 + $0xb8] sm:$0xff] %v239_v23  ;;  %v241_v24 = vld [vmem:[%s1115_s7 + $0x600] sm:$0xff]  ;;  %v243_v25 = vld [vmem:[%s1115_s7 + $0x608] sm:$0xff] }
  0x25   : > { %v245_v26 = vld [vmem:[%s1115_s7 + $0x680] sm:$0xff]  ;;  %242 = vst [vmem:[%s1120_s8 + $0xc0] sm:$0xff] %v241_v24  ;;  %244 = vst [vmem:[%s1120_s8 + $0xc8] sm:$0xff] %v243_v25  ;;  %v247_v27 = vld [vmem:[%s1115_s7 + $0x688] sm:$0xff] }
  0x26   : > { %246 = vst [vmem:[%s1120_s8 + $0xd0] sm:$0xff] %v245_v26  ;;  %v249_v28 = vld [vmem:[%s1115_s7 + $0x700] sm:$0xff]  ;;  %v251_v29 = vld [vmem:[%s1115_s7 + $0x708] sm:$0xff]  ;;  %248 = vst [vmem:[%s1120_s8 + $0xd8] sm:$0xff] %v247_v27 }
  0x27   : > { %250 = vst [vmem:[%s1120_s8 + $0xe0] sm:$0xff] %v249_v28  ;;  %252 = vst [vmem:[%s1120_s8 + $0xe8] sm:$0xff] %v251_v29  ;;  %v253_v30 = vld [vmem:[%s1115_s7 + $0x780] sm:$0xff]  ;;  %v255_v31 = vld [vmem:[%s1115_s7 + $0x788] sm:$0xff] }
  0x28   : > { %254 = vst [vmem:[%s1120_s8 + $0xf0] sm:$0xff] %v253_v30  ;;  %256 = vst [vmem:[%s1120_s8 + $0xf8] sm:$0xff] %v255_v31 }
  0x29 PF: > { %p824_p7 = scmp.ge.s32.totalorder %s1031_s18, 1  ;;  %p269_p8 = scmp.lt.s32.totalorder %s1031_s18, 25 }
  0x2b   : > { %p270_p9 = pnand %p824_p7, %p269_p8 }
  0x2c   : > { %s276_s9 = sand.u32 (!%p270_p9), 1, %s1007_s12   ;;  %p317_p10 = scmp.lt.s32.totalorder (!%p270_p9), %s1015_s14, 2 }
  0x2d   : > { %273 = sbr.rel (%p270_p9) target bundleno = 324 (0x144), region = 51  ;;  %s825_s10 = sshll.u32 (!%p270_p9), %s276_s9, 8 }
  0x2e   : > { %s827_s11 = sshll.u32 (!%p270_p9), %s1019_s15, 2  ;;  %s1206_s5 = scalar_lea.vmem (!%p270_p9), [#allocation3], %s825_s10 }
  0x2f   : > { %p326_p11 = scmp.lt.s32.totalorder (!%p270_p9), %s827_s11, 31  ;;  %p830_p12 = scmp.ne.s32.totalorder (!%p270_p9), %s1015_s14, 0 }
  0x34   : > { %s318_s21 = scalar_select %p317_p10, %s1015_s14, 2 }
  0x35   : > { %s1288_s11 = smov (!%p326_p11, %s827_s11), 31  ;;  %344 = sbr.rel (%p830_p12) target bundleno = 60 (0x3c), region = 59 }
  0x36   : > { %s826_s22 = sshll.u32 %s318_s21, 2  ;;  %s328_s29 = scalar_lea.vmem %s1273_s2, %s1288_s11  ;;  %v1033_v32 = vmov (!%p830_p12), 0.0  }
  0x37   : > { %s1194_s26 = scalar_lea.vmem %s1271_s0, %s826_s22  ;;  %s829_s12 = sshll.u32 %s1288_s11, 2  ;;  %345 = vst [vmem:[#allocation2] sm:$0xff] (!%p830_p12), %v1033_v32  ;;  %346 = vst [vmem:[#allocation2 + $0x8] sm:$0xff] (!%p830_p12), %v1033_v32 }
  0x38   : > { %s1204_s15 = scalar_lea.vmem %s1274_s3, %s829_s12  ;;  %347 = vst [vmem:[#allocation2 + $0x10] sm:$0xff] (!%p830_p12), %v1033_v32  ;;  %348 = vst [vmem:[#allocation2 + $0x18] sm:$0xff] (!%p830_p12), %v1033_v32 }
  0x3c PF: > { %v929_v33 = vld [vmem:[%s1206_s5 + $0x4] ss:$16 sps:$4 sm:$0xff]   ;;  %v931_v34 = vld [vmem:[%s1206_s5 + $0xc] ss:$16 sps:$4 sm:$0xff]   ;;  %v1034_v35 = vmov 0   ;;  %p863_p13 = scmp.ne.s32.totalorder %s1015_s14, 2 }
  0x3d   : > { %578 = vmatprep.mubr.bf16.mxu0 %v1034_v35  ;;  %619 = vmatprep.mubr.bf16.mxu1 %v1034_v35  ;;  %v933_v36 = vld [vmem:[%s1206_s5] ss:$16 sps:$4 sm:$0xff]   ;;  %v934_v37 = vld [vmem:[%s1206_s5 + $0x8] ss:$16 sps:$4 sm:$0xff]   ;;  %v935_v38 = vld [vmem:[%s1206_s5 + $0x24] ss:$16 sps:$4 sm:$0xff]   ;;  %v646_v19 = vlaneseq (!%p863_p13) }
  0x3e   : > { %546 = vmatprep.subr.bf16.mxu0 %v929_v33  ;;  %587 = vmatprep.subr.bf16.mxu1 %v931_v34  ;;  %v937_v39 = vld [vmem:[%s1206_s5 + $0x2c] ss:$16 sps:$4 sm:$0xff]   ;;  %v939_v40 = vld [vmem:[%s1206_s5 + $0x20] ss:$16 sps:$4 sm:$0xff]   ;;  %v940_v41 = vld [vmem:[%s1206_s5 + $0x28] ss:$16 sps:$4 sm:$0xff]  }
  0x3f   : > { %547 = vmatpush1.bf16.msra.mxu0 %v933_v36  ;;  %588 = vmatpush1.bf16.msra.mxu1 %v934_v37  ;;  %v941_v42 = vld [vmem:[%s1206_s5 + $0x44] ss:$16 sps:$4 sm:$0xff]   ;;  %v943_v43 = vld [vmem:[%s1206_s5 + $0x4c] ss:$16 sps:$4 sm:$0xff]   ;;  %v945_v44 = vld [vmem:[%s1206_s5 + $0x40] ss:$16 sps:$4 sm:$0xff]  }
  0x40   : > { %548 = vmatprep.subr.bf16.mxu0 %v935_v38  ;;  %589 = vmatprep.subr.bf16.mxu1 %v937_v39  ;;  %v946_v45 = vld [vmem:[%s1206_s5 + $0x48] ss:$16 sps:$4 sm:$0xff]   ;;  %v947_v46 = vld [vmem:[%s1206_s5 + $0x64] ss:$16 sps:$4 sm:$0xff]   ;;  %v949_v47 = vld [vmem:[%s1206_s5 + $0x6c] ss:$16 sps:$4 sm:$0xff]  }
  0x41   : > { %v951_v48 = vld [vmem:[%s1206_s5 + $0x60] ss:$16 sps:$4 sm:$0xff]   ;;  %v952_v49 = vld [vmem:[%s1206_s5 + $0x68] ss:$16 sps:$4 sm:$0xff]   ;;  %v953_v50 = vld [vmem:[%s1206_s5 + $0x84] ss:$16 sps:$4 sm:$0xff]  }
  0x42   : > { %v955_v51 = vld [vmem:[%s1206_s5 + $0x8c] ss:$16 sps:$4 sm:$0xff]   ;;  %v957_v52 = vld [vmem:[%s1206_s5 + $0x80] ss:$16 sps:$4 sm:$0xff]   ;;  %v958_v53 = vld [vmem:[%s1206_s5 + $0x88] ss:$16 sps:$4 sm:$0xff]  }
  0x43   : > { %549 = vmatpush1.bf16.msra.mxu0 %v939_v40  ;;  %590 = vmatpush1.bf16.msra.mxu1 %v940_v41  ;;  %v959_v54 = vld [vmem:[%s1206_s5 + $0xa4] ss:$16 sps:$4 sm:$0xff]   ;;  %v961_v55 = vld [vmem:[%s1206_s5 + $0xac] ss:$16 sps:$4 sm:$0xff]   ;;  %v963_v56 = vld [vmem:[%s1206_s5 + $0xa0] ss:$16 sps:$4 sm:$0xff]  }
  0x44   : > { %550 = vmatprep.subr.bf16.mxu0 %v941_v42  ;;  %591 = vmatprep.subr.bf16.mxu1 %v943_v43  ;;  %v964_v57 = vld [vmem:[%s1206_s5 + $0xa8] ss:$16 sps:$4 sm:$0xff]   ;;  %v965_v58 = vld [vmem:[%s1206_s5 + $0xc4] ss:$16 sps:$4 sm:$0xff]   ;;  %v967_v59 = vld [vmem:[%s1206_s5 + $0xcc] ss:$16 sps:$4 sm:$0xff]  }
  0x45   : > { %v969_v60 = vld [vmem:[%s1206_s5 + $0xc0] ss:$16 sps:$4 sm:$0xff]   ;;  %v970_v61 = vld [vmem:[%s1206_s5 + $0xc8] ss:$16 sps:$4 sm:$0xff]   ;;  %v971_v62 = vld [vmem:[%s1206_s5 + $0xe4] ss:$16 sps:$4 sm:$0xff]  }
  0x46   : > { %v973_v63 = vld [vmem:[%s1206_s5 + $0xec] ss:$16 sps:$4 sm:$0xff]   ;;  %v975_v0 = vld [vmem:[%s1206_s5 + $0xe0] ss:$16 sps:$4 sm:$0xff]   ;;  %v976_v1 = vld [vmem:[%s1206_s5 + $0xe8] ss:$16 sps:$4 sm:$0xff]  }
  0x47   : > { %551 = vmatpush1.bf16.msra.mxu0 %v945_v44  ;;  %592 = vmatpush1.bf16.msra.mxu1 %v946_v45  ;;  %v353_v2 = vld [vmem:[%s1194_s26] sm:$0xf]  ;;  %v351_v4 = vld [vmem:[#allocation2 + $0x10] sm:$0xff]  ;;  %v350_v5 = vld [vmem:[#allocation2 + $0x8] sm:$0xff]  ;;  %v647_v20 = vshrl.u32 (!%p863_p13), %v646_v19, 7 }
  0x48   : > { %552 = vmatprep.subr.bf16.mxu0 %v947_v46  ;;  %593 = vmatprep.subr.bf16.mxu1 %v949_v47  ;;  %v349_v3 = vld [vmem:[#allocation2] sm:$0xff]  ;;  %v352_v6 = vld [vmem:[#allocation2 + $0x18] sm:$0xff] }
  0x49   : > { %v644_v21 = vld [vmem:[%s328_s29] sm:$0xf] (!%p863_p13)  ;;  %v648_v23 = vsub.s32 (!%p863_p13), 0, %v647_v20  ;;  %v652_v24 = vsub.s32 (!%p863_p13), 1, %v647_v20  ;;  %v656_v25 = vsub.s32 (!%p863_p13), 2, %v647_v20  ;;  %v660_v26 = vsub.s32 (!%p863_p13), 3, %v647_v20 }
  0x4b   : > { %553 = vmatpush1.bf16.msra.mxu0 %v951_v48  ;;  %594 = vmatpush1.bf16.msra.mxu1 %v952_v49  ;;  %v649_v30 = vrot.slane (!%p863_p13), %v644_v21, %v648_v23  ;;  %v653_v31 = vrot.slane (!%p863_p13), %v644_v21, %v652_v24  ;;  %v657_v32 = vrot.slane (!%p863_p13), %v644_v21, %v656_v25 }
  0x4c   : > { %554 = vmatprep.subr.bf16.mxu0 %v953_v50  ;;  %595 = vmatprep.subr.bf16.mxu1 %v955_v51  ;;  %v661_v33 = vrot.slane (!%p863_p13), %v644_v21, %v660_v26 }
  0x4f   : > { %555 = vmatpush1.bf16.msra.mxu0 %v957_v52  ;;  %596 = vmatpush1.bf16.msra.mxu1 %v958_v53 }
  0x50   : > { %556 = vmatprep.subr.bf16.mxu0 %v959_v54  ;;  %597 = vmatprep.subr.bf16.mxu1 %v961_v55 }
  0x53   : > { %557 = vmatpush1.bf16.msra.mxu0 %v963_v56  ;;  %598 = vmatpush1.bf16.msra.mxu1 %v964_v57 }
  0x54   : > { %558 = vmatprep.subr.bf16.mxu0 %v965_v58  ;;  %599 = vmatprep.subr.bf16.mxu1 %v967_v59 }
  0x57   : > { %559 = vmatpush1.bf16.msra.mxu0 %v969_v60  ;;  %600 = vmatpush1.bf16.msra.mxu1 %v970_v61 }
  0x58   : > { %560 = vmatprep.subr.bf16.mxu0 %v971_v62  ;;  %601 = vmatprep.subr.bf16.mxu1 %v973_v63 }
  0x5b   : > { %561 = vmatpush1.bf16.msra.mxu0 %v975_v0  ;;  %602 = vmatpush1.bf16.msra.mxu1 %v976_v1 }
  0x5e   : > { %579 = vmatmul.mubr.bf16.vlgmr.msra.gmra.mrb[0].mxu0 %v353_v2  ;;  %620 = vmatmul.mubr.bf16.vlgmr.msra.gmra.mrb[0].mxu1 %v353_v2 }
 0x12f   : > { %639 = sbr.rel (%p863_p13) target bundleno = 324 (0x144), region = 63 }
 0x131   : > { %v580_v7 = vpop.f32.mrb[0].mxu0  ;;  %v621_v8 = vpop.f32.mrb[0].mxu1 }
 0x132   : > { %v628_v9 = vadd.f32 %v580_v7, %v349_v3  ;;  %v630_v10 = vadd.f32 %v621_v8, %v351_v4  ;;  %v582_v11 = vpop.f32.mrb[1].mxu0  ;;  %v623_v12 = vpop.f32.mrb[1].mxu1 }
 0x133   : > { %v629_v13 = vadd.f32 %v582_v11, %v350_v5  ;;  %v631_v14 = vadd.f32 %v623_v12, %v352_v6  ;;  %v584_v15 = vpop.f32.mrb[2].mxu0  ;;  %v625_v16 = vpop.f32.mrb[2].mxu1 }
 0x134   : > { %632 = vst [vmem:[#allocation2] sm:$0xff] %v628_v9  ;;  %634 = vst [vmem:[#allocation2 + $0x10] sm:$0xff] %v630_v10  ;;  %v585_v17 = vpop.f32.mrb[3].mxu0  ;;  %v626_v18 = vpop.f32.mrb[3].mxu1 }
 0x135   : > { %633 = vst [vmem:[#allocation2 + $0x8] sm:$0xff] %v629_v13  ;;  %635 = vst [vmem:[#allocation2 + $0x18] sm:$0xff] %v631_v14 }
 0x13b   : > { %v640_v22 = vld [vmem:[#allocation2] sm:$0xff]  ;;  %v642_v28 = vld [vmem:[#allocation2 + $0x10] sm:$0xff] }
 0x13c   : > { %v641_v27 = vld [vmem:[#allocation2 + $0x8] sm:$0xff]  ;;  %v643_v29 = vld [vmem:[#allocation2 + $0x18] sm:$0xff]  ;;  %v666_v34 = vadd.f32 %v649_v30, %v640_v22  ;;  %v668_v36 = vadd.f32 %v657_v32, %v642_v28 }
 0x13d   : > { %v667_v35 = vadd.f32 %v653_v31, %v641_v27  ;;  %v669_v37 = vadd.f32 %v661_v33, %v643_v29 }
 0x13e   : > { %v670_v38 = vmax.f32 %v666_v34, 0.0  ;;  %v672_v40 = vmax.f32 %v668_v36, 0.0 }
 0x13f   : > { %v671_v39 = vmax.f32 %v667_v35, 0.0  ;;  %v673_v41 = vmax.f32 %v669_v37, 0.0 }
 0x141   : > { %v869_v42 = vpack.c.bf16 %v671_v39, %v670_v38  ;;  %v870_v43 = vpack.c.bf16 %v673_v41, %v672_v40 }
 0x143   : > { %690 = vst [vmem:[%s1204_s15] sm:$0xff] %v869_v42  ;;  %691 = vst [vmem:[%s1204_s15 + $0x8] sm:$0xff] %v870_v43 }
 0x144 PF: > { %s13_s18 = sadd.s32 1, %s1031_s18   ;;  %s1275_s12 = smov %s1011_s13 }
 0x145   : > { %p10_p0 = scmp.ge.s32.totalorder %s13_s18, 26   ;;  %s1276_s13 = smov %s1106_s25 }
 0x146   : > { %s1277_s14 = smov %s1023_s16  ;;  %s1278_s15 = smov %s1027_s17 }
 0x147   : > { %s1279_s16 = smov %s1282_s19  ;;  %s1280_s17 = smov %s1286_s20 }
 0x148   :  { %12 = sbr.rel (!%p10_p0) target bundleno = 4 (0x4), region = 104 }

// kernel: proto_cnn_forward.17
= control target key start
LH: loop header
LB: loop body
LE: loop exit
PB: predicated region body
PF: predicated region fallthrough
CT: control target
= control target key end

     0   :  { %s958_s12 = smov 0   ;;  %s960_s13 = smov 0   ;;  %s1041_s0 = inlined_call_operand.vmem [shape: bf16[8,2048], index: 0, kind: input, shape index: {}]   ;;  %s1042_s1 = inlined_call_operand.vmem [shape: bf16[2048,128], index: 1, kind: input, shape index: {}]   ;;  %s1043_s2 = inlined_call_operand.vmem [shape: f32[1,128], index: 2, kind: input, shape index: {}]   ;;  %s1044_s3 = inlined_call_operand.vmem [shape: f32[8,128], index: 3, kind: output, shape index: {}]  }
   0x1   :  { %s962_s14 = smov 0  }
   0x2 LB: > { %s25_s15 = sadd.s32 1, %s931_s13  ;;  %p757_p0 = scmp.ge.s32.totalorder %s935_s14, 1  ;;  %s935_s14 = sphi %s962_s14, %s13_s14   ;;  %s931_s13 = sphi %s960_s13, %s1046_s13   ;;  %s927_s12 = sphi %s958_s12, %s1045_s12  }
   0x3   : > { %p26_p1 = scmp.ge.s32.totalorder %s25_s15, 4  ;;  %p189_p2 = scmp.lt.s32.totalorder %s935_s14, 5 }
   0x5   : > { %s1048_s15 = smov (%p26_p1, %s25_s15), 0  ;;  %p190_p3 = pnand %p757_p0, %p189_p2 }
   0x6   : > { %s758_s16 = sshll.u32 (!%p190_p3), %s927_s12, 2  ;;  %s760_s17 = sshll.u32 (!%p190_p3), %s927_s12, 6 }
   0x7   : > { %193 = sbr.rel (%p190_p3) target bundleno = 603 (0x25b), region = 32  ;;  %p233_p4 = scmp.lt.s32.totalorder (!%p190_p3), %s758_s16, 15 }
   0x8   : > { %p241_p5 = scmp.lt.s32.totalorder (!%p190_p3), %s760_s17, 255  ;;  %p762_p6 = scmp.ne.s32.totalorder (!%p190_p3), %s927_s12, 0 }
   0xe   : > { %s1050_s16 = smov (!%p233_p4, %s758_s16), 15  ;;  %s1052_s17 = smov (!%p241_p5, %s760_s17), 255 }
   0xf   : > { %s759_s18 = sshll.u32 %s1050_s16, 2  ;;  %s761_s22 = sshll.u32 %s1052_s17, 2  ;;  %v937_v0 = vmov (!%p762_p6), 0.0  }
  0x10   : > { %s983_s21 = scalar_lea.vmem %s1041_s0, %s759_s18  ;;  %s988_s25 = scalar_lea.vmem %s1042_s1, %s761_s22  ;;  %264 = vst [vmem:[#allocation2] sm:$0xff] (!%p762_p6), %v937_v0 }
  0x11   : > { %263 = sbr.rel (%p762_p6) target bundleno = 24 (0x18), region = 36 }
  0x18 PF: > { %v873_v1 = vld [vmem:[%s988_s25 + $0x40] sm:$0xff]   ;;  %v877_v5 = vld [vmem:[%s988_s25 + $0x48] sm:$0xff]   ;;  %v881_v9 = vld [vmem:[%s988_s25 + $0x50] sm:$0xff]   ;;  %p799_p7 = scmp.ne.s32.totalorder %s927_s12, 3 }
  0x19   : > { %v874_v2 = vld [vmem:[%s988_s25 + $0xc0] sm:$0xff]   ;;  %804 = vmatprep.subr.bf16.mxu0 %v873_v1  ;;  %v878_v6 = vld [vmem:[%s988_s25 + $0xc8] sm:$0xff]   ;;  %v882_v10 = vld [vmem:[%s988_s25 + $0xd0] sm:$0xff]   ;;  %v633_v54 = vlaneseq (!%p799_p7) }
  0x1a   : > { %v875_v3 = vld [vmem:[%s988_s25] sm:$0xff]   ;;  %826 = vmatprep.subr.bf16.mxu1 %v874_v2  ;;  %v879_v7 = vld [vmem:[%s988_s25 + $0x8] sm:$0xff]   ;;  %v883_v11 = vld [vmem:[%s988_s25 + $0x10] sm:$0xff]  }
  0x1b   : > { %v876_v4 = vld [vmem:[%s988_s25 + $0x80] sm:$0xff]   ;;  %805 = vmatpush3.bf16.msra.mxu0 %v875_v3  ;;  %v880_v8 = vld [vmem:[%s988_s25 + $0x88] sm:$0xff]   ;;  %v884_v12 = vld [vmem:[%s988_s25 + $0x90] sm:$0xff]   ;;  %v634_v56 = vand.u32 (!%p799_p7), 127, %v633_v54 }
  0x1c   : > { %827 = vmatpush3.bf16.msra.mxu1 %v876_v4  ;;  %806 = vmatprep.subr.bf16.mxu0 %v877_v5  ;;  %v885_v13 = vld [vmem:[%s988_s25 + $0x58] sm:$0xff]   ;;  %v889_v17 = vld [vmem:[%s988_s25 + $0x60] sm:$0xff]   ;;  %v893_v21 = vld [vmem:[%s988_s25 + $0x68] sm:$0xff]  }
  0x1d   : > { %828 = vmatprep.subr.bf16.mxu1 %v878_v6  ;;  %v886_v14 = vld [vmem:[%s988_s25 + $0xd8] sm:$0xff]   ;;  %v890_v18 = vld [vmem:[%s988_s25 + $0xe0] sm:$0xff]   ;;  %v894_v22 = vld [vmem:[%s988_s25 + $0xe8] sm:$0xff]   ;;  %vm635_vm0 = vcmp.lt.s32.totalorder (!%p799_p7), %v634_v56, 10 }
  0x1e   : > { %v887_v15 = vld [vmem:[%s988_s25 + $0x18] sm:$0xff]   ;;  %v891_v19 = vld [vmem:[%s988_s25 + $0x20] sm:$0xff]   ;;  %v895_v23 = vld [vmem:[%s988_s25 + $0x28] sm:$0xff]  }
  0x1f   : > { %807 = vmatpush3.bf16.msra.mxu0 %v879_v7  ;;  %v888_v16 = vld [vmem:[%s988_s25 + $0x98] sm:$0xff]   ;;  %v892_v20 = vld [vmem:[%s988_s25 + $0xa0] sm:$0xff]   ;;  %v896_v24 = vld [vmem:[%s988_s25 + $0xa8] sm:$0xff]  }
  0x20   : > { %829 = vmatpush3.bf16.msra.mxu1 %v880_v8  ;;  %808 = vmatprep.subr.bf16.mxu0 %v881_v9  ;;  %v897_v25 = vld [vmem:[%s988_s25 + $0x70] sm:$0xff]   ;;  %v901_v29 = vld [vmem:[%s988_s25 + $0x78] sm:$0xff]   ;;  %v266_v33 = vld [vmem:[%s983_s21] sm:$0xff] }
  0x21   : > { %830 = vmatprep.subr.bf16.mxu1 %v882_v10  ;;  %v898_v26 = vld [vmem:[%s988_s25 + $0xf0] sm:$0xff]   ;;  %v902_v30 = vld [vmem:[%s988_s25 + $0xf8] sm:$0xff]   ;;  %v267_v34 = vld [vmem:[%s983_s21 + $0x8] sm:$0xff]  ;;  %v763_v35 = vcombine.low %v266_v33, %v266_v33  ;;  %v764_v36 = vcombine.high %v266_v33, %v266_v33 }
  0x22   : > { %v899_v27 = vld [vmem:[%s988_s25 + $0x30] sm:$0xff]   ;;  %v903_v31 = vld [vmem:[%s988_s25 + $0x38] sm:$0xff]   ;;  %v765_v37 = vcombine.low %v267_v34, %v267_v34  ;;  %v766_v38 = vcombine.high %v267_v34, %v267_v34  ;;  %v265_v47 = vld [vmem:[#allocation2] sm:$0xff] }
  0x23   : > { %809 = vmatpush3.bf16.msra.mxu0 %v883_v11  ;;  %v900_v28 = vld [vmem:[%s988_s25 + $0xb0] sm:$0xff]   ;;  %v904_v32 = vld [vmem:[%s988_s25 + $0xb8] sm:$0xff]   ;;  %570 = vmatprep.mubr.bf16.mxu0 %v764_v36  ;;  %v800_v53 = vld [vmem:[%s1043_s2] ss:$0 sm:$0xff] (!%p799_p7) }
  0x24   : > { %831 = vmatpush3.bf16.msra.mxu1 %v884_v12  ;;  %810 = vmatprep.subr.bf16.mxu0 %v885_v13 }
  0x25   : > { %832 = vmatprep.subr.bf16.mxu1 %v886_v14  ;;  %610 = vmatprep.mubr.bf16.mxu1 %v766_v38 }
  0x27   : > { %811 = vmatpush3.bf16.msra.mxu0 %v887_v15 }
  0x28   : > { %833 = vmatpush3.bf16.msra.mxu1 %v888_v16  ;;  %812 = vmatprep.subr.bf16.mxu0 %v889_v17 }
  0x29   : > { %834 = vmatprep.subr.bf16.mxu1 %v890_v18 }
  0x2b   : > { %813 = vmatpush3.bf16.msra.mxu0 %v891_v19 }
  0x2c   : > { %835 = vmatpush3.bf16.msra.mxu1 %v892_v20  ;;  %814 = vmatprep.subr.bf16.mxu0 %v893_v21 }
  0x2d   : > { %836 = vmatprep.subr.bf16.mxu1 %v894_v22 }
  0x2f   : > { %815 = vmatpush3.bf16.msra.mxu0 %v895_v23 }
  0x30   : > { %837 = vmatpush3.bf16.msra.mxu1 %v896_v24  ;;  %816 = vmatprep.subr.bf16.mxu0 %v897_v25 }
  0x31   : > { %838 = vmatprep.subr.bf16.mxu1 %v898_v26 }
  0x33   : > { %817 = vmatpush3.bf16.msra.mxu0 %v899_v27 }
  0x34   : > { %839 = vmatpush3.bf16.msra.mxu1 %v900_v28  ;;  %818 = vmatprep.subr.bf16.mxu0 %v901_v29 }
  0x35   : > { %840 = vmatprep.subr.bf16.mxu1 %v902_v30 }
  0x37   : > { %819 = vmatpush3.bf16.msra.mxu0 %v903_v31 }
  0x38   : > { %841 = vmatpush3.bf16.msra.mxu1 %v904_v32 }
  0x3a   : > { %571 = vmatmul.mubr.bf16.vlgmr.msra.gmra.mrb[0].mxu0 %v763_v35 }
  0x3b   : > { %611 = vmatmul.mubr.bf16.vlgmr.msra.gmra.mrb[0].mxu1 %v765_v37 }
 0x10d   : > { %v820_v39 = vpop.f32.mrb[0].mxu0 }
 0x10e   : > { %v842_v40 = vpop.f32.mrb[0].mxu1  ;;  %v821_v41 = vpop.f32.mrb[1].mxu0 }
 0x10f   : > { %v843_v42 = vpop.f32.mrb[1].mxu1  ;;  %v822_v43 = vadd.f32 %v821_v41, %v820_v39  ;;  %v823_v45 = vpop.f32.mrb[2].mxu0 }
 0x110   : > { %v844_v44 = vadd.f32 %v843_v42, %v842_v40  ;;  %v845_v46 = vpop.f32.mrb[2].mxu1  ;;  %v824_v48 = vpop.f32.mrb[3].mxu0  ;;  %623 = sbr.rel (%p799_p7) target bundleno = 603 (0x25b), region = 40 }
 0x111   : > { %v846_v49 = vpop.f32.mrb[3].mxu1 }
 0x112   : > { %v613_v50 = vadd.f32 %v844_v44, %v822_v43 }
 0x114   : > { %v618_v51 = vadd.f32 %v613_v50, %v265_v47 }
 0x116   : > { %619 = vst [vmem:[#allocation2] sm:$0xff] %v618_v51 }
 0x11d   : > { %v624_v52 = vld [vmem:[#allocation2] sm:$0xff] }
 0x11e   : > { %v632_v55 = vadd.f32 %v800_v53, %v624_v52 }
 0x120   : > { %v636_v57 = vsel %vm635_vm0, %v632_v55, -1e+30 }
 0x121   : > { %637 = vmax.xlane.f32.xlu0 %v636_v57 }
 0x1ae   : > { %v638_v58 = vpop.xlane.xlu0 %637 }
 0x1af   : > { %v639_v59 = vsub.f32 %v632_v55, %v638_v58 }
 0x1b1   : > { %v640_v60 = vmul.f32 1.442695, %v639_v59 }
 0x1b3   : > { %909 = vpow2.f32 %v640_v60 }
 0x1bd   : > { %v910_v61 = vpop.eup %909 }
 0x1be   : > { %v642_v62 = vsel %vm635_vm0, %v910_v61, 0.0 }
 0x1bf   : > { %643 = vadd.xlane.f32.xlu0 %v642_v62 }
 0x24c   : > { %v644_v63 = vpop.xlane.xlu0 %643 }
 0x24d   : > { %911 = vrcp.f32 %v644_v63 }
 0x257   : > { %v912_v0 = vpop.eup %911 }
 0x258   : > { %v646_v1 = vmul.f32 %v912_v0, %v642_v62 }
 0x25a   : > { %647 = vst [vmem:[%s1044_s3] sm:$0xff] %v646_v1 }
 0x25b PF: > { %s13_s14 = sadd.s32 1, %s935_s14   ;;  %s1045_s12 = smov %s931_s13 }
 0x25c   : > { %p10_p8 = scmp.ge.s32.totalorder %s13_s14, 6   ;;  %s1046_s13 = smov %s1048_s15 }
 0x25e   :  { %12 = sbr.rel (!%p10_p8) target bundleno = 2 (0x2), region = 76 }

// kernel: proto_cnn_forward.16
= control target key start
LH: loop header
LB: loop body
LE: loop exit
PB: predicated region body
PF: predicated region fallthrough
CT: control target
= control target key end

     0   :  { %s2171_s12 = smov 0   ;;  %s2173_s13 = smov 0   ;;  %s2687_s0 = inlined_call_operand.vmem [shape: bf16[8,4096], index: 0, kind: input, shape index: {}]   ;;  %s2688_s1 = inlined_call_operand.vmem [shape: bf16[4096,2048], index: 1, kind: input, shape index: {}]   ;;  %s2689_s2 = inlined_call_operand.vmem [shape: f32[1,2048], index: 2, kind: input, shape index: {}]   ;;  %s2690_s3 = inlined_call_operand.vmem [shape: bf16[8,2048], index: 3, kind: output, shape index: {}]  }
   0x1   :  { %s2175_s14 = smov 0   ;;  %s2177_s15 = smov 0  }
   0x2   :  { %s2179_s16 = smov 0   ;;  %s2181_s17 = smov 0  }
   0x3   :  { %s2183_s18 = smov 0  }
   0x4 LB: > { %s25_s19 = sadd.s32 1, %s2140_s16  ;;  %s28_s20 = sadd.s32 1, %s2144_s17  ;;  %s2148_s18 = sphi %s2183_s18, %s13_s18   ;;  %s2144_s17 = sphi %s2181_s17, %s2696_s17   ;;  %s2140_s16 = sphi %s2179_s16, %s2695_s16   ;;  %s2136_s15 = sphi %s2177_s15, %s2694_s15   ;;  %s2132_s14 = sphi %s2175_s14, %s2693_s14   ;;  %s2128_s13 = sphi %s2173_s13, %s2692_s13   ;;  %s2124_s12 = sphi %s2171_s12, %s2691_s12  }
   0x5   : > { %p26_p0 = scmp.ge.s32.totalorder %s25_s19, 8  ;;  %p76_p1 = scmp.ne.s32.totalorder %s2128_s13, %s2124_s12 }
   0x6   : > { %p77_p2 = scmp.eq.s32.totalorder %s2148_s18, 0  ;;  %s69_s24 = sadd.s32 1, %s2128_s13 }
   0x7   : > { %s2698_s19 = smov (%p26_p0, %s25_s19), 0  ;;  %s2700_s20 = smov (!%p26_p0, %s28_s20), %s2144_s17 }
   0x8   : > { %p78_p3 = por %p77_p2, %p76_p1  ;;  %p30_p4 = scmp.ge.s32.totalorder %s2700_s20, 4 }
   0x9   : > { %s64_s21 = ssub.s32 %s2140_s16, %s2698_s19  ;;  %p1687_p6 = scmp.ge.s32.totalorder %s2148_s18, 32 }
   0xa   : > { %s2702_s20 = smov (%p30_p4, %s2700_s20), 0 }
   0xb   : > { %s65_s22 = ssub.s32 %s2144_s17, %s2702_s20  ;;  %156 = sbr.rel (%p1687_p6) target bundleno = 89 (0x59), region = 16 }
   0xc   : > { %s66_s23 = sor.u32 %s65_s22, %s64_s21 }
   0xd   : > { %p67_p5 = scmp.eq.s32.totalorder %s66_s23, 0 }
   0xf   : > { %s2222_s25 = scalar_select %p67_p5, %s2128_s13, %s69_s24  }
  0x12   : > { %172 = sbr.rel (!%p78_p3) target bundleno = 89 (0x59), region = 24  ;;  %s174_s26 = sand.u32 (%p78_p3), 1, %s2128_s13  }
  0x13   : > { %s1690_s27 = sshll.u32 (%p78_p3), %s2144_s17, 2  ;;  %s1688_s28 = sshll.u32 (%p78_p3), %s174_s26, 10 }
  0x14   : > { %s1838_s29 = sshll.u32 (%p78_p3), %s2140_s16, 10  ;;  %s2236_s8 = scalar_lea.vmem (%p78_p3), [#allocation3], %s1688_s28 }
  0x15   : > { %s180_s30 = sadd.s32 (%p78_p3), %s1838_s29, %s1690_s27 }
  0x16   : > { %s1692_s4 = sshll.u32 (%p78_p3), %s180_s30, 2 }
  0x17   : > { %s2231_s7 = scalar_lea.vmem (%p78_p3), %s2688_s1, %s1692_s4 }
  0x18   : > { %v195_v0 = vld [vmem:[%s2231_s7] sm:$0xff] (%p78_p3)  ;;  %v197_v1 = vld [vmem:[%s2231_s7 + $0x8] sm:$0xff] (%p78_p3) }
  0x19   : > { %v199_v2 = vld [vmem:[%s2231_s7 + $0x40] sm:$0xff]  ;;  %196 = vst [vmem:[%s2236_s8] sm:$0xff] %v195_v0  ;;  %198 = vst [vmem:[%s2236_s8 + $0x8] sm:$0xff] %v197_v1  ;;  %v201_v3 = vld [vmem:[%s2231_s7 + $0x48] sm:$0xff] }
  0x1a   : > { %200 = vst [vmem:[%s2236_s8 + $0x10] sm:$0xff] %v199_v2  ;;  %v203_v4 = vld [vmem:[%s2231_s7 + $0x80] sm:$0xff]  ;;  %v205_v5 = vld [vmem:[%s2231_s7 + $0x88] sm:$0xff]  ;;  %202 = vst [vmem:[%s2236_s8 + $0x18] sm:$0xff] %v201_v3 }
  0x1b   : > { %204 = vst [vmem:[%s2236_s8 + $0x20] sm:$0xff] %v203_v4  ;;  %206 = vst [vmem:[%s2236_s8 + $0x28] sm:$0xff] %v205_v5  ;;  %v207_v6 = vld [vmem:[%s2231_s7 + $0xc0] sm:$0xff]  ;;  %v209_v7 = vld [vmem:[%s2231_s7 + $0xc8] sm:$0xff] }
  0x1c   : > { %v211_v8 = vld [vmem:[%s2231_s7 + $0x100] sm:$0xff]  ;;  %208 = vst [vmem:[%s2236_s8 + $0x30] sm:$0xff] %v207_v6  ;;  %210 = vst [vmem:[%s2236_s8 + $0x38] sm:$0xff] %v209_v7  ;;  %v213_v9 = vld [vmem:[%s2231_s7 + $0x108] sm:$0xff] }
  0x1d   : > { %212 = vst [vmem:[%s2236_s8 + $0x40] sm:$0xff] %v211_v8  ;;  %v215_v10 = vld [vmem:[%s2231_s7 + $0x140] sm:$0xff]  ;;  %v217_v11 = vld [vmem:[%s2231_s7 + $0x148] sm:$0xff]  ;;  %214 = vst [vmem:[%s2236_s8 + $0x48] sm:$0xff] %v213_v9 }
  0x1e   : > { %216 = vst [vmem:[%s2236_s8 + $0x50] sm:$0xff] %v215_v10  ;;  %218 = vst [vmem:[%s2236_s8 + $0x58] sm:$0xff] %v217_v11  ;;  %v219_v12 = vld [vmem:[%s2231_s7 + $0x180] sm:$0xff]  ;;  %v221_v13 = vld [vmem:[%s2231_s7 + $0x188] sm:$0xff] }
  0x1f   : > { %v223_v14 = vld [vmem:[%s2231_s7 + $0x1c0] sm:$0xff]  ;;  %220 = vst [vmem:[%s2236_s8 + $0x60] sm:$0xff] %v219_v12  ;;  %222 = vst [vmem:[%s2236_s8 + $0x68] sm:$0xff] %v221_v13  ;;  %v225_v15 = vld [vmem:[%s2231_s7 + $0x1c8] sm:$0xff] }
  0x20   : > { %224 = vst [vmem:[%s2236_s8 + $0x70] sm:$0xff] %v223_v14  ;;  %v227_v16 = vld [vmem:[%s2231_s7 + $0x200] sm:$0xff]  ;;  %v229_v17 = vld [vmem:[%s2231_s7 + $0x208] sm:$0xff]  ;;  %226 = vst [vmem:[%s2236_s8 + $0x78] sm:$0xff] %v225_v15 }
  0x21   : > { %228 = vst [vmem:[%s2236_s8 + $0x80] sm:$0xff] %v227_v16  ;;  %230 = vst [vmem:[%s2236_s8 + $0x88] sm:$0xff] %v229_v17  ;;  %v231_v18 = vld [vmem:[%s2231_s7 + $0x240] sm:$0xff]  ;;  %v233_v19 = vld [vmem:[%s2231_s7 + $0x248] sm:$0xff] }
  0x22   : > { %v235_v20 = vld [vmem:[%s2231_s7 + $0x280] sm:$0xff]  ;;  %232 = vst [vmem:[%s2236_s8 + $0x90] sm:$0xff] %v231_v18  ;;  %234 = vst [vmem:[%s2236_s8 + $0x98] sm:$0xff] %v233_v19  ;;  %v237_v21 = vld [vmem:[%s2231_s7 + $0x288] sm:$0xff] }
  0x23   : > { %236 = vst [vmem:[%s2236_s8 + $0xa0] sm:$0xff] %v235_v20  ;;  %v239_v22 = vld [vmem:[%s2231_s7 + $0x2c0] sm:$0xff]  ;;  %v241_v23 = vld [vmem:[%s2231_s7 + $0x2c8] sm:$0xff]  ;;  %238 = vst [vmem:[%s2236_s8 + $0xa8] sm:$0xff] %v237_v21 }
  0x24   : > { %240 = vst [vmem:[%s2236_s8 + $0xb0] sm:$0xff] %v239_v22  ;;  %242 = vst [vmem:[%s2236_s8 + $0xb8] sm:$0xff] %v241_v23  ;;  %v243_v24 = vld [vmem:[%s2231_s7 + $0x300] sm:$0xff]  ;;  %v245_v25 = vld [vmem:[%s2231_s7 + $0x308] sm:$0xff] }
  0x25   : > { %v247_v26 = vld [vmem:[%s2231_s7 + $0x340] sm:$0xff]  ;;  %244 = vst [vmem:[%s2236_s8 + $0xc0] sm:$0xff] %v243_v24  ;;  %246 = vst [vmem:[%s2236_s8 + $0xc8] sm:$0xff] %v245_v25  ;;  %v249_v27 = vld [vmem:[%s2231_s7 + $0x348] sm:$0xff] }
  0x26   : > { %248 = vst [vmem:[%s2236_s8 + $0xd0] sm:$0xff] %v247_v26  ;;  %v251_v28 = vld [vmem:[%s2231_s7 + $0x380] sm:$0xff]  ;;  %v253_v29 = vld [vmem:[%s2231_s7 + $0x388] sm:$0xff]  ;;  %250 = vst [vmem:[%s2236_s8 + $0xd8] sm:$0xff] %v249_v27 }
  0x27   : > { %252 = vst [vmem:[%s2236_s8 + $0xe0] sm:$0xff] %v251_v28  ;;  %254 = vst [vmem:[%s2236_s8 + $0xe8] sm:$0xff] %v253_v29  ;;  %v255_v30 = vld [vmem:[%s2231_s7 + $0x3c0] sm:$0xff]  ;;  %v257_v31 = vld [vmem:[%s2231_s7 + $0x3c8] sm:$0xff] }
  0x28   : > { %v259_v32 = vld [vmem:[%s2231_s7 + $0x400] sm:$0xff]  ;;  %256 = vst [vmem:[%s2236_s8 + $0xf0] sm:$0xff] %v255_v30  ;;  %258 = vst [vmem:[%s2236_s8 + $0xf8] sm:$0xff] %v257_v31  ;;  %v261_v33 = vld [vmem:[%s2231_s7 + $0x408] sm:$0xff] }
  0x29   : > { %260 = vst [vmem:[%s2236_s8 + $0x100] sm:$0xff] %v259_v32  ;;  %v263_v34 = vld [vmem:[%s2231_s7 + $0x440] sm:$0xff]  ;;  %v265_v35 = vld [vmem:[%s2231_s7 + $0x448] sm:$0xff]  ;;  %262 = vst [vmem:[%s2236_s8 + $0x108] sm:$0xff] %v261_v33 }
  0x2a   : > { %264 = vst [vmem:[%s2236_s8 + $0x110] sm:$0xff] %v263_v34  ;;  %266 = vst [vmem:[%s2236_s8 + $0x118] sm:$0xff] %v265_v35  ;;  %v267_v36 = vld [vmem:[%s2231_s7 + $0x480] sm:$0xff]  ;;  %v269_v37 = vld [vmem:[%s2231_s7 + $0x488] sm:$0xff] }
  0x2b   : > { %v271_v38 = vld [vmem:[%s2231_s7 + $0x4c0] sm:$0xff]  ;;  %268 = vst [vmem:[%s2236_s8 + $0x120] sm:$0xff] %v267_v36  ;;  %270 = vst [vmem:[%s2236_s8 + $0x128] sm:$0xff] %v269_v37  ;;  %v273_v39 = vld [vmem:[%s2231_s7 + $0x4c8] sm:$0xff] }
  0x2c   : > { %272 = vst [vmem:[%s2236_s8 + $0x130] sm:$0xff] %v271_v38  ;;  %v275_v40 = vld [vmem:[%s2231_s7 + $0x500] sm:$0xff]  ;;  %v277_v41 = vld [vmem:[%s2231_s7 + $0x508] sm:$0xff]  ;;  %274 = vst [vmem:[%s2236_s8 + $0x138] sm:$0xff] %v273_v39 }
  0x2d   : > { %276 = vst [vmem:[%s2236_s8 + $0x140] sm:$0xff] %v275_v40  ;;  %278 = vst [vmem:[%s2236_s8 + $0x148] sm:$0xff] %v277_v41  ;;  %v279_v42 = vld [vmem:[%s2231_s7 + $0x540] sm:$0xff]  ;;  %v281_v43 = vld [vmem:[%s2231_s7 + $0x548] sm:$0xff] }
  0x2e   : > { %v283_v44 = vld [vmem:[%s2231_s7 + $0x580] sm:$0xff]  ;;  %280 = vst [vmem:[%s2236_s8 + $0x150] sm:$0xff] %v279_v42  ;;  %282 = vst [vmem:[%s2236_s8 + $0x158] sm:$0xff] %v281_v43  ;;  %v285_v45 = vld [vmem:[%s2231_s7 + $0x588] sm:$0xff] }
  0x2f   : > { %284 = vst [vmem:[%s2236_s8 + $0x160] sm:$0xff] %v283_v44  ;;  %v287_v46 = vld [vmem:[%s2231_s7 + $0x5c0] sm:$0xff]  ;;  %v289_v47 = vld [vmem:[%s2231_s7 + $0x5c8] sm:$0xff]  ;;  %286 = vst [vmem:[%s2236_s8 + $0x168] sm:$0xff] %v285_v45 }
  0x30   : > { %288 = vst [vmem:[%s2236_s8 + $0x170] sm:$0xff] %v287_v46  ;;  %290 = vst [vmem:[%s2236_s8 + $0x178] sm:$0xff] %v289_v47  ;;  %v291_v48 = vld [vmem:[%s2231_s7 + $0x600] sm:$0xff]  ;;  %v293_v49 = vld [vmem:[%s2231_s7 + $0x608] sm:$0xff] }
  0x31   : > { %v295_v50 = vld [vmem:[%s2231_s7 + $0x640] sm:$0xff]  ;;  %292 = vst [vmem:[%s2236_s8 + $0x180] sm:$0xff] %v291_v48  ;;  %294 = vst [vmem:[%s2236_s8 + $0x188] sm:$0xff] %v293_v49  ;;  %v297_v51 = vld [vmem:[%s2231_s7 + $0x648] sm:$0xff] }
  0x32   : > { %296 = vst [vmem:[%s2236_s8 + $0x190] sm:$0xff] %v295_v50  ;;  %v299_v52 = vld [vmem:[%s2231_s7 + $0x680] sm:$0xff]  ;;  %v301_v53 = vld [vmem:[%s2231_s7 + $0x688] sm:$0xff]  ;;  %298 = vst [vmem:[%s2236_s8 + $0x198] sm:$0xff] %v297_v51 }
  0x33   : > { %300 = vst [vmem:[%s2236_s8 + $0x1a0] sm:$0xff] %v299_v52  ;;  %302 = vst [vmem:[%s2236_s8 + $0x1a8] sm:$0xff] %v301_v53  ;;  %v303_v54 = vld [vmem:[%s2231_s7 + $0x6c0] sm:$0xff]  ;;  %v305_v55 = vld [vmem:[%s2231_s7 + $0x6c8] sm:$0xff] }
  0x34   : > { %v307_v56 = vld [vmem:[%s2231_s7 + $0x700] sm:$0xff]  ;;  %304 = vst [vmem:[%s2236_s8 + $0x1b0] sm:$0xff] %v303_v54  ;;  %306 = vst [vmem:[%s2236_s8 + $0x1b8] sm:$0xff] %v305_v55  ;;  %v309_v57 = vld [vmem:[%s2231_s7 + $0x708] sm:$0xff] }
  0x35   : > { %308 = vst [vmem:[%s2236_s8 + $0x1c0] sm:$0xff] %v307_v56  ;;  %v311_v58 = vld [vmem:[%s2231_s7 + $0x740] sm:$0xff]  ;;  %v313_v59 = vld [vmem:[%s2231_s7 + $0x748] sm:$0xff]  ;;  %310 = vst [vmem:[%s2236_s8 + $0x1c8] sm:$0xff] %v309_v57 }
  0x36   : > { %312 = vst [vmem:[%s2236_s8 + $0x1d0] sm:$0xff] %v311_v58  ;;  %314 = vst [vmem:[%s2236_s8 + $0x1d8] sm:$0xff] %v313_v59  ;;  %v315_v60 = vld [vmem:[%s2231_s7 + $0x780] sm:$0xff]  ;;  %v317_v61 = vld [vmem:[%s2231_s7 + $0x788] sm:$0xff] }
  0x37   : > { %v319_v62 = vld [vmem:[%s2231_s7 + $0x7c0] sm:$0xff]  ;;  %316 = vst [vmem:[%s2236_s8 + $0x1e0] sm:$0xff] %v315_v60  ;;  %318 = vst [vmem:[%s2236_s8 + $0x1e8] sm:$0xff] %v317_v61  ;;  %v321_v63 = vld [vmem:[%s2231_s7 + $0x7c8] sm:$0xff] }
  0x38   : > { %320 = vst [vmem:[%s2236_s8 + $0x1f0] sm:$0xff] %v319_v62  ;;  %v323_v0 = vld [vmem:[%s2231_s7 + $0x800] sm:$0xff]  ;;  %v325_v1 = vld [vmem:[%s2231_s7 + $0x808] sm:$0xff]  ;;  %322 = vst [vmem:[%s2236_s8 + $0x1f8] sm:$0xff] %v321_v63 }
  0x39   : > { %324 = vst [vmem:[%s2236_s8 + $0x200] sm:$0xff] %v323_v0  ;;  %326 = vst [vmem:[%s2236_s8 + $0x208] sm:$0xff] %v325_v1  ;;  %v327_v2 = vld [vmem:[%s2231_s7 + $0x840] sm:$0xff]  ;;  %v329_v3 = vld [vmem:[%s2231_s7 + $0x848] sm:$0xff] }
  0x3a   : > { %v331_v4 = vld [vmem:[%s2231_s7 + $0x880] sm:$0xff]  ;;  %328 = vst [vmem:[%s2236_s8 + $0x210] sm:$0xff] %v327_v2  ;;  %330 = vst [vmem:[%s2236_s8 + $0x218] sm:$0xff] %v329_v3  ;;  %v333_v5 = vld [vmem:[%s2231_s7 + $0x888] sm:$0xff] }
  0x3b   : > { %332 = vst [vmem:[%s2236_s8 + $0x220] sm:$0xff] %v331_v4  ;;  %v335_v6 = vld [vmem:[%s2231_s7 + $0x8c0] sm:$0xff]  ;;  %v337_v7 = vld [vmem:[%s2231_s7 + $0x8c8] sm:$0xff]  ;;  %334 = vst [vmem:[%s2236_s8 + $0x228] sm:$0xff] %v333_v5 }
  0x3c   : > { %336 = vst [vmem:[%s2236_s8 + $0x230] sm:$0xff] %v335_v6  ;;  %338 = vst [vmem:[%s2236_s8 + $0x238] sm:$0xff] %v337_v7  ;;  %v339_v8 = vld [vmem:[%s2231_s7 + $0x900] sm:$0xff]  ;;  %v341_v9 = vld [vmem:[%s2231_s7 + $0x908] sm:$0xff] }
  0x3d   : > { %v343_v10 = vld [vmem:[%s2231_s7 + $0x940] sm:$0xff]  ;;  %340 = vst [vmem:[%s2236_s8 + $0x240] sm:$0xff] %v339_v8  ;;  %342 = vst [vmem:[%s2236_s8 + $0x248] sm:$0xff] %v341_v9  ;;  %v345_v11 = vld [vmem:[%s2231_s7 + $0x948] sm:$0xff] }
  0x3e   : > { %344 = vst [vmem:[%s2236_s8 + $0x250] sm:$0xff] %v343_v10  ;;  %v347_v12 = vld [vmem:[%s2231_s7 + $0x980] sm:$0xff]  ;;  %v349_v13 = vld [vmem:[%s2231_s7 + $0x988] sm:$0xff]  ;;  %346 = vst [vmem:[%s2236_s8 + $0x258] sm:$0xff] %v345_v11 }
  0x3f   : > { %348 = vst [vmem:[%s2236_s8 + $0x260] sm:$0xff] %v347_v12  ;;  %350 = vst [vmem:[%s2236_s8 + $0x268] sm:$0xff] %v349_v13  ;;  %v351_v14 = vld [vmem:[%s2231_s7 + $0x9c0] sm:$0xff]  ;;  %v353_v15 = vld [vmem:[%s2231_s7 + $0x9c8] sm:$0xff] }
  0x40   : > { %v355_v16 = vld [vmem:[%s2231_s7 + $0xa00] sm:$0xff]  ;;  %352 = vst [vmem:[%s2236_s8 + $0x270] sm:$0xff] %v351_v14  ;;  %354 = vst [vmem:[%s2236_s8 + $0x278] sm:$0xff] %v353_v15  ;;  %v357_v17 = vld [vmem:[%s2231_s7 + $0xa08] sm:$0xff] }
  0x41   : > { %356 = vst [vmem:[%s2236_s8 + $0x280] sm:$0xff] %v355_v16  ;;  %v359_v18 = vld [vmem:[%s2231_s7 + $0xa40] sm:$0xff]  ;;  %v361_v19 = vld [vmem:[%s2231_s7 + $0xa48] sm:$0xff]  ;;  %358 = vst [vmem:[%s2236_s8 + $0x288] sm:$0xff] %v357_v17 }
  0x42   : > { %360 = vst [vmem:[%s2236_s8 + $0x290] sm:$0xff] %v359_v18  ;;  %362 = vst [vmem:[%s2236_s8 + $0x298] sm:$0xff] %v361_v19  ;;  %v363_v20 = vld [vmem:[%s2231_s7 + $0xa80] sm:$0xff]  ;;  %v365_v21 = vld [vmem:[%s2231_s7 + $0xa88] sm:$0xff] }
  0x43   : > { %v367_v22 = vld [vmem:[%s2231_s7 + $0xac0] sm:$0xff]  ;;  %364 = vst [vmem:[%s2236_s8 + $0x2a0] sm:$0xff] %v363_v20  ;;  %366 = vst [vmem:[%s2236_s8 + $0x2a8] sm:$0xff] %v365_v21  ;;  %v369_v23 = vld [vmem:[%s2231_s7 + $0xac8] sm:$0xff] }
  0x44   : > { %368 = vst [vmem:[%s2236_s8 + $0x2b0] sm:$0xff] %v367_v22  ;;  %v371_v24 = vld [vmem:[%s2231_s7 + $0xb00] sm:$0xff]  ;;  %v373_v25 = vld [vmem:[%s2231_s7 + $0xb08] sm:$0xff]  ;;  %370 = vst [vmem:[%s2236_s8 + $0x2b8] sm:$0xff] %v369_v23 }
  0x45   : > { %372 = vst [vmem:[%s2236_s8 + $0x2c0] sm:$0xff] %v371_v24  ;;  %374 = vst [vmem:[%s2236_s8 + $0x2c8] sm:$0xff] %v373_v25  ;;  %v375_v26 = vld [vmem:[%s2231_s7 + $0xb40] sm:$0xff]  ;;  %v377_v27 = vld [vmem:[%s2231_s7 + $0xb48] sm:$0xff] }
  0x46   : > { %v379_v28 = vld [vmem:[%s2231_s7 + $0xb80] sm:$0xff]  ;;  %376 = vst [vmem:[%s2236_s8 + $0x2d0] sm:$0xff] %v375_v26  ;;  %378 = vst [vmem:[%s2236_s8 + $0x2d8] sm:$0xff] %v377_v27  ;;  %v381_v29 = vld [vmem:[%s2231_s7 + $0xb88] sm:$0xff] }
  0x47   : > { %380 = vst [vmem:[%s2236_s8 + $0x2e0] sm:$0xff] %v379_v28  ;;  %v383_v30 = vld [vmem:[%s2231_s7 + $0xbc0] sm:$0xff]  ;;  %v385_v31 = vld [vmem:[%s2231_s7 + $0xbc8] sm:$0xff]  ;;  %382 = vst [vmem:[%s2236_s8 + $0x2e8] sm:$0xff] %v381_v29 }
  0x48   : > { %384 = vst [vmem:[%s2236_s8 + $0x2f0] sm:$0xff] %v383_v30  ;;  %386 = vst [vmem:[%s2236_s8 + $0x2f8] sm:$0xff] %v385_v31  ;;  %v387_v32 = vld [vmem:[%s2231_s7 + $0xc00] sm:$0xff]  ;;  %v389_v33 = vld [vmem:[%s2231_s7 + $0xc08] sm:$0xff] }
  0x49   : > { %v391_v34 = vld [vmem:[%s2231_s7 + $0xc40] sm:$0xff]  ;;  %388 = vst [vmem:[%s2236_s8 + $0x300] sm:$0xff] %v387_v32  ;;  %390 = vst [vmem:[%s2236_s8 + $0x308] sm:$0xff] %v389_v33  ;;  %v393_v35 = vld [vmem:[%s2231_s7 + $0xc48] sm:$0xff] }
  0x4a   : > { %392 = vst [vmem:[%s2236_s8 + $0x310] sm:$0xff] %v391_v34  ;;  %v395_v36 = vld [vmem:[%s2231_s7 + $0xc80] sm:$0xff]  ;;  %v397_v37 = vld [vmem:[%s2231_s7 + $0xc88] sm:$0xff]  ;;  %394 = vst [vmem:[%s2236_s8 + $0x318] sm:$0xff] %v393_v35 }
  0x4b   : > { %396 = vst [vmem:[%s2236_s8 + $0x320] sm:$0xff] %v395_v36  ;;  %398 = vst [vmem:[%s2236_s8 + $0x328] sm:$0xff] %v397_v37  ;;  %v399_v38 = vld [vmem:[%s2231_s7 + $0xcc0] sm:$0xff]  ;;  %v401_v39 = vld [vmem:[%s2231_s7 + $0xcc8] sm:$0xff] }
  0x4c   : > { %v403_v40 = vld [vmem:[%s2231_s7 + $0xd00] sm:$0xff]  ;;  %400 = vst [vmem:[%s2236_s8 + $0x330] sm:$0xff] %v399_v38  ;;  %402 = vst [vmem:[%s2236_s8 + $0x338] sm:$0xff] %v401_v39  ;;  %v405_v41 = vld [vmem:[%s2231_s7 + $0xd08] sm:$0xff] }
  0x4d   : > { %404 = vst [vmem:[%s2236_s8 + $0x340] sm:$0xff] %v403_v40  ;;  %v407_v42 = vld [vmem:[%s2231_s7 + $0xd40] sm:$0xff]  ;;  %v409_v43 = vld [vmem:[%s2231_s7 + $0xd48] sm:$0xff]  ;;  %406 = vst [vmem:[%s2236_s8 + $0x348] sm:$0xff] %v405_v41 }
  0x4e   : > { %408 = vst [vmem:[%s2236_s8 + $0x350] sm:$0xff] %v407_v42  ;;  %410 = vst [vmem:[%s2236_s8 + $0x358] sm:$0xff] %v409_v43  ;;  %v411_v44 = vld [vmem:[%s2231_s7 + $0xd80] sm:$0xff]  ;;  %v413_v45 = vld [vmem:[%s2231_s7 + $0xd88] sm:$0xff] }
  0x4f   : > { %v415_v46 = vld [vmem:[%s2231_s7 + $0xdc0] sm:$0xff]  ;;  %412 = vst [vmem:[%s2236_s8 + $0x360] sm:$0xff] %v411_v44  ;;  %414 = vst [vmem:[%s2236_s8 + $0x368] sm:$0xff] %v413_v45  ;;  %v417_v47 = vld [vmem:[%s2231_s7 + $0xdc8] sm:$0xff] }
  0x50   : > { %416 = vst [vmem:[%s2236_s8 + $0x370] sm:$0xff] %v415_v46  ;;  %v419_v48 = vld [vmem:[%s2231_s7 + $0xe00] sm:$0xff]  ;;  %v421_v49 = vld [vmem:[%s2231_s7 + $0xe08] sm:$0xff]  ;;  %418 = vst [vmem:[%s2236_s8 + $0x378] sm:$0xff] %v417_v47 }
  0x51   : > { %420 = vst [vmem:[%s2236_s8 + $0x380] sm:$0xff] %v419_v48  ;;  %422 = vst [vmem:[%s2236_s8 + $0x388] sm:$0xff] %v421_v49  ;;  %v423_v50 = vld [vmem:[%s2231_s7 + $0xe40] sm:$0xff]  ;;  %v425_v51 = vld [vmem:[%s2231_s7 + $0xe48] sm:$0xff] }
  0x52   : > { %v427_v52 = vld [vmem:[%s2231_s7 + $0xe80] sm:$0xff]  ;;  %424 = vst [vmem:[%s2236_s8 + $0x390] sm:$0xff] %v423_v50  ;;  %426 = vst [vmem:[%s2236_s8 + $0x398] sm:$0xff] %v425_v51  ;;  %v429_v53 = vld [vmem:[%s2231_s7 + $0xe88] sm:$0xff] }
  0x53   : > { %428 = vst [vmem:[%s2236_s8 + $0x3a0] sm:$0xff] %v427_v52  ;;  %v431_v54 = vld [vmem:[%s2231_s7 + $0xec0] sm:$0xff]  ;;  %v433_v55 = vld [vmem:[%s2231_s7 + $0xec8] sm:$0xff]  ;;  %430 = vst [vmem:[%s2236_s8 + $0x3a8] sm:$0xff] %v429_v53 }
  0x54   : > { %432 = vst [vmem:[%s2236_s8 + $0x3b0] sm:$0xff] %v431_v54  ;;  %434 = vst [vmem:[%s2236_s8 + $0x3b8] sm:$0xff] %v433_v55  ;;  %v435_v56 = vld [vmem:[%s2231_s7 + $0xf00] sm:$0xff]  ;;  %v437_v57 = vld [vmem:[%s2231_s7 + $0xf08] sm:$0xff] }
  0x55   : > { %v439_v58 = vld [vmem:[%s2231_s7 + $0xf40] sm:$0xff]  ;;  %436 = vst [vmem:[%s2236_s8 + $0x3c0] sm:$0xff] %v435_v56  ;;  %438 = vst [vmem:[%s2236_s8 + $0x3c8] sm:$0xff] %v437_v57  ;;  %v441_v59 = vld [vmem:[%s2231_s7 + $0xf48] sm:$0xff] }
  0x56   : > { %440 = vst [vmem:[%s2236_s8 + $0x3d0] sm:$0xff] %v439_v58  ;;  %v443_v60 = vld [vmem:[%s2231_s7 + $0xf80] sm:$0xff]  ;;  %v445_v61 = vld [vmem:[%s2231_s7 + $0xf88] sm:$0xff]  ;;  %442 = vst [vmem:[%s2236_s8 + $0x3d8] sm:$0xff] %v441_v59 }
  0x57   : > { %444 = vst [vmem:[%s2236_s8 + $0x3e0] sm:$0xff] %v443_v60  ;;  %446 = vst [vmem:[%s2236_s8 + $0x3e8] sm:$0xff] %v445_v61  ;;  %v447_v62 = vld [vmem:[%s2231_s7 + $0xfc0] sm:$0xff]  ;;  %v449_v63 = vld [vmem:[%s2231_s7 + $0xfc8] sm:$0xff] }
  0x58   : > { %448 = vst [vmem:[%s2236_s8 + $0x3f0] sm:$0xff] %v447_v62  ;;  %450 = vst [vmem:[%s2236_s8 + $0x3f8] sm:$0xff] %v449_v63 }
  0x59 PF: > { %p1693_p7 = scmp.ge.s32.totalorder %s2148_s18, 1  ;;  %p463_p8 = scmp.lt.s32.totalorder %s2148_s18, 33 }
  0x5b   : > { %p464_p9 = pnand %p1693_p7, %p463_p8 }
  0x5c   : > { %s470_s9 = sand.u32 (!%p464_p9), 1, %s2124_s12   ;;  %s1695_s10 = sshll.u32 (!%p464_p9), %s2132_s14, 2 }
  0x5d   : > { %467 = sbr.rel (%p464_p9) target bundleno = 472 (0x1d8), region = 51  ;;  %s1694_s11 = sshll.u32 (!%p464_p9), %s470_s9, 10 }
  0x5e   : > { %p513_p10 = scmp.lt.s32.totalorder (!%p464_p9), %s1695_s10, 31  ;;  %s1697_s21 = sshll.u32 (!%p464_p9), %s2136_s15, 2 }
  0x5f   : > { %p523_p11 = scmp.lt.s32.totalorder (!%p464_p9), %s1697_s21, 15  ;;  %s2513_s5 = scalar_lea.vmem (!%p464_p9), [#allocation3], %s1694_s11 }
  0x60   : > { %p1700_p12 = scmp.ne.s32.totalorder (!%p464_p9), %s2132_s14, 0 }
  0x64   : > { %s2704_s10 = smov (!%p513_p10, %s1695_s10), 31  ;;  %s2706_s21 = smov (!%p523_p11, %s1697_s21), 15 }
  0x65   : > { %s1696_s22 = sshll.u32 %s2704_s10, 2  ;;  %s525_s12 = scalar_lea.vmem %s2689_s2, %s2706_s21  ;;  %v2150_v0 = vmov (!%p1700_p12), 0.0  }
  0x66   : > { %s2499_s26 = scalar_lea.vmem %s2687_s0, %s1696_s22  ;;  %s1699_s29 = sshll.u32 %s2706_s21, 2  ;;  %541 = vst [vmem:[#allocation2] sm:$0xff] (!%p1700_p12), %v2150_v0  ;;  %542 = vst [vmem:[#allocation2 + $0x8] sm:$0xff] (!%p1700_p12), %v2150_v0 }
  0x67   : > { %s2511_s15 = scalar_lea.vmem %s2690_s3, %s1699_s29  ;;  %540 = sbr.rel (%p1700_p12) target bundleno = 110 (0x6e), region = 59  ;;  %543 = vst [vmem:[#allocation2 + $0x10] sm:$0xff] (!%p1700_p12), %v2150_v0  ;;  %544 = vst [vmem:[#allocation2 + $0x18] sm:$0xff] (!%p1700_p12), %v2150_v0 }
  0x6e PF: > { %v1898_v1 = vld [vmem:[%s2513_s5 + $0x4] ss:$16 sps:$4 sm:$0xff]   ;;  %v1902_v3 = vld [vmem:[%s2513_s5] ss:$16 sps:$4 sm:$0xff]   ;;  %v550_v49 = vld [vmem:[%s2499_s26 + $0x8] sm:$0xff]  ;;  %p1833_p13 = scmp.ne.s32.totalorder %s2132_s14, 7 }
  0x6f   : > { %v1900_v2 = vld [vmem:[%s2513_s5 + $0x204] ss:$16 sps:$4 sm:$0xff]   ;;  %1333 = vmatprep.subr.bf16.mxu0 %v1898_v1  ;;  %v1903_v4 = vld [vmem:[%s2513_s5 + $0x200] ss:$16 sps:$4 sm:$0xff]   ;;  %v1704_v52 = vcombine.high %v550_v49, %v550_v49 }
  0x70   : > { %1374 = vmatprep.subr.bf16.mxu1 %v1900_v2  ;;  %v1904_v5 = vld [vmem:[%s2513_s5 + $0x24] ss:$16 sps:$4 sm:$0xff]   ;;  %1334 = vmatpush1.bf16.msra.mxu0 %v1902_v3  ;;  %v1908_v7 = vld [vmem:[%s2513_s5 + $0x20] ss:$16 sps:$4 sm:$0xff]  }
  0x71   : > { %1375 = vmatpush1.bf16.msra.mxu1 %v1903_v4  ;;  %v1906_v6 = vld [vmem:[%s2513_s5 + $0x224] ss:$16 sps:$4 sm:$0xff]   ;;  %1335 = vmatprep.subr.bf16.mxu0 %v1904_v5  ;;  %v1909_v8 = vld [vmem:[%s2513_s5 + $0x220] ss:$16 sps:$4 sm:$0xff]   ;;  %v2000_v5 = vld [vmem:[%s2513_s5 + $0xc] ss:$16 sps:$4 sm:$0xff]  }
  0x72   : > { %1376 = vmatprep.subr.bf16.mxu1 %v1906_v6  ;;  %v1910_v9 = vld [vmem:[%s2513_s5 + $0x44] ss:$16 sps:$4 sm:$0xff]   ;;  %v1914_v11 = vld [vmem:[%s2513_s5 + $0x40] ss:$16 sps:$4 sm:$0xff]   ;;  %1406 = vmatprep.mubr.bf16.mxu1 %v1704_v52  ;;  %v2003_v6 = vld [vmem:[%s2513_s5 + $0x20c] ss:$16 sps:$4 sm:$0xff]  }
  0x73   : > { %v1912_v10 = vld [vmem:[%s2513_s5 + $0x244] ss:$16 sps:$4 sm:$0xff]   ;;  %v1915_v12 = vld [vmem:[%s2513_s5 + $0x240] ss:$16 sps:$4 sm:$0xff]  }
  0x74   : > { %1336 = vmatpush1.bf16.msra.mxu0 %v1908_v7  ;;  %v1916_v13 = vld [vmem:[%s2513_s5 + $0x64] ss:$16 sps:$4 sm:$0xff]   ;;  %v1920_v15 = vld [vmem:[%s2513_s5 + $0x60] ss:$16 sps:$4 sm:$0xff]  }
  0x75   : > { %1377 = vmatpush1.bf16.msra.mxu1 %v1909_v8  ;;  %1337 = vmatprep.subr.bf16.mxu0 %v1910_v9  ;;  %v1918_v14 = vld [vmem:[%s2513_s5 + $0x264] ss:$16 sps:$4 sm:$0xff]   ;;  %v1921_v16 = vld [vmem:[%s2513_s5 + $0x260] ss:$16 sps:$4 sm:$0xff]   ;;  %v2589_v8 = vcombine.low %v550_v49, %v550_v49  ;;  %v1998_v9 = vld [vmem:[%s2513_s5 + $0x8] ss:$16 sps:$4 sm:$0xff]  }
  0x76   : > { %1378 = vmatprep.subr.bf16.mxu1 %v1912_v10  ;;  %v1922_v17 = vld [vmem:[%s2513_s5 + $0x84] ss:$16 sps:$4 sm:$0xff]   ;;  %v1926_v19 = vld [vmem:[%s2513_s5 + $0x80] ss:$16 sps:$4 sm:$0xff]   ;;  %v2001_v10 = vld [vmem:[%s2513_s5 + $0x208] ss:$16 sps:$4 sm:$0xff]  }
  0x77   : > { %v1924_v18 = vld [vmem:[%s2513_s5 + $0x284] ss:$16 sps:$4 sm:$0xff]   ;;  %v1927_v20 = vld [vmem:[%s2513_s5 + $0x280] ss:$16 sps:$4 sm:$0xff]   ;;  %v2058_v49 = vld [vmem:[%s2513_s5 + $0x148] ss:$16 sps:$4 sm:$0xff]  }
  0x78   : > { %1338 = vmatpush1.bf16.msra.mxu0 %v1914_v11  ;;  %v1928_v21 = vld [vmem:[%s2513_s5 + $0xa4] ss:$16 sps:$4 sm:$0xff]   ;;  %v1932_v23 = vld [vmem:[%s2513_s5 + $0xa0] ss:$16 sps:$4 sm:$0xff]   ;;  %v2006_v11 = vld [vmem:[%s2513_s5 + $0x2c] ss:$16 sps:$4 sm:$0xff]  }
  0x79   : > { %1379 = vmatpush1.bf16.msra.mxu1 %v1915_v12  ;;  %1339 = vmatprep.subr.bf16.mxu0 %v1916_v13  ;;  %v1930_v22 = vld [vmem:[%s2513_s5 + $0x2a4] ss:$16 sps:$4 sm:$0xff]   ;;  %v1933_v24 = vld [vmem:[%s2513_s5 + $0x2a0] ss:$16 sps:$4 sm:$0xff]   ;;  %v2009_v12 = vld [vmem:[%s2513_s5 + $0x22c] ss:$16 sps:$4 sm:$0xff]  }
  0x7a   : > { %1380 = vmatprep.subr.bf16.mxu1 %v1918_v14  ;;  %v1934_v25 = vld [vmem:[%s2513_s5 + $0xc4] ss:$16 sps:$4 sm:$0xff]   ;;  %v1938_v27 = vld [vmem:[%s2513_s5 + $0xc0] ss:$16 sps:$4 sm:$0xff]   ;;  %v2004_v13 = vld [vmem:[%s2513_s5 + $0x28] ss:$16 sps:$4 sm:$0xff]  }
  0x7b   : > { %v1936_v26 = vld [vmem:[%s2513_s5 + $0x2c4] ss:$16 sps:$4 sm:$0xff]   ;;  %v1939_v28 = vld [vmem:[%s2513_s5 + $0x2c0] ss:$16 sps:$4 sm:$0xff]   ;;  %v2007_v14 = vld [vmem:[%s2513_s5 + $0x228] ss:$16 sps:$4 sm:$0xff]  }
  0x7c   : > { %1340 = vmatpush1.bf16.msra.mxu0 %v1920_v15  ;;  %v1940_v29 = vld [vmem:[%s2513_s5 + $0xe4] ss:$16 sps:$4 sm:$0xff]   ;;  %v1944_v31 = vld [vmem:[%s2513_s5 + $0xe0] ss:$16 sps:$4 sm:$0xff]   ;;  %v2012_v15 = vld [vmem:[%s2513_s5 + $0x4c] ss:$16 sps:$4 sm:$0xff]  }
  0x7d   : > { %1381 = vmatpush1.bf16.msra.mxu1 %v1921_v16  ;;  %1341 = vmatprep.subr.bf16.mxu0 %v1922_v17  ;;  %v1942_v30 = vld [vmem:[%s2513_s5 + $0x2e4] ss:$16 sps:$4 sm:$0xff]   ;;  %v1945_v32 = vld [vmem:[%s2513_s5 + $0x2e0] ss:$16 sps:$4 sm:$0xff]   ;;  %v2015_v16 = vld [vmem:[%s2513_s5 + $0x24c] ss:$16 sps:$4 sm:$0xff]  }
  0x7e   : > { %1382 = vmatprep.subr.bf16.mxu1 %v1924_v18  ;;  %v1946_v33 = vld [vmem:[%s2513_s5 + $0x104] ss:$16 sps:$4 sm:$0xff]   ;;  %v1950_v35 = vld [vmem:[%s2513_s5 + $0x100] ss:$16 sps:$4 sm:$0xff]   ;;  %v2010_v17 = vld [vmem:[%s2513_s5 + $0x48] ss:$16 sps:$4 sm:$0xff]  }
  0x7f   : > { %v1948_v34 = vld [vmem:[%s2513_s5 + $0x304] ss:$16 sps:$4 sm:$0xff]   ;;  %v1951_v36 = vld [vmem:[%s2513_s5 + $0x300] ss:$16 sps:$4 sm:$0xff]   ;;  %v2013_v18 = vld [vmem:[%s2513_s5 + $0x248] ss:$16 sps:$4 sm:$0xff]  }
  0x80   : > { %1342 = vmatpush1.bf16.msra.mxu0 %v1926_v19  ;;  %v1952_v37 = vld [vmem:[%s2513_s5 + $0x124] ss:$16 sps:$4 sm:$0xff]   ;;  %v1956_v39 = vld [vmem:[%s2513_s5 + $0x120] ss:$16 sps:$4 sm:$0xff]   ;;  %v2018_v19 = vld [vmem:[%s2513_s5 + $0x6c] ss:$16 sps:$4 sm:$0xff]  }
  0x81   : > { %1383 = vmatpush1.bf16.msra.mxu1 %v1927_v20  ;;  %1343 = vmatprep.subr.bf16.mxu0 %v1928_v21  ;;  %v1954_v38 = vld [vmem:[%s2513_s5 + $0x324] ss:$16 sps:$4 sm:$0xff]   ;;  %v1957_v40 = vld [vmem:[%s2513_s5 + $0x320] ss:$16 sps:$4 sm:$0xff]   ;;  %v2021_v20 = vld [vmem:[%s2513_s5 + $0x26c] ss:$16 sps:$4 sm:$0xff]  }
  0x82   : > { %1384 = vmatprep.subr.bf16.mxu1 %v1930_v22  ;;  %v1958_v41 = vld [vmem:[%s2513_s5 + $0x144] ss:$16 sps:$4 sm:$0xff]   ;;  %v1962_v43 = vld [vmem:[%s2513_s5 + $0x140] ss:$16 sps:$4 sm:$0xff]   ;;  %v2016_v21 = vld [vmem:[%s2513_s5 + $0x68] ss:$16 sps:$4 sm:$0xff]  }
  0x83   : > { %v1960_v42 = vld [vmem:[%s2513_s5 + $0x344] ss:$16 sps:$4 sm:$0xff]   ;;  %v1963_v44 = vld [vmem:[%s2513_s5 + $0x340] ss:$16 sps:$4 sm:$0xff]   ;;  %v2019_v22 = vld [vmem:[%s2513_s5 + $0x268] ss:$16 sps:$4 sm:$0xff]  }
  0x84   : > { %1344 = vmatpush1.bf16.msra.mxu0 %v1932_v23  ;;  %v1964_v45 = vld [vmem:[%s2513_s5 + $0x164] ss:$16 sps:$4 sm:$0xff]   ;;  %v1968_v50 = vld [vmem:[%s2513_s5 + $0x160] ss:$16 sps:$4 sm:$0xff]   ;;  %v2024_v23 = vld [vmem:[%s2513_s5 + $0x8c] ss:$16 sps:$4 sm:$0xff]  }
  0x85   : > { %1385 = vmatpush1.bf16.msra.mxu1 %v1933_v24  ;;  %1345 = vmatprep.subr.bf16.mxu0 %v1934_v25  ;;  %v1966_v46 = vld [vmem:[%s2513_s5 + $0x364] ss:$16 sps:$4 sm:$0xff]   ;;  %v1969_v51 = vld [vmem:[%s2513_s5 + $0x360] ss:$16 sps:$4 sm:$0xff]   ;;  %v2027_v24 = vld [vmem:[%s2513_s5 + $0x28c] ss:$16 sps:$4 sm:$0xff]  }
  0x86   : > { %1386 = vmatprep.subr.bf16.mxu1 %v1936_v26  ;;  %v549_v47 = vld [vmem:[%s2499_s26] sm:$0xff]  ;;  %v2022_v25 = vld [vmem:[%s2513_s5 + $0x88] ss:$16 sps:$4 sm:$0xff]  }
  0x87   : > { %v2563_v48 = vcombine.high %v549_v47, %v549_v47  ;;  %v1970_v53 = vld [vmem:[%s2513_s5 + $0x184] ss:$16 sps:$4 sm:$0xff]   ;;  %v1974_v55 = vld [vmem:[%s2513_s5 + $0x180] ss:$16 sps:$4 sm:$0xff]   ;;  %v2587_v7 = vcombine.low %v549_v47, %v549_v47  ;;  %v2025_v26 = vld [vmem:[%s2513_s5 + $0x288] ss:$16 sps:$4 sm:$0xff]  }
  0x88   : > { %1346 = vmatpush1.bf16.msra.mxu0 %v1938_v27  ;;  %v1972_v54 = vld [vmem:[%s2513_s5 + $0x384] ss:$16 sps:$4 sm:$0xff]   ;;  %v1975_v56 = vld [vmem:[%s2513_s5 + $0x380] ss:$16 sps:$4 sm:$0xff]   ;;  %v2030_v27 = vld [vmem:[%s2513_s5 + $0xac] ss:$16 sps:$4 sm:$0xff]  }
  0x89   : > { %1387 = vmatpush1.bf16.msra.mxu1 %v1939_v28  ;;  %1347 = vmatprep.subr.bf16.mxu0 %v1940_v29  ;;  %v1976_v57 = vld [vmem:[%s2513_s5 + $0x1a4] ss:$16 sps:$4 sm:$0xff]   ;;  %v1980_v59 = vld [vmem:[%s2513_s5 + $0x1a0] ss:$16 sps:$4 sm:$0xff]   ;;  %v2033_v28 = vld [vmem:[%s2513_s5 + $0x2ac] ss:$16 sps:$4 sm:$0xff]  }
  0x8a   : > { %1388 = vmatprep.subr.bf16.mxu1 %v1942_v30  ;;  %1365 = vmatprep.mubr.bf16.mxu0 %v2563_v48  ;;  %v1978_v58 = vld [vmem:[%s2513_s5 + $0x3a4] ss:$16 sps:$4 sm:$0xff]   ;;  %v1981_v60 = vld [vmem:[%s2513_s5 + $0x3a0] ss:$16 sps:$4 sm:$0xff]   ;;  %v2028_v29 = vld [vmem:[%s2513_s5 + $0xa8] ss:$16 sps:$4 sm:$0xff]  }
  0x8b   : > { %v1982_v61 = vld [vmem:[%s2513_s5 + $0x1c4] ss:$16 sps:$4 sm:$0xff]   ;;  %v1986_v63 = vld [vmem:[%s2513_s5 + $0x1c0] ss:$16 sps:$4 sm:$0xff]   ;;  %v2031_v30 = vld [vmem:[%s2513_s5 + $0x2a8] ss:$16 sps:$4 sm:$0xff]  }
  0x8c   : > { %1348 = vmatpush1.bf16.msra.mxu0 %v1944_v31  ;;  %v1984_v62 = vld [vmem:[%s2513_s5 + $0x3c4] ss:$16 sps:$4 sm:$0xff]   ;;  %v1987_v0 = vld [vmem:[%s2513_s5 + $0x3c0] ss:$16 sps:$4 sm:$0xff]   ;;  %v2036_v31 = vld [vmem:[%s2513_s5 + $0xcc] ss:$16 sps:$4 sm:$0xff]  }
  0x8d   : > { %1389 = vmatpush1.bf16.msra.mxu1 %v1945_v32  ;;  %1349 = vmatprep.subr.bf16.mxu0 %v1946_v33  ;;  %v1988_v1 = vld [vmem:[%s2513_s5 + $0x1e4] ss:$16 sps:$4 sm:$0xff]   ;;  %v1992_v3 = vld [vmem:[%s2513_s5 + $0x1e0] ss:$16 sps:$4 sm:$0xff]   ;;  %v2039_v32 = vld [vmem:[%s2513_s5 + $0x2cc] ss:$16 sps:$4 sm:$0xff]  }
  0x8e   : > { %1390 = vmatprep.subr.bf16.mxu1 %v1948_v34  ;;  %v1990_v2 = vld [vmem:[%s2513_s5 + $0x3e4] ss:$16 sps:$4 sm:$0xff]   ;;  %v1993_v4 = vld [vmem:[%s2513_s5 + $0x3e0] ss:$16 sps:$4 sm:$0xff]   ;;  %v2034_v33 = vld [vmem:[%s2513_s5 + $0xc8] ss:$16 sps:$4 sm:$0xff]  }
  0x8f   : > { %v2037_v34 = vld [vmem:[%s2513_s5 + $0x2c8] ss:$16 sps:$4 sm:$0xff]   ;;  %v2060_v47 = vld [vmem:[%s2513_s5 + $0x14c] ss:$16 sps:$4 sm:$0xff]  }
  0x90   : > { %1350 = vmatpush1.bf16.msra.mxu0 %v1950_v35  ;;  %v2042_v35 = vld [vmem:[%s2513_s5 + $0xec] ss:$16 sps:$4 sm:$0xff]  }
  0x91   : > { %1391 = vmatpush1.bf16.msra.mxu1 %v1951_v36  ;;  %1351 = vmatprep.subr.bf16.mxu0 %v1952_v37  ;;  %v2045_v36 = vld [vmem:[%s2513_s5 + $0x2ec] ss:$16 sps:$4 sm:$0xff]   ;;  %v2040_v37 = vld [vmem:[%s2513_s5 + $0xe8] ss:$16 sps:$4 sm:$0xff]  }
  0x92   : > { %1392 = vmatprep.subr.bf16.mxu1 %v1954_v38  ;;  %v2043_v38 = vld [vmem:[%s2513_s5 + $0x2e8] ss:$16 sps:$4 sm:$0xff]  }
  0x94   : > { %1352 = vmatpush1.bf16.msra.mxu0 %v1956_v39  ;;  %v2048_v39 = vld [vmem:[%s2513_s5 + $0x10c] ss:$16 sps:$4 sm:$0xff]  }
  0x95   : > { %1393 = vmatpush1.bf16.msra.mxu1 %v1957_v40  ;;  %1353 = vmatprep.subr.bf16.mxu0 %v1958_v41  ;;  %v2051_v40 = vld [vmem:[%s2513_s5 + $0x30c] ss:$16 sps:$4 sm:$0xff]   ;;  %v2046_v41 = vld [vmem:[%s2513_s5 + $0x108] ss:$16 sps:$4 sm:$0xff]  }
  0x96   : > { %1394 = vmatprep.subr.bf16.mxu1 %v1960_v42  ;;  %v2049_v42 = vld [vmem:[%s2513_s5 + $0x308] ss:$16 sps:$4 sm:$0xff]  }
  0x98   : > { %1354 = vmatpush1.bf16.msra.mxu0 %v1962_v43  ;;  %v2054_v43 = vld [vmem:[%s2513_s5 + $0x12c] ss:$16 sps:$4 sm:$0xff]  }
  0x99   : > { %1395 = vmatpush1.bf16.msra.mxu1 %v1963_v44  ;;  %1355 = vmatprep.subr.bf16.mxu0 %v1964_v45  ;;  %v2057_v44 = vld [vmem:[%s2513_s5 + $0x32c] ss:$16 sps:$4 sm:$0xff]   ;;  %v2052_v45 = vld [vmem:[%s2513_s5 + $0x128] ss:$16 sps:$4 sm:$0xff]  }
  0x9a   : > { %1396 = vmatprep.subr.bf16.mxu1 %v1966_v46  ;;  %v2055_v46 = vld [vmem:[%s2513_s5 + $0x328] ss:$16 sps:$4 sm:$0xff]  }
  0x9c   : > { %1356 = vmatpush1.bf16.msra.mxu0 %v1968_v50  ;;  %v2061_v50 = vld [vmem:[%s2513_s5 + $0x348] ss:$16 sps:$4 sm:$0xff]  }
  0x9d   : > { %1397 = vmatpush1.bf16.msra.mxu1 %v1969_v51  ;;  %1357 = vmatprep.subr.bf16.mxu0 %v1970_v53  ;;  %v2066_v51 = vld [vmem:[%s2513_s5 + $0x16c] ss:$16 sps:$4 sm:$0xff]   ;;  %v2064_v53 = vld [vmem:[%s2513_s5 + $0x168] ss:$16 sps:$4 sm:$0xff]  }
  0x9e   : > { %1398 = vmatprep.subr.bf16.mxu1 %v1972_v54  ;;  %v2067_v54 = vld [vmem:[%s2513_s5 + $0x368] ss:$16 sps:$4 sm:$0xff]  }
  0xa0   : > { %1358 = vmatpush1.bf16.msra.mxu0 %v1974_v55  ;;  %v2072_v55 = vld [vmem:[%s2513_s5 + $0x18c] ss:$16 sps:$4 sm:$0xff]  }
  0xa1   : > { %1399 = vmatpush1.bf16.msra.mxu1 %v1975_v56  ;;  %1359 = vmatprep.subr.bf16.mxu0 %v1976_v57  ;;  %v2075_v56 = vld [vmem:[%s2513_s5 + $0x38c] ss:$16 sps:$4 sm:$0xff]   ;;  %v2070_v57 = vld [vmem:[%s2513_s5 + $0x188] ss:$16 sps:$4 sm:$0xff]  }
  0xa2   : > { %1400 = vmatprep.subr.bf16.mxu1 %v1978_v58  ;;  %v2073_v58 = vld [vmem:[%s2513_s5 + $0x388] ss:$16 sps:$4 sm:$0xff]  }
  0xa4   : > { %1360 = vmatpush1.bf16.msra.mxu0 %v1980_v59  ;;  %v2078_v59 = vld [vmem:[%s2513_s5 + $0x1ac] ss:$16 sps:$4 sm:$0xff]  }
  0xa5   : > { %1401 = vmatpush1.bf16.msra.mxu1 %v1981_v60  ;;  %1361 = vmatprep.subr.bf16.mxu0 %v1982_v61  ;;  %v2081_v60 = vld [vmem:[%s2513_s5 + $0x3ac] ss:$16 sps:$4 sm:$0xff]   ;;  %v2076_v61 = vld [vmem:[%s2513_s5 + $0x1a8] ss:$16 sps:$4 sm:$0xff]  }
  0xa6   : > { %1402 = vmatprep.subr.bf16.mxu1 %v1984_v62  ;;  %v2079_v62 = vld [vmem:[%s2513_s5 + $0x3a8] ss:$16 sps:$4 sm:$0xff]  }
  0xa8   : > { %1362 = vmatpush1.bf16.msra.mxu0 %v1986_v63  ;;  %v2084_v63 = vld [vmem:[%s2513_s5 + $0x1cc] ss:$16 sps:$4 sm:$0xff]  }
  0xa9   : > { %1403 = vmatpush1.bf16.msra.mxu1 %v1987_v0  ;;  %1363 = vmatprep.subr.bf16.mxu0 %v1988_v1  ;;  %v2087_v0 = vld [vmem:[%s2513_s5 + $0x3cc] ss:$16 sps:$4 sm:$0xff]   ;;  %v2082_v1 = vld [vmem:[%s2513_s5 + $0x1c8] ss:$16 sps:$4 sm:$0xff]  }
  0xaa   : > { %1404 = vmatprep.subr.bf16.mxu1 %v1990_v2  ;;  %v2085_v2 = vld [vmem:[%s2513_s5 + $0x3c8] ss:$16 sps:$4 sm:$0xff]  }
  0xac   : > { %1364 = vmatpush1.bf16.msra.mxu0 %v1992_v3  ;;  %v2090_v3 = vld [vmem:[%s2513_s5 + $0x1ec] ss:$16 sps:$4 sm:$0xff]  }
  0xad   : > { %1405 = vmatpush1.bf16.msra.mxu1 %v1993_v4  ;;  %1415 = vmatprep.subr.bf16.mxu0 %v2000_v5  ;;  %v2093_v4 = vld [vmem:[%s2513_s5 + $0x3ec] ss:$16 sps:$4 sm:$0xff]   ;;  %v2088_v5 = vld [vmem:[%s2513_s5 + $0x1e8] ss:$16 sps:$4 sm:$0xff]  }
  0xae   : > { %1456 = vmatprep.subr.bf16.mxu1 %v2003_v6  ;;  %v2091_v6 = vld [vmem:[%s2513_s5 + $0x3e8] ss:$16 sps:$4 sm:$0xff]  }
  0xaf   : > { %1366 = vmatmul.mubr.bf16.vlgmr.msra.gmra.mrb[0].mxu0 %v2587_v7 }
  0xb0   : > { %1407 = vmatmul.mubr.bf16.vlgmr.msra.gmra.mrb[0].mxu1 %v2589_v8  ;;  %1416 = vmatpush1.bf16.msra.mxu0 %v1998_v9 }
  0xb1   : > { %1457 = vmatpush1.bf16.msra.mxu1 %v2001_v10  ;;  %1417 = vmatprep.subr.bf16.mxu0 %v2006_v11  ;;  %v545_v10 = vld [vmem:[#allocation2] sm:$0xff] }
  0xb2   : > { %1458 = vmatprep.subr.bf16.mxu1 %v2009_v12  ;;  %1447 = vmatprep.mubr.bf16.mxu0 %v2563_v48  ;;  %v2063_v48 = vld [vmem:[%s2513_s5 + $0x34c] ss:$16 sps:$4 sm:$0xff]  }
  0xb3   : > { %1488 = vmatprep.mubr.bf16.mxu1 %v1704_v52  ;;  %v2069_v52 = vld [vmem:[%s2513_s5 + $0x36c] ss:$16 sps:$4 sm:$0xff]  }
  0xb4   : > { %1418 = vmatpush1.bf16.msra.mxu0 %v2004_v13 }
  0xb5   : > { %1459 = vmatpush1.bf16.msra.mxu1 %v2007_v14  ;;  %1419 = vmatprep.subr.bf16.mxu0 %v2012_v15  ;;  %v546_v14 = vld [vmem:[#allocation2 + $0x8] sm:$0xff] }
  0xb6   : > { %1460 = vmatprep.subr.bf16.mxu1 %v2015_v16 }
  0xb8   : > { %1420 = vmatpush1.bf16.msra.mxu0 %v2010_v17 }
  0xb9   : > { %1461 = vmatpush1.bf16.msra.mxu1 %v2013_v18  ;;  %1421 = vmatprep.subr.bf16.mxu0 %v2018_v19 }
  0xba   : > { %1462 = vmatprep.subr.bf16.mxu1 %v2021_v20 }
  0xbc   : > { %1422 = vmatpush1.bf16.msra.mxu0 %v2016_v21 }
  0xbd   : > { %1463 = vmatpush1.bf16.msra.mxu1 %v2019_v22  ;;  %1423 = vmatprep.subr.bf16.mxu0 %v2024_v23 }
  0xbe   : > { %1464 = vmatprep.subr.bf16.mxu1 %v2027_v24 }
  0xc0   : > { %1424 = vmatpush1.bf16.msra.mxu0 %v2022_v25 }
  0xc1   : > { %1465 = vmatpush1.bf16.msra.mxu1 %v2025_v26  ;;  %1425 = vmatprep.subr.bf16.mxu0 %v2030_v27  ;;  %v548_v26 = vld [vmem:[#allocation2 + $0x18] sm:$0xff] }
  0xc2   : > { %1466 = vmatprep.subr.bf16.mxu1 %v2033_v28 }
  0xc4   : > { %1426 = vmatpush1.bf16.msra.mxu0 %v2028_v29 }
  0xc5   : > { %1467 = vmatpush1.bf16.msra.mxu1 %v2031_v30  ;;  %1427 = vmatprep.subr.bf16.mxu0 %v2036_v31 }
  0xc6   : > { %1468 = vmatprep.subr.bf16.mxu1 %v2039_v32 }
  0xc8   : > { %1428 = vmatpush1.bf16.msra.mxu0 %v2034_v33 }
  0xc9   : > { %1469 = vmatpush1.bf16.msra.mxu1 %v2037_v34  ;;  %1429 = vmatprep.subr.bf16.mxu0 %v2042_v35  ;;  %v1515_v35 = vlaneseq (!%p1833_p13) }
  0xca   : > { %1470 = vmatprep.subr.bf16.mxu1 %v2045_v36 }
  0xcb   : > { %v1516_v36 = vshrl.u32 (!%p1833_p13), %v1515_v35, 7 }
  0xcc   : > { %1430 = vmatpush1.bf16.msra.mxu0 %v2040_v37  ;;  %v1513_v37 = vld [vmem:[%s525_s12] sm:$0xf] (!%p1833_p13) }
  0xcd   : > { %1471 = vmatpush1.bf16.msra.mxu1 %v2043_v38  ;;  %1431 = vmatprep.subr.bf16.mxu0 %v2048_v39  ;;  %v1517_v39 = vsub.s32 (!%p1833_p13), 0, %v1516_v36 }
  0xce   : > { %1472 = vmatprep.subr.bf16.mxu1 %v2051_v40  ;;  %v1521_v40 = vsub.s32 (!%p1833_p13), 1, %v1516_v36 }
  0xd0   : > { %1432 = vmatpush1.bf16.msra.mxu0 %v2046_v41  ;;  %v1525_v41 = vsub.s32 (!%p1833_p13), 2, %v1516_v36 }
  0xd1   : > { %1473 = vmatpush1.bf16.msra.mxu1 %v2049_v42  ;;  %1433 = vmatprep.subr.bf16.mxu0 %v2054_v43  ;;  %v1529_v42 = vsub.s32 (!%p1833_p13), 3, %v1516_v36 }
  0xd2   : > { %1474 = vmatprep.subr.bf16.mxu1 %v2057_v44 }
  0xd4   : > { %1434 = vmatpush1.bf16.msra.mxu0 %v2052_v45 }
  0xd5   : > { %1475 = vmatpush1.bf16.msra.mxu1 %v2055_v46  ;;  %1435 = vmatprep.subr.bf16.mxu0 %v2060_v47  ;;  %v1518_v46 = vrot.slane (!%p1833_p13), %v1513_v37, %v1517_v39  ;;  %v1522_v47 = vrot.slane (!%p1833_p13), %v1513_v37, %v1521_v40 }
  0xd6   : > { %1476 = vmatprep.subr.bf16.mxu1 %v2063_v48  ;;  %v1526_v48 = vrot.slane (!%p1833_p13), %v1513_v37, %v1525_v41 }
  0xd8   : > { %1436 = vmatpush1.bf16.msra.mxu0 %v2058_v49  ;;  %v1530_v49 = vrot.slane (!%p1833_p13), %v1513_v37, %v1529_v42 }
  0xd9   : > { %1477 = vmatpush1.bf16.msra.mxu1 %v2061_v50  ;;  %1437 = vmatprep.subr.bf16.mxu0 %v2066_v51 }
  0xda   : > { %1478 = vmatprep.subr.bf16.mxu1 %v2069_v52 }
  0xdc   : > { %1438 = vmatpush1.bf16.msra.mxu0 %v2064_v53 }
  0xdd   : > { %1479 = vmatpush1.bf16.msra.mxu1 %v2067_v54  ;;  %1439 = vmatprep.subr.bf16.mxu0 %v2072_v55 }
  0xde   : > { %1480 = vmatprep.subr.bf16.mxu1 %v2075_v56 }
  0xe0   : > { %1440 = vmatpush1.bf16.msra.mxu0 %v2070_v57 }
  0xe1   : > { %1481 = vmatpush1.bf16.msra.mxu1 %v2073_v58  ;;  %1441 = vmatprep.subr.bf16.mxu0 %v2078_v59 }
  0xe2   : > { %1482 = vmatprep.subr.bf16.mxu1 %v2081_v60 }
  0xe4   : > { %1442 = vmatpush1.bf16.msra.mxu0 %v2076_v61 }
  0xe5   : > { %1483 = vmatpush1.bf16.msra.mxu1 %v2079_v62  ;;  %1443 = vmatprep.subr.bf16.mxu0 %v2084_v63 }
  0xe6   : > { %1484 = vmatprep.subr.bf16.mxu1 %v2087_v0 }
  0xe8   : > { %1444 = vmatpush1.bf16.msra.mxu0 %v2082_v1 }
  0xe9   : > { %1485 = vmatpush1.bf16.msra.mxu1 %v2085_v2  ;;  %1445 = vmatprep.subr.bf16.mxu0 %v2090_v3 }
  0xea   : > { %1486 = vmatprep.subr.bf16.mxu1 %v2093_v4 }
  0xec   : > { %1446 = vmatpush1.bf16.msra.mxu0 %v2088_v5 }
  0xed   : > { %1487 = vmatpush1.bf16.msra.mxu1 %v2091_v6 }
  0xef   : > { %1448 = vmatmul.mubr.bf16.vlgmr.msra.gmra.mrb[4].mxu0 %v2587_v7  ;;  %v547_v7 = vld [vmem:[#allocation2 + $0x10] sm:$0xff] }
  0xf0   : > { %1489 = vmatmul.mubr.bf16.vlgmr.msra.gmra.mrb[4].mxu1 %v2589_v8 }
 0x182   : > { %v1367_v9 = vpop.f32.mrb[0].mxu0 }
 0x183   : > { %v1408_v11 = vpop.f32.mrb[0].mxu1  ;;  %v1369_v13 = vpop.f32.mrb[1].mxu0 }
 0x184   : > { %v1409_v12 = vadd.f32 %v1408_v11, %v1367_v9  ;;  %v1410_v15 = vpop.f32.mrb[1].mxu1  ;;  %v1371_v17 = vpop.f32.mrb[2].mxu0 }
 0x185   : > { %v1411_v16 = vadd.f32 %v1410_v15, %v1369_v13  ;;  %v1412_v18 = vpop.f32.mrb[2].mxu1  ;;  %v1372_v20 = vpop.f32.mrb[3].mxu0 }
 0x186   : > { %v1497_v19 = vadd.f32 %v1409_v12, %v545_v10  ;;  %v1413_v21 = vpop.f32.mrb[3].mxu1 }
 0x187   : > { %v1498_v22 = vadd.f32 %v1411_v16, %v546_v14 }
 0x188   : > { %1501 = vst [vmem:[#allocation2] sm:$0xff] %v1497_v19 }
 0x189   : > { %1502 = vst [vmem:[#allocation2 + $0x8] sm:$0xff] %v1498_v22 }
 0x18f   : > { %v1509_v38 = vld [vmem:[#allocation2] sm:$0xff] (!%p1833_p13) }
 0x190   : > { %v1510_v43 = vld [vmem:[#allocation2 + $0x8] sm:$0xff] (!%p1833_p13)  ;;  %v1535_v50 = vadd.f32 (!%p1833_p13), %v1518_v46, %v1509_v38 }
 0x191   : > { %v1536_v51 = vadd.f32 (!%p1833_p13), %v1522_v47, %v1510_v43 }
 0x192   : > { %v1539_v54 = vmax.f32 (!%p1833_p13), %v1535_v50, 0.0 }
 0x193   : > { %v1540_v55 = vmax.f32 (!%p1833_p13), %v1536_v51, 0.0 }
 0x195   : > { %v1839_v58 = vpack.c.bf16 (!%p1833_p13), %v1540_v55, %v1539_v54 }
 0x197   : > { %1559 = vst [vmem:[%s2511_s15] sm:$0xff] (!%p1833_p13), %v1839_v58 }
 0x1c2   : > { %v1449_v23 = vpop.f32.mrb[4].mxu0 }
 0x1c3   : > { %v1490_v24 = vpop.f32.mrb[4].mxu1  ;;  %v1451_v25 = vpop.f32.mrb[5].mxu0  ;;  %1508 = sbr.rel (%p1833_p13) target bundleno = 472 (0x1d8), region = 63 }
 0x1c4   : > { %v1491_v8 = vadd.f32 %v1490_v24, %v1449_v23  ;;  %v1492_v27 = vpop.f32.mrb[5].mxu1  ;;  %v1453_v29 = vpop.f32.mrb[6].mxu0 }
 0x1c5   : > { %v1493_v28 = vadd.f32 %v1492_v27, %v1451_v25  ;;  %v1494_v30 = vpop.f32.mrb[6].mxu1  ;;  %v1454_v32 = vpop.f32.mrb[7].mxu0 }
 0x1c6   : > { %v1499_v31 = vadd.f32 %v1491_v8, %v547_v7  ;;  %v1495_v33 = vpop.f32.mrb[7].mxu1 }
 0x1c7   : > { %v1500_v34 = vadd.f32 %v1493_v28, %v548_v26 }
 0x1c8   : > { %1503 = vst [vmem:[#allocation2 + $0x10] sm:$0xff] %v1499_v31 }
 0x1c9   : > { %1504 = vst [vmem:[#allocation2 + $0x18] sm:$0xff] %v1500_v34 }
 0x1cf   : > { %v1511_v44 = vld [vmem:[#allocation2 + $0x10] sm:$0xff] }
 0x1d0   : > { %v1512_v45 = vld [vmem:[#allocation2 + $0x18] sm:$0xff]  ;;  %v1537_v52 = vadd.f32 %v1526_v48, %v1511_v44 }
 0x1d1   : > { %v1538_v53 = vadd.f32 %v1530_v49, %v1512_v45 }
 0x1d2   : > { %v1541_v56 = vmax.f32 %v1537_v52, 0.0 }
 0x1d3   : > { %v1542_v57 = vmax.f32 %v1538_v53, 0.0 }
 0x1d5   : > { %v1840_v59 = vpack.c.bf16 %v1542_v57, %v1541_v56 }
 0x1d7   : > { %1560 = vst [vmem:[%s2511_s15 + $0x8] sm:$0xff] %v1840_v59 }
 0x1d8 PF: > { %s13_s18 = sadd.s32 1, %s2148_s18   ;;  %s2691_s12 = smov %s2128_s13 }
 0x1d9   : > { %p10_p0 = scmp.ge.s32.totalorder %s13_s18, 34   ;;  %s2692_s13 = smov %s2222_s25 }
 0x1da   : > { %s2693_s14 = smov %s2140_s16  ;;  %s2694_s15 = smov %s2144_s17 }
 0x1db   : > { %s2695_s16 = smov %s2698_s19  ;;  %s2696_s17 = smov %s2702_s20 }
 0x1dc   :  { %12 = sbr.rel (!%p10_p0) target bundleno = 4 (0x4), region = 104 }

</bundles_post_ra>
